<compile_context>
chip_gen: v5e
topology: v5e:2x2
jax: 0.10.0
libtpu: 0.0.40
codegen_flags: <defaults>
</compile_context>

<pallas_src>
import functools

import numpy as np
import jax
import jax.numpy as jnp
from jax.experimental import pallas as pl
from jax.experimental.pallas import tpu as pltpu

# ----------------------------- configuration (small shapes) -----------------------------
B           = 2                      # batch size
NPTS        = 128                    # points per object cloud
GLOBALD     = 256                    # obj_pcd_encoder global feature (== in_pcd), scaled from 1024
IN_HAND     = 9 + 15 * 3 * 3 + 3     # 147: [global_orient(9), hand_pose(135), transl(3)]
IN_HAND_PAD = 160                    # hand features zero-padded to a 16-aligned width
N_NEUR      = 128                    # ResBlock Fout (CVAE n_neurons), scaled from 512
RB_HID      = 64                     # ResBlock hidden width (PyTorch ResBlock n_neurons=256), scaled
LAT         = 32                     # latentD
POSE_D      = 16 * 6                 # 96

LANES = 256                          # lane width of all packed parameter buffers

# Packed, lane-dense output layout: every field starts on a 128-lane tile boundary.
_O_MU, _O_STD, _O_Z, _O_POSE, _O_TRANS, _O_OBJ = 0, 128, 256, 384, 512, 640
OUT_W = 896

VMEM = pl.BlockSpec(memory_space=pltpu.MemorySpace.VMEM)


# ================================ parameter packing ======================================

def _align(n, m):
    return ((n + m - 1) // m) * m


class _WeightPacker:
    """Packs 2-D weight blocks into one (rows, LANES) buffer.  Several weights can be
    lane-packed side-by-side on the same rows; blocks start at 16-aligned row offsets
    (bf16 sublane tiling)."""

    def __init__(self, lanes=LANES, row_align=16):
        self.lanes, self.row_align = lanes, row_align
        self.rows = 0
        self._blocks = []            # (row_off, np.ndarray (fin, lanes))
        self.off = {}                # name -> (row_off, fin, lane_off, fout)

    def add_block(self, fin, fields):
        """fields: list of (name, arr(fin, fout), lane_off)."""
        blk = np.zeros((fin, self.lanes), np.float32)
        for name, arr, lane in fields:
            assert arr.shape[0] == fin and lane + arr.shape[1] <= self.lanes, name
            blk[:, lane:lane + arr.shape[1]] = arr
            self.off[name] = (self.rows, fin, lane, int(arr.shape[1]))
        self._blocks.append((self.rows, blk))
        self.rows += _align(fin, self.row_align)

    def finalize(self, dtype):
        buf = np.zeros((_align(self.rows, self.row_align), self.lanes), np.float32)
        for row, blk in self._blocks:
            buf[row:row + blk.shape[0], :] = blk
        return jnp.asarray(buf, dtype=dtype)


class _VecPacker:
    """Packs bias / BN-gamma / BN-beta vectors (possibly several lane-packed) per row."""

    def __init__(self, lanes=LANES):
        self.lanes = lanes
        self._rows = []
        self.off = {}                # name -> (row, lane_off, width)

    def add_row(self, fields):
        """fields: list of (name, vec, lane_off)."""
        row = np.zeros((self.lanes,), np.float32)
        for name, vec, lane in fields:
            w = int(vec.shape[-1])
            assert lane + w <= self.lanes, name
            row[lane:lane + w] = vec
            self.off[name] = (len(self._rows), lane, w)
        self._rows.append(row)

    def finalize(self):
        n = _align(len(self._rows), 8)
        buf = np.zeros((n, self.lanes), np.float32)
        buf[:len(self._rows)] = np.stack(self._rows, 0)
        return jnp.asarray(buf)


def init_params(seed=0):
    rng = np.random.default_rng(seed)

    def lin_w(fin, fout):
        return (rng.standard_normal((fin, fout)) / np.sqrt(fin)).astype(np.float32)

    def lin_b(fout):
        return (rng.standard_normal((fout,)) * 0.01).astype(np.float32)

    wp = _WeightPacker()             # main weight slab (bf16, async-DMA'd in-kernel)
    pn = _WeightPacker()             # PointNet weights (small, auto-DMA'd)
    vp = _VecPacker()                # all biases / BN gamma / BN beta (f32)

    # --- simplified PointNet encoder: shared per-point MLP 3 -> 64 -> 128 -> GLOBALD
    pn.add_block(3,   [('pn1', lin_w(3, 64), 0)])
    pn.add_block(64,  [('pn2', lin_w(64, 128), 0)])
    pn.add_block(128, [('pn3', lin_w(128, GLOBALD), 0)])
    vp.add_row([('pn1_b', lin_b(64), 0)])
    vp.add_row([('pn2_b', lin_b(128), 0)])
    vp.add_row([('pn3_b', lin_b(GLOBALD), 0)])

    # --- fc_bn1 (affine gamma=1, beta=0), split per concat part so slices stay aligned
    vp.add_row([('bn1_g_obj',   np.ones(GLOBALD, np.float32), 0)])
    vp.add_row([('bn1_be_obj',  np.zeros(GLOBALD, np.float32), 0)])
    vp.add_row([('bn1_g_hand',  np.ones(IN_HAND_PAD, np.float32), 0)])
    vp.add_row([('bn1_be_hand', np.zeros(IN_HAND_PAD, np.float32), 0)])

    def add_resblock(px, parts):
        """parts: list of (fin_real, fin_padded).  Per part, fc3 (shortcut, lanes [0,128)) and
        fc1 (lanes [128,192)) are lane-packed into one block -> a single dot per part."""
        for i, (fr, fp) in enumerate(parts):
            w31 = np.zeros((fp, N_NEUR + RB_HID), np.float32)
            w31[:fr, :N_NEUR] = lin_w(fr, N_NEUR)        # fc3 shortcut (Fin != Fout always here)
            w31[:fr, N_NEUR:] = lin_w(fr, RB_HID)        # fc1
            wp.add_block(fp, [(f'{px}_w31_{i}', w31, 0)])
        vp.add_row([(f'{px}_b31', np.concatenate([lin_b(N_NEUR), lin_b(RB_HID)]), 0)])
        vp.add_row([(f'{px}_g1',  np.ones(RB_HID, np.float32), 0)])
        vp.add_row([(f'{px}_be1', np.zeros(RB_HID, np.float32), 0)])
        vp.add_row([(f'{px}_b2',  lin_b(N_NEUR), 0)])
        vp.add_row([(f'{px}_g2',  np.ones(N_NEUR, np.float32), 0)])
        vp.add_row([(f'{px}_be2', np.zeros(N_NEUR, np.float32), 0)])
        return lin_w(RB_HID, N_NEUR)                     # fc2 weight (lane-packed pairwise below)

    obj_p, hand_p = (GLOBALD, GLOBALD), (IN_HAND, IN_HAND_PAD)
    res_p, lat_p = (N_NEUR, N_NEUR), (LAT, LAT)
    e1_w2 = add_resblock('e1', [obj_p, hand_p])                    # fc_rb1
    e2_w2 = add_resblock('e2', [obj_p, hand_p, res_p])             # fc_rb2 on cat([X0, X])
    wp.add_block(RB_HID, [('e1_w2', e1_w2, 0), ('e2_w2', e2_w2, 128)])
    d1_w2 = add_resblock('d1', [lat_p, obj_p])                     # dec_rb1 on cat([Z, obj_f])
    d2_w2 = add_resblock('d2', [lat_p, obj_p, res_p])              # dec_rb2 on cat([X0, X])
    wp.add_block(RB_HID, [('d1_w2', d1_w2, 0), ('d2_w2', d2_w2, 128)])

    # fused heads: enc (mu|var) at lanes [0,64), dec (pose|trans) at lanes [128,227)
    enc_heads = np.concatenate([lin_w(N_NEUR, LAT), lin_w(N_NEUR, LAT)], axis=1)
    dec_heads = np.concatenate([lin_w(N_NEUR, POSE_D), lin_w(N_NEUR, 3)], axis=1)
    wp.add_block(N_NEUR, [('enc_heads', enc_heads, 0), ('dec_heads', dec_heads, 128)])
    vp.add_row([('muvar_b', np.concatenate([lin_b(LAT), lin_b(LAT)]), 0)])
    vp.add_row([('posetrans_b', np.concatenate([lin_b(POSE_D), lin_b(3)]), 0)])

    arrays = {'wbuf': wp.finalize(jnp.bfloat16),
              'pnbuf': pn.finalize(jnp.bfloat16),
              'vbuf': vp.finalize()}
    layout = (wp.off, pn.off, vp.off)
    return arrays, layout


# ===================================== fused kernel ======================================

def _cvae_fused_kernel(verts_ref, hand_ref, eps_ref, pnw_ref, vbuf_ref, whbm_ref,
                       out_ref, wvmem, wsem, *, w_off, pn_off, v_off, bs, npts):
    """PointNet encoder + fc_bn1 + enc/dec ResBlocks + heads, fully resident in VMEM.
    The main weight slab arrives via an async DMA hidden behind the PointNet MLP."""
    f32, bf16 = jnp.float32, jnp.bfloat16

    # Kick off the ~1 MB bf16 weight DMA immediately; it overlaps with the PointNet MLP.
    wcopy = pltpu.make_async_copy(whbm_ref, wvmem, wsem)
    wcopy.start()

    def Wm(name):                                  # main weight block (bf16, scratch VMEM)
        row, fin, lane, fout = w_off[name]
        return wvmem[row:row + fin, lane:lane + fout]

    def Wp(name):                                  # PointNet weight block (bf16, input VMEM)
        row, fin, lane, fout = pn_off[name]
        return pnw_ref[row:row + fin, lane:lane + fout]

    def V(name):                                   # (1, width) bias / gamma / beta row (f32)
        row, lane, width = v_off[name]
        return vbuf_ref[row:row + 1, lane:lane + width]

    def lrelu(v):                                  # nn.LeakyReLU(0.2)
        return jnp.where(v >= 0.0, v, 0.2 * v)

    def bn(v, gname, bename):                      # BatchNorm1d, training mode (batch stats)
        m = jnp.mean(v, axis=0, keepdims=True)
        var = jnp.mean((v - m) ** 2, axis=0, keepdims=True)
        return (v - m) * jax.lax.rsqrt(var + 1e-5) * V(gname) + V(bename)

    def dot(a, w):                                 # bf16 MXU matmul, f32 accumulation
        return jnp.dot(a.astype(bf16), w, preferred_element_type=f32)

    def resblock(parts, px):
        # Linear over torch.cat(parts, dim=1): one fused fc3|fc1 dot per part, accumulated
        # (MRB-friendly on v7x); biases folded in once at the end.
        acc = dot(parts[0], Wm(f'{px}_w31_0'))
        for i in range(1, len(parts)):
            acc = acc + dot(parts[i], Wm(f'{px}_w31_{i}'))
        acc = acc + V(f'{px}_b31')                                 # [b3(128) | b1(64)]
        x_in = lrelu(acc[:, 0:N_NEUR])                             # fc3 shortcut (Fin != Fout)
        h = lrelu(bn(acc[:, N_NEUR:N_NEUR + RB_HID], f'{px}_g1', f'{px}_be1'))
        h = dot(h, Wm(f'{px}_w2')) + V(f'{px}_b2')
        h = bn(h, f'{px}_g2', f'{px}_be2')
        return lrelu(x_in + h)

    # ---- PointNet encoder (overlapped with the weight DMA) --------------------------------
    pts = verts_ref[...]                                           # (bs*npts, 3)
    w1 = Wp('pn1').astype(f32)                                     # (3, 64)
    h = (V('pn1_b') + pts[:, 0:1] * w1[0:1, :]                     # K=3 contraction done on the
         + pts[:, 1:2] * w1[1:2, :]                                # VPU as broadcast FMAs; no
         + pts[:, 2:3] * w1[2:3, :])                               # MXU round-trip
    h = jnp.maximum(h, 0.0)
    h = jnp.maximum(dot(h, Wp('pn2')) + V('pn2_b'), 0.0)           # (bs*npts, 128)
    h = dot(h, Wp('pn3')) + V('pn3_b')                             # (bs*npts, 256)
    # Per-batch max-pool kept in registers (no scratch round-trip).
    obj_f = jnp.concatenate(
        [jnp.max(h[b * npts:(b + 1) * npts, :], axis=0, keepdims=True) for b in range(bs)],
        axis=0)                                                    # (bs, GLOBALD)

    hand = hand_ref[...]                                           # (bs, 160), zero-padded
    eps = eps_ref[...]                                             # (bs, LAT)

    # fc_bn1, computed per concat part (BatchNorm1d is per-feature, so this is exact).
    x0_obj = bn(obj_f, 'bn1_g_obj', 'bn1_be_obj')
    x0_hand = bn(hand, 'bn1_g_hand', 'bn1_be_hand')                # padded lanes stay exactly 0

    wcopy.wait()                           # main weights are needed from here on

    # ---- encode ----------------------------------------------------------------------------
    x0 = [x0_obj, x0_hand]
    x1 = resblock(x0, 'e1')                                        # fc_rb1(X0)
    x2 = resblock(x0 + [x1], 'e2')                                 # fc_rb2(cat([X0, X]))
    he = dot(x2, Wm('enc_heads')) + V('muvar_b')                   # fused enc_mu | enc_var
    mu = he[:, 0:LAT]
    raw = he[:, LAT:2 * LAT]
    # F.softplus, stable form (no overflow).  TODO(synk): for raw << -16 this can still
    # underflow to 0 in f32; full tail precision would need log1p.
    std = jnp.maximum(raw, 0.0) + jnp.log(1.0 + jnp.exp(-jnp.abs(raw)))
    z = mu + std * eps                                             # Normal(mu, std).rsample()

    # ---- decode ----------------------------------------------------------------------------
    zc = [z, obj_f]
    y1 = resblock(zc, 'd1')                                        # dec_rb1(cat([Z, obj_f]))
    y2 = resblock(zc + [y1], 'd2')                                 # dec_rb2(cat([X0, X]))
    hd = dot(y2, Wm('dec_heads')) + V('posetrans_b')               # fused dec_pose | dec_trans
    pose = hd[:, 0:POSE_D]
    trans = hd[:, POSE_D:POSE_D + 3]

    # ---- single lane-dense (bs, 896) output slab, assembled in registers, one store --------
    def pad128(v):
        return jnp.concatenate([v, jnp.zeros((v.shape[0], 128 - v.shape[1]), f32)], axis=1)

    out_ref[...] = jnp.concatenate(
        [pad128(mu), pad128(std), pad128(z), pad128(pose), pad128(trans), obj_f], axis=1)


# ================================== plain-JAX glue =======================================

def crot2rotmat(pose):
    """6D continuous rotation rep -> rotation matrices (Gram-Schmidt), (B,96)->(B*16,3,3)."""
    x = pose.reshape(-1, 3, 2)
    a1, a2 = x[:, :, 0], x[:, :, 1]
    b1 = a1 / jnp.maximum(jnp.linalg.norm(a1, axis=1, keepdims=True), 1e-8)
    dot = jnp.sum(b1 * a2, axis=1, keepdims=True)
    b2u = a2 - dot * b1
    b2 = b2u / jnp.maximum(jnp.linalg.norm(b2u, axis=1, keepdims=True), 1e-8)
    b3 = jnp.cross(b1, b2)
    return jnp.stack([b1, b2, b3], axis=-1)


def rotmat2aa(R):
    """Rotation matrices (...,3,3) -> axis-angle (...,3)."""
    tr = R[..., 0, 0] + R[..., 1, 1] + R[..., 2, 2]
    angle = jnp.arccos(jnp.clip((tr - 1.0) * 0.5, -1.0, 1.0))[..., None]
    vec = jnp.stack([R[..., 2, 1] - R[..., 1, 2],
                     R[..., 0, 2] - R[..., 2, 0],
                     R[..., 1, 0] - R[..., 0, 1]], axis=-1)
    sin2 = jnp.linalg.norm(vec, axis=-1, keepdims=True)            # = 2*sin(angle)
    scale = jnp.where(sin2 > 1e-6, angle / jnp.maximum(sin2, 1e-12), 0.5)
    return vec * scale


def parms_decode(pose, trans):
    bs = trans.shape[0]
    pose_full = crot2rotmat(pose)                                  # (bs*16, 3, 3)
    fpose = rotmat2aa(pose_full.reshape(bs, 1, -1, 3, 3)).reshape(bs, -1)   # (bs, 48)
    return {
        'global_orient': fpose[:, :3],
        'hand_pose': fpose[:, 3:],
        'hand_fpose': fpose,
        'transl': trans,
        'fullpose': pose_full.reshape(bs, -1, 3, 3),
    }


# ==================================== wrapper ============================================

def build_forward(layout):
    w_off, pn_off, v_off = layout

    @jax.jit
    def forward(wbuf, pnbuf, vbuf, obj_sampled_verts, trans_rhand,
                global_orient_rhand_rotmat, pose_rhand_rotmat, eps):
        bs, npts, _ = obj_sampled_verts.shape
        # Hand parameters flattened + concatenated host-side, zero-padded 147 -> 160 features
        # so every in-kernel block and contraction extent is 16-aligned (padding is inert:
        # BN maps it to 0 and the corresponding weight rows are 0).
        hand = jnp.concatenate([global_orient_rhand_rotmat.reshape(bs, -1),
                                pose_rhand_rotmat.reshape(bs, -1),
                                trans_rhand], axis=1)                        # (bs, 147)
        hand = jnp.pad(hand, ((0, 0), (0, IN_HAND_PAD - IN_HAND)))           # (bs, 160)

        kernel = functools.partial(_cvae_fused_kernel, w_off=w_off, pn_off=pn_off,
                                   v_off=v_off, bs=bs, npts=npts)
        packed = pl.pallas_call(
            kernel,
            out_shape=jax.ShapeDtypeStruct((bs, OUT_W), jnp.float32),
            in_specs=[VMEM, VMEM, VMEM, VMEM, VMEM,
                      pl.BlockSpec(memory_space=pl.ANY)],          # main weights stay in HBM
            out_specs=VMEM,
            scratch_shapes=[pltpu.VMEM(wbuf.shape, jnp.bfloat16),  # async-copy destination
                            pltpu.SemaphoreType.DMA],
        )(obj_sampled_verts.reshape(bs * npts, 3), hand, eps, pnbuf, vbuf, wbuf)

        mu = packed[:, _O_MU:_O_MU + LAT]
        std = packed[:, _O_STD:_O_STD + LAT]
        z = packed[:, _O_Z:_O_Z + LAT]
        pose = packed[:, _O_POSE:_O_POSE + POSE_D]
        trans = packed[:, _O_TRANS:_O_TRANS + 3]
        obj_f = packed[:, _O_OBJ:_O_OBJ + GLOBALD]

        results = parms_decode(pose, trans)
        results['z'] = z
        results.update({'mean': mu, 'std': std, 'latent': z, 'obj_glob_feat': obj_f})
        return results

    return forward


# ===================================== main ==============================================

if __name__ == "__main__":
    key = jax.random.PRNGKey(0)
    kv, kt, kg, kr, ke = jax.random.split(key, 5)

    arrays, layout = init_params(seed=0)
    forward = build_forward(layout)

    obj_sampled_verts = jax.random.normal(kv, (B, NPTS, 3), jnp.float32)
    trans_rhand = jax.random.normal(kt, (B, 3), jnp.float32) * 0.1
    global_orient_rhand_rotmat = jax.random.normal(kg, (B, 1, 3, 3), jnp.float32)
    pose_rhand_rotmat = jax.random.normal(kr, (B, 15, 3, 3), jnp.float32)
    eps = jax.random.normal(ke, (B, LAT), jnp.float32)     # reparameterization noise (rsample)

    out = forward(arrays['wbuf'], arrays['pnbuf'], arrays['vbuf'],
                  obj_sampled_verts, trans_rhand,
                  global_orient_rhand_rotmat, pose_rhand_rotmat, eps)
    jax.tree_util.tree_map(jax.block_until_ready, out)

    assert out['mean'].shape == (B, LAT) and out['std'].shape == (B, LAT)
    assert out['latent'].shape == (B, LAT) and out['z'].shape == (B, LAT)
    assert out['hand_fpose'].shape == (B, 48) and out['fullpose'].shape == (B, 16, 3, 3)
    assert out['global_orient'].shape == (B, 3) and out['hand_pose'].shape == (B, 45)
    assert out['transl'].shape == (B, 3) and out['obj_glob_feat'].shape == (B, GLOBALD)
    assert bool(jnp.all(jnp.isfinite(out['hand_fpose']))) and bool(jnp.all(out['std'] > 0))
    print("KERNEL_OK")
</pallas_src>

<mosaic_0001>
module attributes {stable_mosaic.version = 11 : i64} {
  func.func @_cvae_fused_kernel(%arg0: memref<256x3xf32, #tpu.memory_space<vmem>>, %arg1: memref<2x160xf32, #tpu.memory_space<vmem>>, %arg2: memref<2x32xf32, #tpu.memory_space<vmem>>, %arg3: memref<208x256xbf16, #tpu.memory_space<vmem>>, %arg4: memref<40x256xf32, #tpu.memory_space<vmem>>, %arg5: memref<1920x256xbf16, #tpu.memory_space<any>>, %arg6: memref<2x896xf32, #tpu.memory_space<vmem>>, %arg7: memref<1920x256xbf16, #tpu.memory_space<vmem>>, %arg8: memref<!tpu.dma_semaphore, #tpu.memory_space<semaphore_mem>>) attributes {dimension_semantics = [], scalar_prefetch = 0 : i64, scratch_operands = 2 : i64, tpu.core_type = #tpu.core_type<tc>} {
    tpu.enqueue_dma source(%arg5 : memref<1920x256xbf16, #tpu.memory_space<any>>) target(%arg7 : memref<1920x256xbf16, #tpu.memory_space<vmem>>) target_semaphore(%arg8 : memref<!tpu.dma_semaphore, #tpu.memory_space<semaphore_mem>>)
    %c0 = arith.constant 0 : index
    %c0_0 = arith.constant 0 : index
    %0 = vector.load %arg0[%c0, %c0_0] : memref<256x3xf32, #tpu.memory_space<vmem>>, vector<256x3xf32>
    %c0_1 = arith.constant 0 : index
    %c0_2 = arith.constant 0 : index
    %1 = vector.load %arg3[%c0_1, %c0_2] : memref<208x256xbf16, #tpu.memory_space<vmem>>, vector<3x64xbf16>
    %2 = arith.extf %1 : vector<3x64xbf16> to vector<3x64xf32>
    %c0_3 = arith.constant 0 : index
    %c0_4 = arith.constant 0 : index
    %3 = vector.load %arg4[%c0_3, %c0_4] : memref<40x256xf32, #tpu.memory_space<vmem>>, vector<1x64xf32>
    %4 = vector.extract_strided_slice %0 {offsets = [0, 0], sizes = [256, 1], strides = [1, 1]} : vector<256x3xf32> to vector<256x1xf32>
    %5 = vector.extract_strided_slice %2 {offsets = [0, 0], sizes = [1, 64], strides = [1, 1]} : vector<3x64xf32> to vector<1x64xf32>
    %6 = vector.broadcast %4 : vector<256x1xf32> to vector<256x64xf32>
    %7 = vector.broadcast %5 : vector<1x64xf32> to vector<256x64xf32>
    %8 = arith.mulf %6, %7 : vector<256x64xf32>
    %9 = vector.broadcast %3 : vector<1x64xf32> to vector<256x64xf32>
    %10 = arith.addf %9, %8 : vector<256x64xf32>
    %11 = vector.extract_strided_slice %0 {offsets = [0, 1], sizes = [256, 1], strides = [1, 1]} : vector<256x3xf32> to vector<256x1xf32>
    %12 = vector.extract_strided_slice %2 {offsets = [1, 0], sizes = [1, 64], strides = [1, 1]} : vector<3x64xf32> to vector<1x64xf32>
    %13 = vector.broadcast %11 : vector<256x1xf32> to vector<256x64xf32>
    %14 = vector.broadcast %12 : vector<1x64xf32> to vector<256x64xf32>
    %15 = arith.mulf %13, %14 : vector<256x64xf32>
    %16 = arith.addf %10, %15 : vector<256x64xf32>
    %17 = vector.extract_strided_slice %0 {offsets = [0, 2], sizes = [256, 1], strides = [1, 1]} : vector<256x3xf32> to vector<256x1xf32>
    %18 = vector.extract_strided_slice %2 {offsets = [2, 0], sizes = [1, 64], strides = [1, 1]} : vector<3x64xf32> to vector<1x64xf32>
    %19 = vector.broadcast %17 : vector<256x1xf32> to vector<256x64xf32>
    %20 = vector.broadcast %18 : vector<1x64xf32> to vector<256x64xf32>
    %21 = arith.mulf %19, %20 : vector<256x64xf32>
    %22 = arith.addf %16, %21 : vector<256x64xf32>
    %cst = arith.constant 0.000000e+00 : f32
    %23 = vector.broadcast %cst : f32 to vector<256x64xf32>
    %24 = arith.maximumf %22, %23 : vector<256x64xf32>
    %c16 = arith.constant 16 : index
    %c0_5 = arith.constant 0 : index
    %25 = vector.load %arg3[%c16, %c0_5] : memref<208x256xbf16, #tpu.memory_space<vmem>>, vector<64x128xbf16>
    %26 = arith.truncf %24 : vector<256x64xf32> to vector<256x64xbf16>
    %cst_6 = arith.constant dense<0.000000e+00> : vector<256x128xf32>
    %27 = tpu.matmul %26, %25, %cst_6 {dimension_numbers = #tpu.dot_dimension_numbers<[1], [0], [0], [1], [0, 0, 1, 1], [], []>} : vector<256x64xbf16>, vector<64x128xbf16>, vector<256x128xf32> -> vector<256x128xf32>
    %c1 = arith.constant 1 : index
    %c0_7 = arith.constant 0 : index
    %28 = vector.load %arg4[%c1, %c0_7] : memref<40x256xf32, #tpu.memory_space<vmem>>, vector<1x128xf32>
    %29 = vector.broadcast %28 : vector<1x128xf32> to vector<256x128xf32>
    %30 = arith.addf %27, %29 : vector<256x128xf32>
    %cst_8 = arith.constant 0.000000e+00 : f32
    %31 = vector.broadcast %cst_8 : f32 to vector<256x128xf32>
    %32 = arith.maximumf %30, %31 : vector<256x128xf32>
    %c80 = arith.constant 80 : index
    %c0_9 = arith.constant 0 : index
    %33 = vector.load %arg3[%c80, %c0_9] : memref<208x256xbf16, #tpu.memory_space<vmem>>, vector<128x256xbf16>
    %34 = arith.truncf %32 : vector<256x128xf32> to vector<256x128xbf16>
    %cst_10 = arith.constant dense<0.000000e+00> : vector<256x256xf32>
    %35 = tpu.matmul %34, %33, %cst_10 {dimension_numbers = #tpu.dot_dimension_numbers<[1], [0], [0], [1], [0, 0, 1, 1], [], []>} : vector<256x128xbf16>, vector<128x256xbf16>, vector<256x256xf32> -> vector<256x256xf32>
    %c2 = arith.constant 2 : index
    %c0_11 = arith.constant 0 : index
    %36 = vector.load %arg4[%c2, %c0_11] : memref<40x256xf32, #tpu.memory_space<vmem>>, vector<1x256xf32>
    %37 = vector.broadcast %36 : vector<1x256xf32> to vector<256x256xf32>
    %38 = arith.addf %35, %37 : vector<256x256xf32>
    %39 = vector.extract_strided_slice %38 {offsets = [0, 0], sizes = [128, 256], strides = [1, 1]} : vector<256x256xf32> to vector<128x256xf32>
    %cst_12 = arith.constant dense<0xFF800000> : vector<256xf32>
    %40 = vector.multi_reduction <maximumf>, %39, %cst_12 [0] : vector<128x256xf32> to vector<256xf32>
    %41 = vector.shape_cast %40 : vector<256xf32> to vector<1x256xf32>
    %42 = vector.extract_strided_slice %38 {offsets = [128, 0], sizes = [128, 256], strides = [1, 1]} : vector<256x256xf32> to vector<128x256xf32>
    %cst_13 = arith.constant dense<0xFF800000> : vector<256xf32>
    %43 = vector.multi_reduction <maximumf>, %42, %cst_13 [0] : vector<128x256xf32> to vector<256xf32>
    %44 = vector.shape_cast %43 : vector<256xf32> to vector<1x256xf32>
    %45 = tpu.concatenate %41, %44 in 0 : vector<1x256xf32>, vector<1x256xf32> -> vector<2x256xf32>
    %c0_14 = arith.constant 0 : index
    %c0_15 = arith.constant 0 : index
    %46 = vector.load %arg1[%c0_14, %c0_15] : memref<2x160xf32, #tpu.memory_space<vmem>>, vector<2x160xf32>
    %c0_16 = arith.constant 0 : index
    %c0_17 = arith.constant 0 : index
    %47 = vector.load %arg2[%c0_16, %c0_17] : memref<2x32xf32, #tpu.memory_space<vmem>>, vector<2x32xf32>
    %cst_18 = arith.constant dense<0.000000e+00> : vector<256xf32>
    %48 = vector.multi_reduction <add>, %45, %cst_18 [0] : vector<2x256xf32> to vector<256xf32>
    %49 = vector.shape_cast %48 : vector<256xf32> to vector<1x256xf32>
    %cst_19 = arith.constant 2.000000e+00 : f32
    %50 = vector.broadcast %cst_19 : f32 to vector<1x256xf32>
    %51 = arith.divf %49, %50 : vector<1x256xf32>
    %52 = vector.broadcast %51 : vector<1x256xf32> to vector<2x256xf32>
    %53 = arith.subf %45, %52 : vector<2x256xf32>
    %54 = arith.mulf %53, %53 : vector<2x256xf32>
    %cst_20 = arith.constant dense<0.000000e+00> : vector<256xf32>
    %55 = vector.multi_reduction <add>, %54, %cst_20 [0] : vector<2x256xf32> to vector<256xf32>
    %56 = vector.shape_cast %55 : vector<256xf32> to vector<1x256xf32>
    %cst_21 = arith.constant 2.000000e+00 : f32
    %57 = vector.broadcast %cst_21 : f32 to vector<1x256xf32>
    %58 = arith.divf %56, %57 : vector<1x256xf32>
    %59 = vector.broadcast %51 : vector<1x256xf32> to vector<2x256xf32>
    %60 = arith.subf %45, %59 : vector<2x256xf32>
    %cst_22 = arith.constant 9.99999974E-6 : f32
    %61 = vector.broadcast %cst_22 : f32 to vector<1x256xf32>
    %62 = arith.addf %58, %61 : vector<1x256xf32>
    %63 = math.rsqrt %62 : vector<1x256xf32>
    %64 = vector.broadcast %63 : vector<1x256xf32> to vector<2x256xf32>
    %65 = arith.mulf %60, %64 : vector<2x256xf32>
    %c3 = arith.constant 3 : index
    %c0_23 = arith.constant 0 : index
    %66 = vector.load %arg4[%c3, %c0_23] : memref<40x256xf32, #tpu.memory_space<vmem>>, vector<1x256xf32>
    %67 = vector.broadcast %66 : vector<1x256xf32> to vector<2x256xf32>
    %68 = arith.mulf %65, %67 : vector<2x256xf32>
    %c4 = arith.constant 4 : index
    %c0_24 = arith.constant 0 : index
    %69 = vector.load %arg4[%c4, %c0_24] : memref<40x256xf32, #tpu.memory_space<vmem>>, vector<1x256xf32>
    %70 = vector.broadcast %69 : vector<1x256xf32> to vector<2x256xf32>
    %71 = arith.addf %68, %70 : vector<2x256xf32>
    %cst_25 = arith.constant dense<0.000000e+00> : vector<160xf32>
    %72 = vector.multi_reduction <add>, %46, %cst_25 [0] : vector<2x160xf32> to vector<160xf32>
    %73 = vector.shape_cast %72 : vector<160xf32> to vector<1x160xf32>
    %cst_26 = arith.constant 2.000000e+00 : f32
    %74 = vector.broadcast %cst_26 : f32 to vector<1x160xf32>
    %75 = arith.divf %73, %74 : vector<1x160xf32>
    %76 = vector.broadcast %75 : vector<1x160xf32> to vector<2x160xf32>
    %77 = arith.subf %46, %76 : vector<2x160xf32>
    %78 = arith.mulf %77, %77 : vector<2x160xf32>
    %cst_27 = arith.constant dense<0.000000e+00> : vector<160xf32>
    %79 = vector.multi_reduction <add>, %78, %cst_27 [0] : vector<2x160xf32> to vector<160xf32>
    %80 = vector.shape_cast %79 : vector<160xf32> to vector<1x160xf32>
    %cst_28 = arith.constant 2.000000e+00 : f32
    %81 = vector.broadcast %cst_28 : f32 to vector<1x160xf32>
    %82 = arith.divf %80, %81 : vector<1x160xf32>
    %83 = vector.broadcast %75 : vector<1x160xf32> to vector<2x160xf32>
    %84 = arith.subf %46, %83 : vector<2x160xf32>
    %cst_29 = arith.constant 9.99999974E-6 : f32
    %85 = vector.broadcast %cst_29 : f32 to vector<1x160xf32>
    %86 = arith.addf %82, %85 : vector<1x160xf32>
    %87 = math.rsqrt %86 : vector<1x160xf32>
    %88 = vector.broadcast %87 : vector<1x160xf32> to vector<2x160xf32>
    %89 = arith.mulf %84, %88 : vector<2x160xf32>
    %c5 = arith.constant 5 : index
    %c0_30 = arith.constant 0 : index
    %90 = vector.load %arg4[%c5, %c0_30] : memref<40x256xf32, #tpu.memory_space<vmem>>, vector<1x160xf32>
    %91 = vector.broadcast %90 : vector<1x160xf32> to vector<2x160xf32>
    %92 = arith.mulf %89, %91 : vector<2x160xf32>
    %c6 = arith.constant 6 : index
    %c0_31 = arith.constant 0 : index
    %93 = vector.load %arg4[%c6, %c0_31] : memref<40x256xf32, #tpu.memory_space<vmem>>, vector<1x160xf32>
    %94 = vector.broadcast %93 : vector<1x160xf32> to vector<2x160xf32>
    %95 = arith.addf %92, %94 : vector<2x160xf32>
    tpu.wait_dma2 semaphore(%arg8 : memref<!tpu.dma_semaphore, #tpu.memory_space<semaphore_mem>>) src(%arg5 : memref<1920x256xbf16, #tpu.memory_space<any>>) dst(%arg7 : memref<1920x256xbf16, #tpu.memory_space<vmem>>)
    %c0_32 = arith.constant 0 : index
    %c0_33 = arith.constant 0 : index
    %96 = vector.load %arg7[%c0_32, %c0_33] : memref<1920x256xbf16, #tpu.memory_space<vmem>>, vector<256x192xbf16>
    %97 = arith.truncf %71 : vector<2x256xf32> to vector<2x256xbf16>
    %cst_34 = arith.constant dense<0.000000e+00> : vector<2x192xf32>
    %98 = tpu.matmul %97, %96, %cst_34 {dimension_numbers = #tpu.dot_dimension_numbers<[1], [0], [0], [1], [0, 0, 1, 1], [], []>} : vector<2x256xbf16>, vector<256x192xbf16>, vector<2x192xf32> -> vector<2x192xf32>
    %c256 = arith.constant 256 : index
    %c0_35 = arith.constant 0 : index
    %99 = vector.load %arg7[%c256, %c0_35] : memref<1920x256xbf16, #tpu.memory_space<vmem>>, vector<160x192xbf16>
    %100 = arith.truncf %95 : vector<2x160xf32> to vector<2x160xbf16>
    %cst_36 = arith.constant dense<0.000000e+00> : vector<2x192xf32>
    %101 = tpu.matmul %100, %99, %cst_36 {dimension_numbers = #tpu.dot_dimension_numbers<[1], [0], [0], [1], [0, 0, 1, 1], [], []>} : vector<2x160xbf16>, vector<160x192xbf16>, vector<2x192xf32> -> vector<2x192xf32>
    %102 = arith.addf %98, %101 : vector<2x192xf32>
    %c7 = arith.constant 7 : index
    %c0_37 = arith.constant 0 : index
    %103 = vector.load %arg4[%c7, %c0_37] : memref<40x256xf32, #tpu.memory_space<vmem>>, vector<1x192xf32>
    %104 = vector.broadcast %103 : vector<1x192xf32> to vector<2x192xf32>
    %105 = arith.addf %102, %104 : vector<2x192xf32>
    %106 = vector.extract_strided_slice %105 {offsets = [0, 0], sizes = [2, 128], strides = [1, 1]} : vector<2x192xf32> to vector<2x128xf32>
    %cst_38 = arith.constant 0.000000e+00 : f32
    %107 = vector.broadcast %cst_38 : f32 to vector<2x128xf32>
    %108 = arith.cmpf oge, %106, %107 : vector<2x128xf32>
    %cst_39 = arith.constant 2.000000e-01 : f32
    %109 = vector.broadcast %cst_39 : f32 to vector<2x128xf32>
    %110 = arith.mulf %109, %106 : vector<2x128xf32>
    %111 = arith.select %108, %106, %110 : vector<2x128xi1>, vector<2x128xf32>
    %112 = vector.extract_strided_slice %105 {offsets = [0, 128], sizes = [2, 64], strides = [1, 1]} : vector<2x192xf32> to vector<2x64xf32>
    %cst_40 = arith.constant dense<0.000000e+00> : vector<64xf32>
    %113 = vector.multi_reduction <add>, %112, %cst_40 [0] : vector<2x64xf32> to vector<64xf32>
    %114 = vector.shape_cast %113 : vector<64xf32> to vector<1x64xf32>
    %cst_41 = arith.constant 2.000000e+00 : f32
    %115 = vector.broadcast %cst_41 : f32 to vector<1x64xf32>
    %116 = arith.divf %114, %115 : vector<1x64xf32>
    %117 = vector.broadcast %116 : vector<1x64xf32> to vector<2x64xf32>
    %118 = arith.subf %112, %117 : vector<2x64xf32>
    %119 = arith.mulf %118, %118 : vector<2x64xf32>
    %cst_42 = arith.constant dense<0.000000e+00> : vector<64xf32>
    %120 = vector.multi_reduction <add>, %119, %cst_42 [0] : vector<2x64xf32> to vector<64xf32>
    %121 = vector.shape_cast %120 : vector<64xf32> to vector<1x64xf32>
    %cst_43 = arith.constant 2.000000e+00 : f32
    %122 = vector.broadcast %cst_43 : f32 to vector<1x64xf32>
    %123 = arith.divf %121, %122 : vector<1x64xf32>
    %124 = vector.broadcast %116 : vector<1x64xf32> to vector<2x64xf32>
    %125 = arith.subf %112, %124 : vector<2x64xf32>
    %cst_44 = arith.constant 9.99999974E-6 : f32
    %126 = vector.broadcast %cst_44 : f32 to vector<1x64xf32>
    %127 = arith.addf %123, %126 : vector<1x64xf32>
    %128 = math.rsqrt %127 : vector<1x64xf32>
    %129 = vector.broadcast %128 : vector<1x64xf32> to vector<2x64xf32>
    %130 = arith.mulf %125, %129 : vector<2x64xf32>
    %c8 = arith.constant 8 : index
    %c0_45 = arith.constant 0 : index
    %131 = vector.load %arg4[%c8, %c0_45] : memref<40x256xf32, #tpu.memory_space<vmem>>, vector<1x64xf32>
    %132 = vector.broadcast %131 : vector<1x64xf32> to vector<2x64xf32>
    %133 = arith.mulf %130, %132 : vector<2x64xf32>
    %c9 = arith.constant 9 : index
    %c0_46 = arith.constant 0 : index
    %134 = vector.load %arg4[%c9, %c0_46] : memref<40x256xf32, #tpu.memory_space<vmem>>, vector<1x64xf32>
    %135 = vector.broadcast %134 : vector<1x64xf32> to vector<2x64xf32>
    %136 = arith.addf %133, %135 : vector<2x64xf32>
    %cst_47 = arith.constant 0.000000e+00 : f32
    %137 = vector.broadcast %cst_47 : f32 to vector<2x64xf32>
    %138 = arith.cmpf oge, %136, %137 : vector<2x64xf32>
    %cst_48 = arith.constant 2.000000e-01 : f32
    %139 = vector.broadcast %cst_48 : f32 to vector<2x64xf32>
    %140 = arith.mulf %139, %136 : vector<2x64xf32>
    %141 = arith.select %138, %136, %140 : vector<2x64xi1>, vector<2x64xf32>
    %c960 = arith.constant 960 : index
    %c0_49 = arith.constant 0 : index
    %142 = vector.load %arg7[%c960, %c0_49] : memref<1920x256xbf16, #tpu.memory_space<vmem>>, vector<64x128xbf16>
    %143 = arith.truncf %141 : vector<2x64xf32> to vector<2x64xbf16>
    %cst_50 = arith.constant dense<0.000000e+00> : vector<2x128xf32>
    %144 = tpu.matmul %143, %142, %cst_50 {dimension_numbers = #tpu.dot_dimension_numbers<[1], [0], [0], [1], [0, 0, 1, 1], [], []>} : vector<2x64xbf16>, vector<64x128xbf16>, vector<2x128xf32> -> vector<2x128xf32>
    %c10 = arith.constant 10 : index
    %c0_51 = arith.constant 0 : index
    %145 = vector.load %arg4[%c10, %c0_51] : memref<40x256xf32, #tpu.memory_space<vmem>>, vector<1x128xf32>
    %146 = vector.broadcast %145 : vector<1x128xf32> to vector<2x128xf32>
    %147 = arith.addf %144, %146 : vector<2x128xf32>
    %cst_52 = arith.constant dense<0.000000e+00> : vector<128xf32>
    %148 = vector.multi_reduction <add>, %147, %cst_52 [0] : vector<2x128xf32> to vector<128xf32>
    %149 = vector.shape_cast %148 : vector<128xf32> to vector<1x128xf32>
    %cst_53 = arith.constant 2.000000e+00 : f32
    %150 = vector.broadcast %cst_53 : f32 to vector<1x128xf32>
    %151 = arith.divf %149, %150 : vector<1x128xf32>
    %152 = vector.broadcast %151 : vector<1x128xf32> to vector<2x128xf32>
    %153 = arith.subf %147, %152 : vector<2x128xf32>
    %154 = arith.mulf %153, %153 : vector<2x128xf32>
    %cst_54 = arith.constant dense<0.000000e+00> : vector<128xf32>
    %155 = vector.multi_reduction <add>, %154, %cst_54 [0] : vector<2x128xf32> to vector<128xf32>
    %156 = vector.shape_cast %155 : vector<128xf32> to vector<1x128xf32>
    %cst_55 = arith.constant 2.000000e+00 : f32
    %157 = vector.broadcast %cst_55 : f32 to vector<1x128xf32>
    %158 = arith.divf %156, %157 : vector<1x128xf32>
    %159 = vector.broadcast %151 : vector<1x128xf32> to vector<2x128xf32>
    %160 = arith.subf %147, %159 : vector<2x128xf32>
    %cst_56 = arith.constant 9.99999974E-6 : f32
    %161 = vector.broadcast %cst_56 : f32 to vector<1x128xf32>
    %162 = arith.addf %158, %161 : vector<1x128xf32>
    %163 = math.rsqrt %162 : vector<1x128xf32>
    %164 = vector.broadcast %163 : vector<1x128xf32> to vector<2x128xf32>
    %165 = arith.mulf %160, %164 : vector<2x128xf32>
    %c11 = arith.constant 11 : index
    %c0_57 = arith.constant 0 : index
    %166 = vector.load %arg4[%c11, %c0_57] : memref<40x256xf32, #tpu.memory_space<vmem>>, vector<1x128xf32>
    %167 = vector.broadcast %166 : vector<1x128xf32> to vector<2x128xf32>
    %168 = arith.mulf %165, %167 : vector<2x128xf32>
    %c12 = arith.constant 12 : index
    %c0_58 = arith.constant 0 : index
    %169 = vector.load %arg4[%c12, %c0_58] : memref<40x256xf32, #tpu.memory_space<vmem>>, vector<1x128xf32>
    %170 = vector.broadcast %169 : vector<1x128xf32> to vector<2x128xf32>
    %171 = arith.addf %168, %170 : vector<2x128xf32>
    %172 = arith.addf %111, %171 : vector<2x128xf32>
    %cst_59 = arith.constant 0.000000e+00 : f32
    %173 = vector.broadcast %cst_59 : f32 to vector<2x128xf32>
    %174 = arith.cmpf oge, %172, %173 : vector<2x128xf32>
    %cst_60 = arith.constant 2.000000e-01 : f32
    %175 = vector.broadcast %cst_60 : f32 to vector<2x128xf32>
    %176 = arith.mulf %175, %172 : vector<2x128xf32>
    %177 = arith.select %174, %172, %176 : vector<2x128xi1>, vector<2x128xf32>
    %c416 = arith.constant 416 : index
    %c0_61 = arith.constant 0 : index
    %178 = vector.load %arg7[%c416, %c0_61] : memref<1920x256xbf16, #tpu.memory_space<vmem>>, vector<256x192xbf16>
    %179 = arith.truncf %71 : vector<2x256xf32> to vector<2x256xbf16>
    %cst_62 = arith.constant dense<0.000000e+00> : vector<2x192xf32>
    %180 = tpu.matmul %179, %178, %cst_62 {dimension_numbers = #tpu.dot_dimension_numbers<[1], [0], [0], [1], [0, 0, 1, 1], [], []>} : vector<2x256xbf16>, vector<256x192xbf16>, vector<2x192xf32> -> vector<2x192xf32>
    %c672 = arith.constant 672 : index
    %c0_63 = arith.constant 0 : index
    %181 = vector.load %arg7[%c672, %c0_63] : memref<1920x256xbf16, #tpu.memory_space<vmem>>, vector<160x192xbf16>
    %182 = arith.truncf %95 : vector<2x160xf32> to vector<2x160xbf16>
    %cst_64 = arith.constant dense<0.000000e+00> : vector<2x192xf32>
    %183 = tpu.matmul %182, %181, %cst_64 {dimension_numbers = #tpu.dot_dimension_numbers<[1], [0], [0], [1], [0, 0, 1, 1], [], []>} : vector<2x160xbf16>, vector<160x192xbf16>, vector<2x192xf32> -> vector<2x192xf32>
    %184 = arith.addf %180, %183 : vector<2x192xf32>
    %c832 = arith.constant 832 : index
    %c0_65 = arith.constant 0 : index
    %185 = vector.load %arg7[%c832, %c0_65] : memref<1920x256xbf16, #tpu.memory_space<vmem>>, vector<128x192xbf16>
    %186 = arith.truncf %177 : vector<2x128xf32> to vector<2x128xbf16>
    %cst_66 = arith.constant dense<0.000000e+00> : vector<2x192xf32>
    %187 = tpu.matmul %186, %185, %cst_66 {dimension_numbers = #tpu.dot_dimension_numbers<[1], [0], [0], [1], [0, 0, 1, 1], [], []>} : vector<2x128xbf16>, vector<128x192xbf16>, vector<2x192xf32> -> vector<2x192xf32>
    %188 = arith.addf %184, %187 : vector<2x192xf32>
    %c13 = arith.constant 13 : index
    %c0_67 = arith.constant 0 : index
    %189 = vector.load %arg4[%c13, %c0_67] : memref<40x256xf32, #tpu.memory_space<vmem>>, vector<1x192xf32>
    %190 = vector.broadcast %189 : vector<1x192xf32> to vector<2x192xf32>
    %191 = arith.addf %188, %190 : vector<2x192xf32>
    %192 = vector.extract_strided_slice %191 {offsets = [0, 0], sizes = [2, 128], strides = [1, 1]} : vector<2x192xf32> to vector<2x128xf32>
    %cst_68 = arith.constant 0.000000e+00 : f32
    %193 = vector.broadcast %cst_68 : f32 to vector<2x128xf32>
    %194 = arith.cmpf oge, %192, %193 : vector<2x128xf32>
    %cst_69 = arith.constant 2.000000e-01 : f32
    %195 = vector.broadcast %cst_69 : f32 to vector<2x128xf32>
    %196 = arith.mulf %195, %192 : vector<2x128xf32>
    %197 = arith.select %194, %192, %196 : vector<2x128xi1>, vector<2x128xf32>
    %198 = vector.extract_strided_slice %191 {offsets = [0, 128], sizes = [2, 64], strides = [1, 1]} : vector<2x192xf32> to vector<2x64xf32>
    %cst_70 = arith.constant dense<0.000000e+00> : vector<64xf32>
    %199 = vector.multi_reduction <add>, %198, %cst_70 [0] : vector<2x64xf32> to vector<64xf32>
    %200 = vector.shape_cast %199 : vector<64xf32> to vector<1x64xf32>
    %cst_71 = arith.constant 2.000000e+00 : f32
    %201 = vector.broadcast %cst_71 : f32 to vector<1x64xf32>
    %202 = arith.divf %200, %201 : vector<1x64xf32>
    %203 = vector.broadcast %202 : vector<1x64xf32> to vector<2x64xf32>
    %204 = arith.subf %198, %203 : vector<2x64xf32>
    %205 = arith.mulf %204, %204 : vector<2x64xf32>
    %cst_72 = arith.constant dense<0.000000e+00> : vector<64xf32>
    %206 = vector.multi_reduction <add>, %205, %cst_72 [0] : vector<2x64xf32> to vector<64xf32>
    %207 = vector.shape_cast %206 : vector<64xf32> to vector<1x64xf32>
    %cst_73 = arith.constant 2.000000e+00 : f32
    %208 = vector.broadcast %cst_73 : f32 to vector<1x64xf32>
    %209 = arith.divf %207, %208 : vector<1x64xf32>
    %210 = vector.broadcast %202 : vector<1x64xf32> to vector<2x64xf32>
    %211 = arith.subf %198, %210 : vector<2x64xf32>
    %cst_74 = arith.constant 9.99999974E-6 : f32
    %212 = vector.broadcast %cst_74 : f32 to vector<1x64xf32>
    %213 = arith.addf %209, %212 : vector<1x64xf32>
    %214 = math.rsqrt %213 : vector<1x64xf32>
    %215 = vector.broadcast %214 : vector<1x64xf32> to vector<2x64xf32>
    %216 = arith.mulf %211, %215 : vector<2x64xf32>
    %c14 = arith.constant 14 : index
    %c0_75 = arith.constant 0 : index
    %217 = vector.load %arg4[%c14, %c0_75] : memref<40x256xf32, #tpu.memory_space<vmem>>, vector<1x64xf32>
    %218 = vector.broadcast %217 : vector<1x64xf32> to vector<2x64xf32>
    %219 = arith.mulf %216, %218 : vector<2x64xf32>
    %c15 = arith.constant 15 : index
    %c0_76 = arith.constant 0 : index
    %220 = vector.load %arg4[%c15, %c0_76] : memref<40x256xf32, #tpu.memory_space<vmem>>, vector<1x64xf32>
    %221 = vector.broadcast %220 : vector<1x64xf32> to vector<2x64xf32>
    %222 = arith.addf %219, %221 : vector<2x64xf32>
    %cst_77 = arith.constant 0.000000e+00 : f32
    %223 = vector.broadcast %cst_77 : f32 to vector<2x64xf32>
    %224 = arith.cmpf oge, %222, %223 : vector<2x64xf32>
    %cst_78 = arith.constant 2.000000e-01 : f32
    %225 = vector.broadcast %cst_78 : f32 to vector<2x64xf32>
    %226 = arith.mulf %225, %222 : vector<2x64xf32>
    %227 = arith.select %224, %222, %226 : vector<2x64xi1>, vector<2x64xf32>
    %c960_79 = arith.constant 960 : index
    %c128 = arith.constant 128 : index
    %228 = vector.load %arg7[%c960_79, %c128] : memref<1920x256xbf16, #tpu.memory_space<vmem>>, vector<64x128xbf16>
    %229 = arith.truncf %227 : vector<2x64xf32> to vector<2x64xbf16>
    %cst_80 = arith.constant dense<0.000000e+00> : vector<2x128xf32>
    %230 = tpu.matmul %229, %228, %cst_80 {dimension_numbers = #tpu.dot_dimension_numbers<[1], [0], [0], [1], [0, 0, 1, 1], [], []>} : vector<2x64xbf16>, vector<64x128xbf16>, vector<2x128xf32> -> vector<2x128xf32>
    %c16_81 = arith.constant 16 : index
    %c0_82 = arith.constant 0 : index
    %231 = vector.load %arg4[%c16_81, %c0_82] : memref<40x256xf32, #tpu.memory_space<vmem>>, vector<1x128xf32>
    %232 = vector.broadcast %231 : vector<1x128xf32> to vector<2x128xf32>
    %233 = arith.addf %230, %232 : vector<2x128xf32>
    %cst_83 = arith.constant dense<0.000000e+00> : vector<128xf32>
    %234 = vector.multi_reduction <add>, %233, %cst_83 [0] : vector<2x128xf32> to vector<128xf32>
    %235 = vector.shape_cast %234 : vector<128xf32> to vector<1x128xf32>
    %cst_84 = arith.constant 2.000000e+00 : f32
    %236 = vector.broadcast %cst_84 : f32 to vector<1x128xf32>
    %237 = arith.divf %235, %236 : vector<1x128xf32>
    %238 = vector.broadcast %237 : vector<1x128xf32> to vector<2x128xf32>
    %239 = arith.subf %233, %238 : vector<2x128xf32>
    %240 = arith.mulf %239, %239 : vector<2x128xf32>
    %cst_85 = arith.constant dense<0.000000e+00> : vector<128xf32>
    %241 = vector.multi_reduction <add>, %240, %cst_85 [0] : vector<2x128xf32> to vector<128xf32>
    %242 = vector.shape_cast %241 : vector<128xf32> to vector<1x128xf32>
    %cst_86 = arith.constant 2.000000e+00 : f32
    %243 = vector.broadcast %cst_86 : f32 to vector<1x128xf32>
    %244 = arith.divf %242, %243 : vector<1x128xf32>
    %245 = vector.broadcast %237 : vector<1x128xf32> to vector<2x128xf32>
    %246 = arith.subf %233, %245 : vector<2x128xf32>
    %cst_87 = arith.constant 9.99999974E-6 : f32
    %247 = vector.broadcast %cst_87 : f32 to vector<1x128xf32>
    %248 = arith.addf %244, %247 : vector<1x128xf32>
    %249 = math.rsqrt %248 : vector<1x128xf32>
    %250 = vector.broadcast %249 : vector<1x128xf32> to vector<2x128xf32>
    %251 = arith.mulf %246, %250 : vector<2x128xf32>
    %c17 = arith.constant 17 : index
    %c0_88 = arith.constant 0 : index
    %252 = vector.load %arg4[%c17, %c0_88] : memref<40x256xf32, #tpu.memory_space<vmem>>, vector<1x128xf32>
    %253 = vector.broadcast %252 : vector<1x128xf32> to vector<2x128xf32>
    %254 = arith.mulf %251, %253 : vector<2x128xf32>
    %c18 = arith.constant 18 : index
    %c0_89 = arith.constant 0 : index
    %255 = vector.load %arg4[%c18, %c0_89] : memref<40x256xf32, #tpu.memory_space<vmem>>, vector<1x128xf32>
    %256 = vector.broadcast %255 : vector<1x128xf32> to vector<2x128xf32>
    %257 = arith.addf %254, %256 : vector<2x128xf32>
    %258 = arith.addf %197, %257 : vector<2x128xf32>
    %cst_90 = arith.constant 0.000000e+00 : f32
    %259 = vector.broadcast %cst_90 : f32 to vector<2x128xf32>
    %260 = arith.cmpf oge, %258, %259 : vector<2x128xf32>
    %cst_91 = arith.constant 2.000000e-01 : f32
    %261 = vector.broadcast %cst_91 : f32 to vector<2x128xf32>
    %262 = arith.mulf %261, %258 : vector<2x128xf32>
    %263 = arith.select %260, %258, %262 : vector<2x128xi1>, vector<2x128xf32>
    %c1792 = arith.constant 1792 : index
    %c0_92 = arith.constant 0 : index
    %264 = vector.load %arg7[%c1792, %c0_92] : memref<1920x256xbf16, #tpu.memory_space<vmem>>, vector<128x64xbf16>
    %265 = arith.truncf %263 : vector<2x128xf32> to vector<2x128xbf16>
    %cst_93 = arith.constant dense<0.000000e+00> : vector<2x64xf32>
    %266 = tpu.matmul %265, %264, %cst_93 {dimension_numbers = #tpu.dot_dimension_numbers<[1], [0], [0], [1], [0, 0, 1, 1], [], []>} : vector<2x128xbf16>, vector<128x64xbf16>, vector<2x64xf32> -> vector<2x64xf32>
    %c31 = arith.constant 31 : index
    %c0_94 = arith.constant 0 : index
    %267 = vector.load %arg4[%c31, %c0_94] : memref<40x256xf32, #tpu.memory_space<vmem>>, vector<1x64xf32>
    %268 = vector.broadcast %267 : vector<1x64xf32> to vector<2x64xf32>
    %269 = arith.addf %266, %268 : vector<2x64xf32>
    %270 = vector.extract_strided_slice %269 {offsets = [0, 0], sizes = [2, 32], strides = [1, 1]} : vector<2x64xf32> to vector<2x32xf32>
    %271 = vector.extract_strided_slice %269 {offsets = [0, 32], sizes = [2, 32], strides = [1, 1]} : vector<2x64xf32> to vector<2x32xf32>
    %cst_95 = arith.constant 0.000000e+00 : f32
    %272 = vector.broadcast %cst_95 : f32 to vector<2x32xf32>
    %273 = arith.maximumf %271, %272 : vector<2x32xf32>
    %274 = math.absf %271 : vector<2x32xf32>
    %cst_96 = arith.constant 0.000000e+00 : f32
    %275 = vector.broadcast %cst_96 : f32 to vector<2x32xf32>
    %276 = arith.subf %275, %274 : vector<2x32xf32>
    %277 = math.exp %276 : vector<2x32xf32>
    %cst_97 = arith.constant 1.000000e+00 : f32
    %278 = vector.broadcast %cst_97 : f32 to vector<2x32xf32>
    %279 = arith.addf %278, %277 : vector<2x32xf32>
    %280 = math.log %279 : vector<2x32xf32>
    %281 = arith.addf %273, %280 : vector<2x32xf32>
    %282 = arith.mulf %281, %47 : vector<2x32xf32>
    %283 = arith.addf %270, %282 : vector<2x32xf32>
    %c1024 = arith.constant 1024 : index
    %c0_98 = arith.constant 0 : index
    %284 = vector.load %arg7[%c1024, %c0_98] : memref<1920x256xbf16, #tpu.memory_space<vmem>>, vector<32x192xbf16>
    %285 = arith.truncf %283 : vector<2x32xf32> to vector<2x32xbf16>
    %cst_99 = arith.constant dense<0.000000e+00> : vector<2x192xf32>
    %286 = tpu.matmul %285, %284, %cst_99 {dimension_numbers = #tpu.dot_dimension_numbers<[1], [0], [0], [1], [0, 0, 1, 1], [], []>} : vector<2x32xbf16>, vector<32x192xbf16>, vector<2x192xf32> -> vector<2x192xf32>
    %c1056 = arith.constant 1056 : index
    %c0_100 = arith.constant 0 : index
    %287 = vector.load %arg7[%c1056, %c0_100] : memref<1920x256xbf16, #tpu.memory_space<vmem>>, vector<256x192xbf16>
    %288 = arith.truncf %45 : vector<2x256xf32> to vector<2x256xbf16>
    %cst_101 = arith.constant dense<0.000000e+00> : vector<2x192xf32>
    %289 = tpu.matmul %288, %287, %cst_101 {dimension_numbers = #tpu.dot_dimension_numbers<[1], [0], [0], [1], [0, 0, 1, 1], [], []>} : vector<2x256xbf16>, vector<256x192xbf16>, vector<2x192xf32> -> vector<2x192xf32>
    %290 = arith.addf %286, %289 : vector<2x192xf32>
    %c19 = arith.constant 19 : index
    %c0_102 = arith.constant 0 : index
    %291 = vector.load %arg4[%c19, %c0_102] : memref<40x256xf32, #tpu.memory_space<vmem>>, vector<1x192xf32>
    %292 = vector.broadcast %291 : vector<1x192xf32> to vector<2x192xf32>
    %293 = arith.addf %290, %292 : vector<2x192xf32>
    %294 = vector.extract_strided_slice %293 {offsets = [0, 0], sizes = [2, 128], strides = [1, 1]} : vector<2x192xf32> to vector<2x128xf32>
    %cst_103 = arith.constant 0.000000e+00 : f32
    %295 = vector.broadcast %cst_103 : f32 to vector<2x128xf32>
    %296 = arith.cmpf oge, %294, %295 : vector<2x128xf32>
    %cst_104 = arith.constant 2.000000e-01 : f32
    %297 = vector.broadcast %cst_104 : f32 to vector<2x128xf32>
    %298 = arith.mulf %297, %294 : vector<2x128xf32>
    %299 = arith.select %296, %294, %298 : vector<2x128xi1>, vector<2x128xf32>
    %300 = vector.extract_strided_slice %293 {offsets = [0, 128], sizes = [2, 64], strides = [1, 1]} : vector<2x192xf32> to vector<2x64xf32>
    %cst_105 = arith.constant dense<0.000000e+00> : vector<64xf32>
    %301 = vector.multi_reduction <add>, %300, %cst_105 [0] : vector<2x64xf32> to vector<64xf32>
    %302 = vector.shape_cast %301 : vector<64xf32> to vector<1x64xf32>
    %cst_106 = arith.constant 2.000000e+00 : f32
    %303 = vector.broadcast %cst_106 : f32 to vector<1x64xf32>
    %304 = arith.divf %302, %303 : vector<1x64xf32>
    %305 = vector.broadcast %304 : vector<1x64xf32> to vector<2x64xf32>
    %306 = arith.subf %300, %305 : vector<2x64xf32>
    %307 = arith.mulf %306, %306 : vector<2x64xf32>
    %cst_107 = arith.constant dense<0.000000e+00> : vector<64xf32>
    %308 = vector.multi_reduction <add>, %307, %cst_107 [0] : vector<2x64xf32> to vector<64xf32>
    %309 = vector.shape_cast %308 : vector<64xf32> to vector<1x64xf32>
    %cst_108 = arith.constant 2.000000e+00 : f32
    %310 = vector.broadcast %cst_108 : f32 to vector<1x64xf32>
    %311 = arith.divf %309, %310 : vector<1x64xf32>
    %312 = vector.broadcast %304 : vector<1x64xf32> to vector<2x64xf32>
    %313 = arith.subf %300, %312 : vector<2x64xf32>
    %cst_109 = arith.constant 9.99999974E-6 : f32
    %314 = vector.broadcast %cst_109 : f32 to vector<1x64xf32>
    %315 = arith.addf %311, %314 : vector<1x64xf32>
    %316 = math.rsqrt %315 : vector<1x64xf32>
    %317 = vector.broadcast %316 : vector<1x64xf32> to vector<2x64xf32>
    %318 = arith.mulf %313, %317 : vector<2x64xf32>
    %c20 = arith.constant 20 : index
    %c0_110 = arith.constant 0 : index
    %319 = vector.load %arg4[%c20, %c0_110] : memref<40x256xf32, #tpu.memory_space<vmem>>, vector<1x64xf32>
    %320 = vector.broadcast %319 : vector<1x64xf32> to vector<2x64xf32>
    %321 = arith.mulf %318, %320 : vector<2x64xf32>
    %c21 = arith.constant 21 : index
    %c0_111 = arith.constant 0 : index
    %322 = vector.load %arg4[%c21, %c0_111] : memref<40x256xf32, #tpu.memory_space<vmem>>, vector<1x64xf32>
    %323 = vector.broadcast %322 : vector<1x64xf32> to vector<2x64xf32>
    %324 = arith.addf %321, %323 : vector<2x64xf32>
    %cst_112 = arith.constant 0.000000e+00 : f32
    %325 = vector.broadcast %cst_112 : f32 to vector<2x64xf32>
    %326 = arith.cmpf oge, %324, %325 : vector<2x64xf32>
    %cst_113 = arith.constant 2.000000e-01 : f32
    %327 = vector.broadcast %cst_113 : f32 to vector<2x64xf32>
    %328 = arith.mulf %327, %324 : vector<2x64xf32>
    %329 = arith.select %326, %324, %328 : vector<2x64xi1>, vector<2x64xf32>
    %c1728 = arith.constant 1728 : index
    %c0_114 = arith.constant 0 : index
    %330 = vector.load %arg7[%c1728, %c0_114] : memref<1920x256xbf16, #tpu.memory_space<vmem>>, vector<64x128xbf16>
    %331 = arith.truncf %329 : vector<2x64xf32> to vector<2x64xbf16>
    %cst_115 = arith.constant dense<0.000000e+00> : vector<2x128xf32>
    %332 = tpu.matmul %331, %330, %cst_115 {dimension_numbers = #tpu.dot_dimension_numbers<[1], [0], [0], [1], [0, 0, 1, 1], [], []>} : vector<2x64xbf16>, vector<64x128xbf16>, vector<2x128xf32> -> vector<2x128xf32>
    %c22 = arith.constant 22 : index
    %c0_116 = arith.constant 0 : index
    %333 = vector.load %arg4[%c22, %c0_116] : memref<40x256xf32, #tpu.memory_space<vmem>>, vector<1x128xf32>
    %334 = vector.broadcast %333 : vector<1x128xf32> to vector<2x128xf32>
    %335 = arith.addf %332, %334 : vector<2x128xf32>
    %cst_117 = arith.constant dense<0.000000e+00> : vector<128xf32>
    %336 = vector.multi_reduction <add>, %335, %cst_117 [0] : vector<2x128xf32> to vector<128xf32>
    %337 = vector.shape_cast %336 : vector<128xf32> to vector<1x128xf32>
    %cst_118 = arith.constant 2.000000e+00 : f32
    %338 = vector.broadcast %cst_118 : f32 to vector<1x128xf32>
    %339 = arith.divf %337, %338 : vector<1x128xf32>
    %340 = vector.broadcast %339 : vector<1x128xf32> to vector<2x128xf32>
    %341 = arith.subf %335, %340 : vector<2x128xf32>
    %342 = arith.mulf %341, %341 : vector<2x128xf32>
    %cst_119 = arith.constant dense<0.000000e+00> : vector<128xf32>
    %343 = vector.multi_reduction <add>, %342, %cst_119 [0] : vector<2x128xf32> to vector<128xf32>
    %344 = vector.shape_cast %343 : vector<128xf32> to vector<1x128xf32>
    %cst_120 = arith.constant 2.000000e+00 : f32
    %345 = vector.broadcast %cst_120 : f32 to vector<1x128xf32>
    %346 = arith.divf %344, %345 : vector<1x128xf32>
    %347 = vector.broadcast %339 : vector<1x128xf32> to vector<2x128xf32>
    %348 = arith.subf %335, %347 : vector<2x128xf32>
    %cst_121 = arith.constant 9.99999974E-6 : f32
    %349 = vector.broadcast %cst_121 : f32 to vector<1x128xf32>
    %350 = arith.addf %346, %349 : vector<1x128xf32>
    %351 = math.rsqrt %350 : vector<1x128xf32>
    %352 = vector.broadcast %351 : vector<1x128xf32> to vector<2x128xf32>
    %353 = arith.mulf %348, %352 : vector<2x128xf32>
    %c23 = arith.constant 23 : index
    %c0_122 = arith.constant 0 : index
    %354 = vector.load %arg4[%c23, %c0_122] : memref<40x256xf32, #tpu.memory_space<vmem>>, vector<1x128xf32>
    %355 = vector.broadcast %354 : vector<1x128xf32> to vector<2x128xf32>
    %356 = arith.mulf %353, %355 : vector<2x128xf32>
    %c24 = arith.constant 24 : index
    %c0_123 = arith.constant 0 : index
    %357 = vector.load %arg4[%c24, %c0_123] : memref<40x256xf32, #tpu.memory_space<vmem>>, vector<1x128xf32>
    %358 = vector.broadcast %357 : vector<1x128xf32> to vector<2x128xf32>
    %359 = arith.addf %356, %358 : vector<2x128xf32>
    %360 = arith.addf %299, %359 : vector<2x128xf32>
    %cst_124 = arith.constant 0.000000e+00 : f32
    %361 = vector.broadcast %cst_124 : f32 to vector<2x128xf32>
    %362 = arith.cmpf oge, %360, %361 : vector<2x128xf32>
    %cst_125 = arith.constant 2.000000e-01 : f32
    %363 = vector.broadcast %cst_125 : f32 to vector<2x128xf32>
    %364 = arith.mulf %363, %360 : vector<2x128xf32>
    %365 = arith.select %362, %360, %364 : vector<2x128xi1>, vector<2x128xf32>
    %c1312 = arith.constant 1312 : index
    %c0_126 = arith.constant 0 : index
    %366 = vector.load %arg7[%c1312, %c0_126] : memref<1920x256xbf16, #tpu.memory_space<vmem>>, vector<32x192xbf16>
    %367 = arith.truncf %283 : vector<2x32xf32> to vector<2x32xbf16>
    %cst_127 = arith.constant dense<0.000000e+00> : vector<2x192xf32>
    %368 = tpu.matmul %367, %366, %cst_127 {dimension_numbers = #tpu.dot_dimension_numbers<[1], [0], [0], [1], [0, 0, 1, 1], [], []>} : vector<2x32xbf16>, vector<32x192xbf16>, vector<2x192xf32> -> vector<2x192xf32>
    %c1344 = arith.constant 1344 : index
    %c0_128 = arith.constant 0 : index
    %369 = vector.load %arg7[%c1344, %c0_128] : memref<1920x256xbf16, #tpu.memory_space<vmem>>, vector<256x192xbf16>
    %370 = arith.truncf %45 : vector<2x256xf32> to vector<2x256xbf16>
    %cst_129 = arith.constant dense<0.000000e+00> : vector<2x192xf32>
    %371 = tpu.matmul %370, %369, %cst_129 {dimension_numbers = #tpu.dot_dimension_numbers<[1], [0], [0], [1], [0, 0, 1, 1], [], []>} : vector<2x256xbf16>, vector<256x192xbf16>, vector<2x192xf32> -> vector<2x192xf32>
    %372 = arith.addf %368, %371 : vector<2x192xf32>
    %c1600 = arith.constant 1600 : index
    %c0_130 = arith.constant 0 : index
    %373 = vector.load %arg7[%c1600, %c0_130] : memref<1920x256xbf16, #tpu.memory_space<vmem>>, vector<128x192xbf16>
    %374 = arith.truncf %365 : vector<2x128xf32> to vector<2x128xbf16>
    %cst_131 = arith.constant dense<0.000000e+00> : vector<2x192xf32>
    %375 = tpu.matmul %374, %373, %cst_131 {dimension_numbers = #tpu.dot_dimension_numbers<[1], [0], [0], [1], [0, 0, 1, 1], [], []>} : vector<2x128xbf16>, vector<128x192xbf16>, vector<2x192xf32> -> vector<2x192xf32>
    %376 = arith.addf %372, %375 : vector<2x192xf32>
    %c25 = arith.constant 25 : index
    %c0_132 = arith.constant 0 : index
    %377 = vector.load %arg4[%c25, %c0_132] : memref<40x256xf32, #tpu.memory_space<vmem>>, vector<1x192xf32>
    %378 = vector.broadcast %377 : vector<1x192xf32> to vector<2x192xf32>
    %379 = arith.addf %376, %378 : vector<2x192xf32>
    %380 = vector.extract_strided_slice %379 {offsets = [0, 0], sizes = [2, 128], strides = [1, 1]} : vector<2x192xf32> to vector<2x128xf32>
    %cst_133 = arith.constant 0.000000e+00 : f32
    %381 = vector.broadcast %cst_133 : f32 to vector<2x128xf32>
    %382 = arith.cmpf oge, %380, %381 : vector<2x128xf32>
    %cst_134 = arith.constant 2.000000e-01 : f32
    %383 = vector.broadcast %cst_134 : f32 to vector<2x128xf32>
    %384 = arith.mulf %383, %380 : vector<2x128xf32>
    %385 = arith.select %382, %380, %384 : vector<2x128xi1>, vector<2x128xf32>
    %386 = vector.extract_strided_slice %379 {offsets = [0, 128], sizes = [2, 64], strides = [1, 1]} : vector<2x192xf32> to vector<2x64xf32>
    %cst_135 = arith.constant dense<0.000000e+00> : vector<64xf32>
    %387 = vector.multi_reduction <add>, %386, %cst_135 [0] : vector<2x64xf32> to vector<64xf32>
    %388 = vector.shape_cast %387 : vector<64xf32> to vector<1x64xf32>
    %cst_136 = arith.constant 2.000000e+00 : f32
    %389 = vector.broadcast %cst_136 : f32 to vector<1x64xf32>
    %390 = arith.divf %388, %389 : vector<1x64xf32>
    %391 = vector.broadcast %390 : vector<1x64xf32> to vector<2x64xf32>
    %392 = arith.subf %386, %391 : vector<2x64xf32>
    %393 = arith.mulf %392, %392 : vector<2x64xf32>
    %cst_137 = arith.constant dense<0.000000e+00> : vector<64xf32>
    %394 = vector.multi_reduction <add>, %393, %cst_137 [0] : vector<2x64xf32> to vector<64xf32>
    %395 = vector.shape_cast %394 : vector<64xf32> to vector<1x64xf32>
    %cst_138 = arith.constant 2.000000e+00 : f32
    %396 = vector.broadcast %cst_138 : f32 to vector<1x64xf32>
    %397 = arith.divf %395, %396 : vector<1x64xf32>
    %398 = vector.broadcast %390 : vector<1x64xf32> to vector<2x64xf32>
    %399 = arith.subf %386, %398 : vector<2x64xf32>
    %cst_139 = arith.constant 9.99999974E-6 : f32
    %400 = vector.broadcast %cst_139 : f32 to vector<1x64xf32>
    %401 = arith.addf %397, %400 : vector<1x64xf32>
    %402 = math.rsqrt %401 : vector<1x64xf32>
    %403 = vector.broadcast %402 : vector<1x64xf32> to vector<2x64xf32>
    %404 = arith.mulf %399, %403 : vector<2x64xf32>
    %c26 = arith.constant 26 : index
    %c0_140 = arith.constant 0 : index
    %405 = vector.load %arg4[%c26, %c0_140] : memref<40x256xf32, #tpu.memory_space<vmem>>, vector<1x64xf32>
    %406 = vector.broadcast %405 : vector<1x64xf32> to vector<2x64xf32>
    %407 = arith.mulf %404, %406 : vector<2x64xf32>
    %c27 = arith.constant 27 : index
    %c0_141 = arith.constant 0 : index
    %408 = vector.load %arg4[%c27, %c0_141] : memref<40x256xf32, #tpu.memory_space<vmem>>, vector<1x64xf32>
    %409 = vector.broadcast %408 : vector<1x64xf32> to vector<2x64xf32>
    %410 = arith.addf %407, %409 : vector<2x64xf32>
    %cst_142 = arith.constant 0.000000e+00 : f32
    %411 = vector.broadcast %cst_142 : f32 to vector<2x64xf32>
    %412 = arith.cmpf oge, %410, %411 : vector<2x64xf32>
    %cst_143 = arith.constant 2.000000e-01 : f32
    %413 = vector.broadcast %cst_143 : f32 to vector<2x64xf32>
    %414 = arith.mulf %413, %410 : vector<2x64xf32>
    %415 = arith.select %412, %410, %414 : vector<2x64xi1>, vector<2x64xf32>
    %c1728_144 = arith.constant 1728 : index
    %c128_145 = arith.constant 128 : index
    %416 = vector.load %arg7[%c1728_144, %c128_145] : memref<1920x256xbf16, #tpu.memory_space<vmem>>, vector<64x128xbf16>
    %417 = arith.truncf %415 : vector<2x64xf32> to vector<2x64xbf16>
    %cst_146 = arith.constant dense<0.000000e+00> : vector<2x128xf32>
    %418 = tpu.matmul %417, %416, %cst_146 {dimension_numbers = #tpu.dot_dimension_numbers<[1], [0], [0], [1], [0, 0, 1, 1], [], []>} : vector<2x64xbf16>, vector<64x128xbf16>, vector<2x128xf32> -> vector<2x128xf32>
    %c28 = arith.constant 28 : index
    %c0_147 = arith.constant 0 : index
    %419 = vector.load %arg4[%c28, %c0_147] : memref<40x256xf32, #tpu.memory_space<vmem>>, vector<1x128xf32>
    %420 = vector.broadcast %419 : vector<1x128xf32> to vector<2x128xf32>
    %421 = arith.addf %418, %420 : vector<2x128xf32>
    %cst_148 = arith.constant dense<0.000000e+00> : vector<128xf32>
    %422 = vector.multi_reduction <add>, %421, %cst_148 [0] : vector<2x128xf32> to vector<128xf32>
    %423 = vector.shape_cast %422 : vector<128xf32> to vector<1x128xf32>
    %cst_149 = arith.constant 2.000000e+00 : f32
    %424 = vector.broadcast %cst_149 : f32 to vector<1x128xf32>
    %425 = arith.divf %423, %424 : vector<1x128xf32>
    %426 = vector.broadcast %425 : vector<1x128xf32> to vector<2x128xf32>
    %427 = arith.subf %421, %426 : vector<2x128xf32>
    %428 = arith.mulf %427, %427 : vector<2x128xf32>
    %cst_150 = arith.constant dense<0.000000e+00> : vector<128xf32>
    %429 = vector.multi_reduction <add>, %428, %cst_150 [0] : vector<2x128xf32> to vector<128xf32>
    %430 = vector.shape_cast %429 : vector<128xf32> to vector<1x128xf32>
    %cst_151 = arith.constant 2.000000e+00 : f32
    %431 = vector.broadcast %cst_151 : f32 to vector<1x128xf32>
    %432 = arith.divf %430, %431 : vector<1x128xf32>
    %433 = vector.broadcast %425 : vector<1x128xf32> to vector<2x128xf32>
    %434 = arith.subf %421, %433 : vector<2x128xf32>
    %cst_152 = arith.constant 9.99999974E-6 : f32
    %435 = vector.broadcast %cst_152 : f32 to vector<1x128xf32>
    %436 = arith.addf %432, %435 : vector<1x128xf32>
    %437 = math.rsqrt %436 : vector<1x128xf32>
    %438 = vector.broadcast %437 : vector<1x128xf32> to vector<2x128xf32>
    %439 = arith.mulf %434, %438 : vector<2x128xf32>
    %c29 = arith.constant 29 : index
    %c0_153 = arith.constant 0 : index
    %440 = vector.load %arg4[%c29, %c0_153] : memref<40x256xf32, #tpu.memory_space<vmem>>, vector<1x128xf32>
    %441 = vector.broadcast %440 : vector<1x128xf32> to vector<2x128xf32>
    %442 = arith.mulf %439, %441 : vector<2x128xf32>
    %c30 = arith.constant 30 : index
    %c0_154 = arith.constant 0 : index
    %443 = vector.load %arg4[%c30, %c0_154] : memref<40x256xf32, #tpu.memory_space<vmem>>, vector<1x128xf32>
    %444 = vector.broadcast %443 : vector<1x128xf32> to vector<2x128xf32>
    %445 = arith.addf %442, %444 : vector<2x128xf32>
    %446 = arith.addf %385, %445 : vector<2x128xf32>
    %cst_155 = arith.constant 0.000000e+00 : f32
    %447 = vector.broadcast %cst_155 : f32 to vector<2x128xf32>
    %448 = arith.cmpf oge, %446, %447 : vector<2x128xf32>
    %cst_156 = arith.constant 2.000000e-01 : f32
    %449 = vector.broadcast %cst_156 : f32 to vector<2x128xf32>
    %450 = arith.mulf %449, %446 : vector<2x128xf32>
    %451 = arith.select %448, %446, %450 : vector<2x128xi1>, vector<2x128xf32>
    %c1792_157 = arith.constant 1792 : index
    %c128_158 = arith.constant 128 : index
    %452 = vector.load %arg7[%c1792_157, %c128_158] : memref<1920x256xbf16, #tpu.memory_space<vmem>>, vector<128x99xbf16>
    %453 = arith.truncf %451 : vector<2x128xf32> to vector<2x128xbf16>
    %cst_159 = arith.constant dense<0.000000e+00> : vector<2x99xf32>
    %454 = tpu.matmul %453, %452, %cst_159 {dimension_numbers = #tpu.dot_dimension_numbers<[1], [0], [0], [1], [0, 0, 1, 1], [], []>} : vector<2x128xbf16>, vector<128x99xbf16>, vector<2x99xf32> -> vector<2x99xf32>
    %c32 = arith.constant 32 : index
    %c0_160 = arith.constant 0 : index
    %455 = vector.load %arg4[%c32, %c0_160] : memref<40x256xf32, #tpu.memory_space<vmem>>, vector<1x99xf32>
    %456 = vector.broadcast %455 : vector<1x99xf32> to vector<2x99xf32>
    %457 = arith.addf %454, %456 : vector<2x99xf32>
    %458 = vector.extract_strided_slice %457 {offsets = [0, 0], sizes = [2, 96], strides = [1, 1]} : vector<2x99xf32> to vector<2x96xf32>
    %459 = vector.extract_strided_slice %457 {offsets = [0, 96], sizes = [2, 3], strides = [1, 1]} : vector<2x99xf32> to vector<2x3xf32>
    %cst_161 = arith.constant 0.000000e+00 : f32
    %460 = vector.broadcast %cst_161 : f32 to vector<2x96xf32>
    %461 = tpu.concatenate %270, %460 in 1 : vector<2x32xf32>, vector<2x96xf32> -> vector<2x128xf32>
    %cst_162 = arith.constant 0.000000e+00 : f32
    %462 = vector.broadcast %cst_162 : f32 to vector<2x96xf32>
    %463 = tpu.concatenate %281, %462 in 1 : vector<2x32xf32>, vector<2x96xf32> -> vector<2x128xf32>
    %cst_163 = arith.constant 0.000000e+00 : f32
    %464 = vector.broadcast %cst_163 : f32 to vector<2x96xf32>
    %465 = tpu.concatenate %283, %464 in 1 : vector<2x32xf32>, vector<2x96xf32> -> vector<2x128xf32>
    %cst_164 = arith.constant 0.000000e+00 : f32
    %466 = vector.broadcast %cst_164 : f32 to vector<2x32xf32>
    %467 = tpu.concatenate %458, %466 in 1 : vector<2x96xf32>, vector<2x32xf32> -> vector<2x128xf32>
    %cst_165 = arith.constant 0.000000e+00 : f32
    %468 = vector.broadcast %cst_165 : f32 to vector<2x125xf32>
    %469 = tpu.concatenate %459, %468 in 1 : vector<2x3xf32>, vector<2x125xf32> -> vector<2x128xf32>
    %470 = tpu.concatenate %461, %463, %465, %467, %469, %45 in 1 : vector<2x128xf32>, vector<2x128xf32>, vector<2x128xf32>, vector<2x128xf32>, vector<2x128xf32>, vector<2x256xf32> -> vector<2x896xf32>
    %c0_166 = arith.constant 0 : index
    %c0_167 = arith.constant 0 : index
    %471 = vector.load %arg6[%c0_166, %c0_167] : memref<2x896xf32, #tpu.memory_space<vmem>>, vector<2x896xf32>
    tpu.vector_store %arg6[%c0_166, %c0_167], %470 {strides = array<i32>} : memref<2x896xf32, #tpu.memory_space<vmem>>, vector<2x896xf32>,
    return
  }
}

</mosaic_0001>

<bundles_post_ra>
// kernel: mul.25
= control target key start
LH: loop header
LB: loop body
LE: loop exit
PB: predicated region body
PF: predicated region fallthrough
CT: control target
= control target key end

     0   :  { %s34_s0 = inlined_call_operand.vmem [shape: f32[2,48], index: 0, kind: input, shape index: {}]   ;;  %s35_s1 = inlined_call_operand.vmem [shape: f32[2,48], index: 1, kind: input, shape index: {}]   ;;  %s36_s2 = inlined_call_operand.vmem [shape: f32[2,48], index: 2, kind: output, shape index: {}]  }
   0x1   :  { %v3_v0 = vld [vmem:[%s34_s0] sm:$0x3] }
   0x2   :  { %v4_v1 = vld [vmem:[%s35_s1] sm:$0x3] }
   0x3   :  { %v7_v2 = vmul.f32 %v4_v1, %v3_v0 }
   0x5   :  { %9 = vst [vmem:[%s36_s2] sm:$0x3] %v7_v2 }

// kernel: forward.1
= control target key start
LH: loop header
LB: loop body
LE: loop exit
PB: predicated region body
PF: predicated region fallthrough
CT: control target
= control target key end

     0   :  { %v5453_v0 = vmov 1   ;;  %v5454_v1 = vmov 0   ;;  %v5455_v3 = vmov 2   ;;  %vm762_vm0 = vcmask 523264   ;;  %s5456_s8 = smov [#allocation2]   ;;  %s6512_s0 = inlined_call_operand.vmem [shape: f32[256,3], index: 0, kind: input, shape index: {}]   ;;  %s6513_s3 = inlined_call_operand.vmem [shape: bf16[208,256], index: 3, kind: input, shape index: {}]   ;;  %s6514_s4 = inlined_call_operand.vmem [shape: f32[40,256], index: 4, kind: input, shape index: {}]   ;;  %s6515_s5 = inlined_call_operand.hbm [shape: bf16[1920,256], index: 5, kind: input, shape index: {}]   ;;  %s6516_s6 = inlined_call_operand.vmem [shape: f32[2,896], index: 6, kind: output, shape index: {}]   ;;  %s6517_s1 = inlined_call_operand.vmem [shape: f32[2,160], index: 1, kind: input, shape index: {}]   ;;  %s6518_s2 = inlined_call_operand.vmem [shape: f32[2,32], index: 2, kind: input, shape index: {}]  }
   0x1   :  { %5316 = vset.pattern.permute.xlu1 %v5453_v0  ;;  %5315 = vset.pattern.permute.xlu0 %v5454_v1  ;;  %v35_v2 = vld [vmem:[%s6512_s0] sm:$0xff]  ;;  %v36_v4 = vld [vmem:[%s6512_s0 + $0x8] sm:$0xff]  ;;  %v37_v5 = vld [vmem:[%s6512_s0 + $0x10] sm:$0xff]  ;;  %s29_s7 = sshll.u32 %s6515_s5, 4  ;;  %s31_s9 = sshll.u32 %s5456_s8, 4  ;;  %vm1417_vm1 = vcmask 254976   ;;  %s30_s7 = int_to_ptr.hbm [resolvable:$true] %s29_s7  ;;  %s32_s9 = int_to_ptr.vmem [resolvable:$true] %s31_s9 }
   0x2   :  { %296 = vperm.xlu1 %5316, %v35_v2   ;;  %72 = vperm.xlu0 %5315, %v35_v2   ;;  %v38_v6 = vld [vmem:[%s6512_s0 + $0x18] sm:$0xff]  ;;  %v39_v7 = vld [vmem:[%s6512_s0 + $0x20] sm:$0xff]  ;;  %v40_v8 = vld [vmem:[%s6512_s0 + $0x28] sm:$0xff]  ;;  %34 = dma.hbm_to_vmem [thread:$0]  %s30_s7, 30720, %s32_s9, [#allocation3]  ;;  %vm1318_vm2 = vcmask 1041408  }
   0x3   :  { %5317 = vset.pattern.permute.xlu2 %v5455_v3  ;;  %v41_v9 = vld [vmem:[%s6512_s0 + $0x30] sm:$0xff]  ;;  %v42_v10 = vld [vmem:[%s6512_s0 + $0x38] sm:$0xff]  ;;  %v44_v11 = vld [vmem:[%s6512_s0 + $0x48] sm:$0xff]  ;;  %vm1313_vm4 = vcmask 1040384  }
   0x4   :  { %489 = vperm.xlu2 %5317, %v35_v2   ;;  %v45_v12 = vld [vmem:[%s6512_s0 + $0x50] sm:$0xff]  ;;  %v43_v13 = vld [vmem:[%s6512_s0 + $0x40] sm:$0xff]  ;;  %v46_v14 = vld [vmem:[%s6512_s0 + $0x58] sm:$0xff] }
   0x5   :  { %v5557_v15 = vld [vmem:[%s6512_s0 + $0x60] sm:$0xff]  ;;  %v5051_v17 = vld [vmem:[%s6513_s3 + $0x44] sm:$0xf0]  ;;  %v3980_v19 = vld [vmem:[%s6513_s3 + $0x30] sm:$0xf] }
   0x6   :  { %v3984_v16 = vld [vmem:[%s6513_s3 + $0x40] sm:$0xf]  ;;  %v5050_v20 = vld [vmem:[%s6513_s3 + $0x34] sm:$0xf0]  ;;  %v48_v23 = vld [vmem:[%s6512_s0 + $0x68] sm:$0xff] }
   0x7   :  { %v3985_v18 = vor.u32 %v5051_v17, %v3984_v16  ;;  %v3981_v21 = vor.u32 %v5050_v20, %v3980_v19  ;;  %v3976_v24 = vld [vmem:[%s6513_s3 + $0x20] sm:$0xf]  ;;  %v5049_v25 = vld [vmem:[%s6513_s3 + $0x24] sm:$0xf0]  ;;  %v3972_v27 = vld [vmem:[%s6513_s3 + $0x10] sm:$0xf] }
   0x8   :  { %v3977_v26 = vor.u32 %v5049_v25, %v3976_v24  ;;  %v5048_v28 = vld [vmem:[%s6513_s3 + $0x14] sm:$0xf0]  ;;  %v5595_v31 = vld [vmem:[%s6512_s0 + $0x70] sm:$0xff]  ;;  %v67_v32 = vld [vmem:[%s6513_s3] sm:$0x3] }
   0x9   :  { %815 = vmatpush.bf16.msra.mxu0 %v3985_v18  ;;  %v3973_v29 = vor.u32 %v5048_v28, %v3972_v27  ;;  %v68_v33 = vunpack.c.l.bf16 %v67_v32  ;;  %v5611_v39 = vld [vmem:[%s6514_s4] ss:$0 sm:$0xff]  ;;  %v5633_v62 = vld [vmem:[%s6512_s0 + $0x88] sm:$0xff]  ;;  %v50_v2 = vld [vmem:[%s6512_s0 + $0x78] sm:$0xff] }
   0xa   :  { %300 = vperm.xlu1 %5316, %v36_v4   ;;  %77 = vperm.xlu0 %5315, %v36_v4   ;;  %v5662_v24 = vld [vmem:[%s6512_s0 + $0x98] sm:$0xff] }
   0xb   :  { %v5604_v35 = vperm.slane %v68_v33, 0  ;;  %v5614_v40 = vperm.slane %v68_v33, 1  ;;  %v5617_v42 = vperm.slane %v68_v33, 2 }
   0xc   :  { %493 = vperm.xlu2 %5317, %v36_v4  }
   0xd   :  { %816 = vmatpush.bf16.msra.mxu0 %v3981_v21 }
  0x11   :  { %817 = vmatpush.bf16.msra.mxu0 %v3977_v26 }
  0x12   :  { %5318 = vset.pattern.permute.xlu1 %v5454_v1  ;;  %82 = vperm.xlu0 %5315, %v37_v5  }
  0x13   :  { %87 = vperm.xlu1 %5318, %v38_v6  }
  0x14   :  { %5319 = vset.pattern.permute.xlu2 %v5453_v0 }
  0x15   :  { %304 = vperm.xlu2 %5319, %v37_v5   ;;  %818 = vmatpush.bf16.msra.mxu0 %v3973_v29 }
  0x1a   :  { %5320 = vset.pattern.permute.xlu0 %v5453_v0 }
  0x1b   :  { %5321 = vset.pattern.permute.xlu1 %v5455_v3  ;;  %308 = vperm.xlu0 %5320, %v38_v6  }
  0x1c   :  { %497 = vperm.xlu1 %5321, %v37_v5  }
  0x1d   :  { %5322 = vset.pattern.permute.xlu2 %v5455_v3 }
  0x1e   :  { %501 = vperm.xlu2 %5322, %v38_v6  }
  0x23   :  { %312 = vperm.xlu0 %5320, %v39_v7  }
  0x24   :  { %5323 = vset.pattern.permute.xlu1 %v5454_v1 }
  0x25   :  { %92 = vperm.xlu1 %5323, %v39_v7  }
  0x26   :  { %5324 = vset.pattern.permute.xlu2 %v5454_v1 }
  0x27   :  { %97 = vperm.xlu2 %5324, %v40_v8  }
  0x2b   :  { %5327 = vset.pattern.permute.xlu0 %v5455_v3 }
  0x2c   :  { %509 = vperm.xlu0 %5327, %v40_v8  }
  0x2d   :  { %5325 = vset.pattern.permute.xlu1 %v5453_v0 }
  0x2e   :  { %316 = vperm.xlu1 %5325, %v40_v8   ;;  %v5649_v8 = vld [vmem:[%s6512_s0 + $0x90] sm:$0xff] }
  0x2f   :  { %5326 = vset.pattern.permute.xlu2 %v5455_v3 }
  0x30   :  { %505 = vperm.xlu2 %5326, %v39_v7  }
  0x34   :  { %513 = vperm.xlu0 %5327, %v41_v9  }
  0x36   :  { %5328 = vset.pattern.permute.xlu1 %v5454_v1 }
  0x37   :  { %102 = vperm.xlu1 %5328, %v41_v9  }
  0x38   :  { %5329 = vset.pattern.permute.xlu2 %v5454_v1 }
  0x39   :  { %107 = vperm.xlu2 %5329, %v42_v10  }
  0x3c   :  { %5334 = vset.pattern.permute.xlu0 %v5454_v1 }
  0x3d   :  { %117 = vperm.xlu0 %5334, %v44_v11  }
  0x3f   :  { %5330 = vset.pattern.permute.xlu1 %v5453_v0 }
  0x40   :  { %320 = vperm.xlu1 %5330, %v41_v9  }
  0x41   :  { %5331 = vset.pattern.permute.xlu2 %v5453_v0 }
  0x42   :  { %324 = vperm.xlu2 %5331, %v42_v10  }
  0x45   :  { %122 = vperm.xlu0 %5334, %v45_v12  }
  0x48   :  { %5332 = vset.pattern.permute.xlu1 %v5455_v3 }
  0x49   :  { %517 = vperm.xlu1 %5332, %v42_v10  }
  0x4a   :  { %5333 = vset.pattern.permute.xlu2 %v5454_v1 }
  0x4b   :  { %112 = vperm.xlu2 %5333, %v43_v13  }
  0x4d   :  { %5341 = vset.pattern.permute.xlu0 %v5453_v0 }
  0x4e   :  { %340 = vperm.xlu0 %5341, %v46_v14  }
  0x51   :  { %5335 = vset.pattern.permute.xlu1 %v5453_v0 }
  0x52   :  { %328 = vperm.xlu1 %5335, %v43_v13  }
  0x53   :  { %5336 = vset.pattern.permute.xlu2 %v5453_v0 }
  0x54   :  { %332 = vperm.xlu2 %5336, %v44_v11  }
  0x56   :  { %344 = vperm.xlu0 %5341, %v5557_v15  }
  0x5a   :  { %5337 = vset.pattern.permute.xlu1 %v5455_v3 }
  0x5b   :  { %521 = vperm.xlu1 %5337, %v43_v13  }
  0x5c   :  { %5338 = vset.pattern.permute.xlu2 %v5455_v3 }
  0x5d   :  { %525 = vperm.xlu2 %5338, %v44_v11  }
  0x5e   :  { %v490_v22 = vpop.permute.xlu2 %489  ;;  %5348 = vset.pattern.permute.xlu0 %v5455_v3 }
  0x5f   :  { %541 = vperm.xlu0 %5348, %v48_v23   ;;  %v617_v47 = vmul.f32 %v5617_v42, %v490_v22 }
  0x63   :  { %5339 = vset.pattern.permute.xlu1 %v5454_v1 }
  0x64   :  { %127 = vperm.xlu1 %5339, %v46_v14  }
  0x65   :  { %5340 = vset.pattern.permute.xlu2 %v5453_v0 }
  0x66   :  { %336 = vperm.xlu2 %5340, %v45_v12   ;;  %v494_v30 = vpop.permute.xlu2 %493 }
  0x67   :  { %545 = vperm.xlu0 %5348, %v5595_v31   ;;  %v618_v52 = vmul.f32 %v5617_v42, %v494_v30  ;;  %v51_v30 = vld [vmem:[%s6512_s0 + $0x80] sm:$0xff] }
  0x6c   :  { %5342 = vset.pattern.permute.xlu1 %v5455_v3 }
  0x6d   :  { %529 = vperm.xlu1 %5342, %v45_v12  }
  0x6e   :  { %5343 = vset.pattern.permute.xlu2 %v5455_v3 }
  0x6f   :  { %533 = vperm.xlu2 %5343, %v46_v14   ;;  %v305_v34 = vpop.permute.xlu2 %304  ;;  %5355 = vset.pattern.permute.xlu0 %v5454_v1 }
  0x70   :  { %157 = vperm.xlu0 %5355, %v5633_v62   ;;  %v426_v4 = vmul.f32 %v5614_v40, %v305_v34 }
  0x74   :  { %v297_v36 = vpop.permute.xlu1 %296  ;;  %v73_v37 = vpop.permute.xlu0 %72 }
  0x75   :  { %v231_v38 = vmul.f32 %v5604_v35, %v73_v37  ;;  %5344 = vset.pattern.permute.xlu1 %v5454_v1  ;;  %v424_v44 = vmul.f32 %v5614_v40, %v297_v36 }
  0x76   :  { %132 = vperm.xlu1 %5344, %v5557_v15  }
  0x77   :  { %5345 = vset.pattern.permute.xlu2 %v5454_v1  ;;  %v263_v43 = vadd.f32 %v231_v38, %v5611_v39 }
  0x78   :  { %137 = vperm.xlu2 %5345, %v48_v23   ;;  %v502_v41 = vpop.permute.xlu2 %501  ;;  %162 = vperm.xlu0 %5355, %v5649_v8  }
  0x79   :  { %v456_v48 = vadd.f32 %v424_v44, %v263_v43  ;;  %v620_v12 = vmul.f32 %v5617_v42, %v502_v41 }
  0x7b   :  { %v649_v54 = vadd.f32 %v617_v47, %v456_v48 }
  0x7c   :  { %v301_v45 = vpop.permute.xlu1 %300  ;;  %v78_v46 = vpop.permute.xlu0 %77 }
  0x7d   :  { %v232_v49 = vmul.f32 %v5604_v35, %v78_v46  ;;  %v425_v50 = vmul.f32 %v5614_v40, %v301_v45  ;;  %v681_v60 = vmax.f32 %v649_v54, 0.0  ;;  %v5686_v46 = vld [vmem:[%s6512_s0 + $0xa0] sm:$0xff] }
  0x7e   :  { %5346 = vset.pattern.permute.xlu1 %v5453_v0 }
  0x7f   :  { %v264_v51 = vadd.f32 %v232_v49, %v5611_v39  ;;  %348 = vperm.xlu1 %5346, %v48_v23  }
  0x80   :  { %5347 = vset.pattern.permute.xlu2 %v5455_v3  ;;  %5362 = vset.pattern.permute.xlu0 %v5453_v0 }
  0x81   :  { %v457_v53 = vadd.f32 %v425_v50, %v264_v51  ;;  %537 = vperm.xlu2 %5347, %v5557_v15   ;;  %v98_v55 = vpop.permute.xlu2 %97  ;;  %372 = vperm.xlu0 %5362, %v5662_v24  }
  0x82   :  { %v236_v27 = vmul.f32 %v5604_v35, %v98_v55 }
  0x83   :  { %v650_v56 = vadd.f32 %v618_v52, %v457_v53  ;;  %v56_v52 = vld [vmem:[%s6512_s0 + $0xa8] sm:$0xff] }
  0x84   :  { %v83_v57 = vpop.permute.xlu0 %82  ;;  %v268_v33 = vadd.f32 %v236_v27, %v5611_v39 }
  0x85   :  { %v88_v58 = vpop.permute.xlu1 %87  ;;  %v233_v59 = vmul.f32 %v5604_v35, %v83_v57  ;;  %v682_v61 = vmax.f32 %v650_v56, 0.0 }
  0x86   :  { %v234_v6 = vmul.f32 %v5604_v35, %v88_v58 }
  0x87   :  { %5349 = vset.pattern.permute.xlu1 %v5454_v1  ;;  %v721_v63 = vpack.c.bf16 %v682_v61, %v681_v60  ;;  %v265_v5 = vadd.f32 %v233_v59, %v5611_v39 }
  0x88   :  { %142 = vperm.xlu1 %5349, %v5595_v31   ;;  %v266_v11 = vadd.f32 %v234_v6, %v5611_v39 }
  0x89   :  { %3986 = vmatmul.msk.bf16.vlgmr.msra.gmra.mxu0 %vm762_vm0, %v721_v63  ;;  %5350 = vset.pattern.permute.xlu2 %v5454_v1  ;;  %v458_v10 = vadd.f32 %v426_v4, %v265_v5 }
  0x8a   :  { %147 = vperm.xlu2 %5350, %v50_v2   ;;  %v506_v7 = vpop.permute.xlu2 %505  ;;  %376 = vperm.xlu0 %5362, %v5686_v46  }
  0x8b   :  { %v621_v36 = vmul.f32 %v5617_v42, %v506_v7 }
  0x8d   :  { %v309_v9 = vpop.permute.xlu0 %308 }
  0x8e   :  { %v427_v13 = vmul.f32 %v5614_v40, %v309_v9  ;;  %v498_v14 = vpop.permute.xlu1 %497 }
  0x8f   :  { %v619_v15 = vmul.f32 %v5617_v42, %v498_v14 }
  0x90   :  { %v459_v16 = vadd.f32 %v427_v13, %v266_v11  ;;  %5351 = vset.pattern.permute.xlu1 %v5453_v0 }
  0x91   :  { %v651_v17 = vadd.f32 %v619_v15, %v458_v10  ;;  %352 = vperm.xlu1 %5351, %v5595_v31  }
  0x92   :  { %v652_v18 = vadd.f32 %v620_v12, %v459_v16  ;;  %5352 = vset.pattern.permute.xlu2 %v5453_v0  ;;  %5369 = vset.pattern.permute.xlu0 %v5455_v3 }
  0x93   :  { %v683_v19 = vmax.f32 %v651_v17, 0.0  ;;  %356 = vperm.xlu2 %5352, %v50_v2   ;;  %v108_v20 = vpop.permute.xlu2 %107  ;;  %573 = vperm.xlu0 %5369, %v56_v52  }
  0x94   :  { %v684_v21 = vmax.f32 %v652_v18, 0.0  ;;  %v238_v56 = vmul.f32 %v5604_v35, %v108_v20 }
  0x95   :  { %v313_v22 = vpop.permute.xlu0 %312 }
  0x96   :  { %v722_v23 = vpack.c.bf16 %v684_v21, %v683_v19  ;;  %v428_v29 = vmul.f32 %v5614_v40, %v313_v22  ;;  %v270_v60 = vadd.f32 %v238_v56, %v5611_v39  ;;  %v4055_v56 = vld [vmem:[%s6513_s3 + $0xb8] sm:$0xf0] }
  0x97   :  { %v93_v25 = vpop.permute.xlu1 %92 }
  0x98   :  { %v235_v26 = vmul.f32 %v5604_v35, %v93_v25 }
  0x99   :  { %5353 = vset.pattern.permute.xlu1 %v5455_v3  ;;  %3987 = vmatmul.msk.bf16.gmra.mxu0 %vm762_vm0, %v722_v23 }
  0x9a   :  { %549 = vperm.xlu1 %5353, %v50_v2   ;;  %v267_v28 = vadd.f32 %v235_v26, %v5611_v39  ;;  %v5711_v2 = vld [vmem:[%s6512_s0 + $0xb0] sm:$0xff] }
  0x9b   :  { %5354 = vset.pattern.permute.xlu2 %v5454_v1  ;;  %577 = vperm.xlu0 %5369, %v5711_v2  }
  0x9c   :  { %152 = vperm.xlu2 %5354, %v51_v30   ;;  %v325_v31 = vpop.permute.xlu2 %324  ;;  %v460_v34 = vadd.f32 %v428_v29, %v267_v28 }
  0x9d   :  { %v431_v61 = vmul.f32 %v5614_v40, %v325_v31 }
  0x9e   :  { %v510_v32 = vpop.permute.xlu0 %509  ;;  %v653_v43 = vadd.f32 %v621_v36, %v460_v34  ;;  %v5067_v34 = vld [vmem:[%s6513_s3 + $0xc4] sm:$0xf0] }
  0x9f   :  { %v622_v41 = vmul.f32 %v5617_v42, %v510_v32  ;;  %v463_v6 = vadd.f32 %v431_v61, %v270_v60  ;;  %v4045_v61 = vld [vmem:[%s6513_s3 + $0xa0] sm:$0xf] }
  0xa0   :  { %v317_v37 = vpop.permute.xlu1 %316  ;;  %v685_v47 = vmax.f32 %v653_v43, 0.0 }
  0xa1   :  { %v429_v38 = vmul.f32 %v5614_v40, %v317_v37 }
  0xa2   :  { %5356 = vset.pattern.permute.xlu1 %v5453_v0 }
  0xa3   :  { %v461_v44 = vadd.f32 %v429_v38, %v268_v33  ;;  %360 = vperm.xlu1 %5356, %v51_v30   ;;  %5376 = vset.pattern.permute.xlu0 %v5454_v1  ;;  %v4061_v33 = vld [vmem:[%s6513_s3 + $0xc0] sm:$0xf]  ;;  %v5066_v38 = vld [vmem:[%s6513_s3 + $0xc4] sm:$0xf] }
  0xa4   :  { %5357 = vset.pattern.permute.xlu2 %v5453_v0  ;;  %v4062_v37 = vor.u32 %v5067_v34, %v4061_v33  ;;  %v5057_v33 = vld [vmem:[%s6513_s3 + $0x74] sm:$0xf0]  ;;  %v5056_v34 = vld [vmem:[%s6513_s3 + $0x74] sm:$0xf] }
  0xa5   :  { %v654_v45 = vadd.f32 %v622_v41, %v461_v44  ;;  %364 = vperm.xlu2 %5357, %v5633_v62   ;;  %v113_v49 = vpop.permute.xlu2 %112  ;;  %v4063_v41 = vld [vmem:[%s6513_s3 + $0xc8] sm:$0xf0] }
  0xa6   :  { %v514_v58 = vpop.permute.xlu0 %513  ;;  %v4066_v44 = vor.u32 %v5066_v38, %v4063_v41  ;;  %1051 = vmatpush.bf16.msra.mxu1 %v4062_v37  ;;  %v4023_v38 = vld [vmem:[%s6513_s3 + $0x78] sm:$0xf0] }
  0xa7   :  { %v686_v48 = vmax.f32 %v654_v45, 0.0  ;;  %v623_v63 = vmul.f32 %v5617_v42, %v514_v58 }
  0xa8   :  { %1140 = vmatpush.bf16.msra.mxu2 %v4066_v44  ;;  %v4026_v44 = vor.u32 %v5056_v34, %v4023_v38 }
  0xa9   :  { %v103_v50 = vpop.permute.xlu1 %102  ;;  %v723_v51 = vpack.c.bf16 %v686_v48, %v685_v47  ;;  %v5752_v47 = vld [vmem:[%s6512_s0 + $0xc8] sm:$0xff] }
  0xaa   :  { %v237_v54 = vmul.f32 %v5604_v35, %v103_v50  ;;  %197 = vperm.xlu0 %5376, %v5752_v47   ;;  %v4053_v50 = vld [vmem:[%s6513_s3 + $0xb0] sm:$0xf] }
  0xab   :  { %5358 = vset.pattern.permute.xlu1 %v5455_v3  ;;  %3988 = vmatmul.msk.bf16.gmra.mxu0 %vm762_vm0, %v723_v51  ;;  %v5065_v51 = vld [vmem:[%s6513_s3 + $0xb4] sm:$0xf0] }
  0xac   :  { %553 = vperm.xlu1 %5358, %v51_v30   ;;  %v269_v59 = vadd.f32 %v237_v54, %v5611_v39  ;;  %v5772_v54 = vld [vmem:[%s6512_s0 + $0xb8] sm:$0xff] }
  0xad   :  { %5359 = vset.pattern.permute.xlu2 %v5455_v3 }
  0xae   :  { %557 = vperm.xlu2 %5359, %v5633_v62   ;;  %v333_v53 = vpop.permute.xlu2 %332 }
  0xaf   :  { %v118_v10 = vpop.permute.xlu0 %117  ;;  %v433_v16 = vmul.f32 %v5614_v40, %v333_v53 }
  0xb0   :  { %v240_v14 = vmul.f32 %v5604_v35, %v118_v10  ;;  %v5799_v10 = vld [vmem:[%s6512_s0 + $0xd0] sm:$0xff] }
  0xb2   :  { %v321_v55 = vpop.permute.xlu1 %320  ;;  %v272_v18 = vadd.f32 %v240_v14, %v5611_v39  ;;  %202 = vperm.xlu0 %5376, %v5799_v10  }
  0xb3   :  { %v430_v57 = vmul.f32 %v5614_v40, %v321_v55  ;;  %v4054_v55 = vor.u32 %v5065_v51, %v4053_v50 }
  0xb4   :  { %5360 = vset.pattern.permute.xlu1 %v5454_v1  ;;  %v465_v20 = vadd.f32 %v433_v16, %v272_v18  ;;  %v4039_v16 = vld [vmem:[%s6513_s3 + $0x98] sm:$0xf0] }
  0xb5   :  { %167 = vperm.xlu1 %5360, %v5662_v24   ;;  %v462_v62 = vadd.f32 %v430_v57, %v269_v59  ;;  %1052 = vmatpush.bf16.msra.mxu1 %v4054_v55  ;;  %v4015_v55 = vld [vmem:[%s6513_s3 + $0x68] sm:$0xf0] }
  0xb6   :  { %5361 = vset.pattern.permute.xlu2 %v5453_v0 }
  0xb7   :  { %368 = vperm.xlu2 %5361, %v5649_v8   ;;  %v526_v5 = vpop.permute.xlu2 %525  ;;  %v655_v7 = vadd.f32 %v623_v63, %v462_v62  ;;  %v5063_v62 = vld [vmem:[%s6513_s3 + $0xa4] sm:$0xf0]  ;;  %v5062_v63 = vld [vmem:[%s6513_s3 + $0xa4] sm:$0xf] }
  0xb8   :  { %v626_v21 = vmul.f32 %v5617_v42, %v526_v5 }
  0xb9   :  { %v687_v12 = vmax.f32 %v655_v7, 0.0  ;;  %v4047_v7 = vld [vmem:[%s6513_s3 + $0xa8] sm:$0xf0] }
  0xba   :  { %v658_v25 = vadd.f32 %v626_v21, %v465_v20  ;;  %5383 = vset.pattern.permute.xlu0 %v5453_v0 }
  0xbb   :  { %v518_v4 = vpop.permute.xlu1 %517 }
  0xbc   :  { %v624_v9 = vmul.f32 %v5617_v42, %v518_v4  ;;  %v690_v30 = vmax.f32 %v658_v25, 0.0 }
  0xbd   :  { %5363 = vset.pattern.permute.xlu1 %v5455_v3 }
  0xbe   :  { %v656_v11 = vadd.f32 %v624_v9, %v463_v6  ;;  %561 = vperm.xlu1 %5363, %v5649_v8   ;;  %v239_v8 = vmul.f32 %v5604_v35, %v113_v49  ;;  %v4046_v6 = vor.u32 %v5063_v62, %v4045_v61  ;;  %v4050_v9 = vor.u32 %v5062_v63, %v4047_v7 }
  0xbf   :  { %5364 = vset.pattern.permute.xlu2 %v5455_v3 }
  0xc0   :  { %v688_v13 = vmax.f32 %v656_v11, 0.0  ;;  %565 = vperm.xlu2 %5364, %v5662_v24   ;;  %v337_v19 = vpop.permute.xlu2 %336  ;;  %v271_v22 = vadd.f32 %v239_v8, %v5611_v39  ;;  %v123_v24 = vpop.permute.xlu0 %122  ;;  %v4037_v11 = vld [vmem:[%s6513_s3 + $0x90] sm:$0xf]  ;;  %1053 = vmatpush.bf16.msra.mxu1 %v4046_v6 }
  0xc1   :  { %v241_v45 = vmul.f32 %v5604_v35, %v123_v24  ;;  %v434_v60 = vmul.f32 %v5614_v40, %v337_v19  ;;  %v5058_v24 = vld [vmem:[%s6513_s3 + $0x84] sm:$0xf] }
  0xc2   :  { %v724_v15 = vpack.c.bf16 %v688_v13, %v687_v12  ;;  %v5061_v12 = vld [vmem:[%s6513_s3 + $0x94] sm:$0xf0] }
  0xc3   :  { %v273_v59 = vadd.f32 %v241_v45, %v5611_v39  ;;  %v4038_v14 = vor.u32 %v5061_v12, %v4037_v11  ;;  %v4013_v45 = vld [vmem:[%s6513_s3 + $0x60] sm:$0xf] }
  0xc4   :  { %v329_v17 = vpop.permute.xlu1 %328  ;;  %3989 = vmatmul.msk.bf16.gmra.mxu0 %vm762_vm0, %v724_v15  ;;  %v5060_v15 = vld [vmem:[%s6513_s3 + $0x94] sm:$0xf] }
  0xc5   :  { %v432_v23 = vmul.f32 %v5614_v40, %v329_v17  ;;  %v466_v13 = vadd.f32 %v434_v60, %v273_v59  ;;  %v4042_v18 = vor.u32 %v5060_v15, %v4039_v16  ;;  %1054 = vmatpush.bf16.msra.mxu1 %v4038_v14  ;;  %v5052_v59 = vld [vmem:[%s6513_s3 + $0x54] sm:$0xf] }
  0xc6   :  { %5365 = vset.pattern.permute.xlu1 %v5454_v1 }
  0xc7   :  { %172 = vperm.xlu1 %5365, %v5686_v46   ;;  %v464_v27 = vadd.f32 %v432_v23, %v271_v22  ;;  %v4029_v22 = vld [vmem:[%s6513_s3 + $0x80] sm:$0xf]  ;;  %v5059_v23 = vld [vmem:[%s6513_s3 + $0x84] sm:$0xf0] }
  0xc8   :  { %5366 = vset.pattern.permute.xlu2 %v5454_v1  ;;  %v341_v43 = vpop.permute.xlu0 %340 }
  0xc9   :  { %177 = vperm.xlu2 %5366, %v56_v52   ;;  %v534_v29 = vpop.permute.xlu2 %533  ;;  %v435_v53 = vmul.f32 %v5614_v40, %v341_v43 }
  0xca   :  { %v628_v5 = vmul.f32 %v5617_v42, %v534_v29 }
  0xcd   :  { %v522_v26 = vpop.permute.xlu1 %521 }
  0xce   :  { %v625_v28 = vmul.f32 %v5617_v42, %v522_v26 }
  0xcf   :  { %5367 = vset.pattern.permute.xlu1 %v5453_v0 }
  0xd0   :  { %v657_v31 = vadd.f32 %v625_v28, %v464_v27  ;;  %380 = vperm.xlu1 %5367, %v56_v52   ;;  %v5064_v52 = vld [vmem:[%s6513_s3 + $0xb4] sm:$0xf]  ;;  %v4031_v27 = vld [vmem:[%s6513_s3 + $0x88] sm:$0xf0]  ;;  %v345_v28 = vpop.permute.xlu0 %344 }
  0xd1   :  { %5368 = vset.pattern.permute.xlu2 %v5455_v3  ;;  %v4058_v58 = vor.u32 %v5064_v52, %v4055_v56  ;;  %v4034_v29 = vor.u32 %v5058_v24, %v4031_v27  ;;  %v436_v52 = vmul.f32 %v5614_v40, %v345_v28 }
  0xd2   :  { %v689_v32 = vmax.f32 %v657_v31, 0.0  ;;  %569 = vperm.xlu2 %5368, %v5686_v46   ;;  %v5755_v49 = vpop.permute.xlu2 %137  ;;  %v5834_v31 = vld [vmem:[%s6512_s0 + $0xd8] sm:$0xff] }
  0xd3   :  { %1141 = vmatpush.bf16.msra.mxu2 %v4058_v58  ;;  %404 = vperm.xlu0 %5383, %v5834_v31   ;;  %v244_v50 = vmul.f32 %v5604_v35, %v5755_v49  ;;  %v4005_v49 = vld [vmem:[%s6513_s3 + $0x50] sm:$0xf]  ;;  %v5053_v58 = vld [vmem:[%s6513_s3 + $0x54] sm:$0xf0] }
  0xd4   :  { %v725_v36 = vpack.c.bf16 %v690_v30, %v689_v32  ;;  %v4021_v32 = vld [vmem:[%s6513_s3 + $0x70] sm:$0xf]  ;;  %v4006_v63 = vor.u32 %v5053_v58, %v4005_v49 }
  0xd5   :  { %v4022_v37 = vor.u32 %v5057_v33, %v4021_v32  ;;  %v276_v60 = vadd.f32 %v244_v50, %v5611_v39  ;;  %v5924_v32 = vld [vmem:[%s6514_s4 + $0x1] ss:$0 sm:$0xff]  ;;  %v5929_v33 = vld [vmem:[%s6512_s0 + $0xf0] sm:$0xff] }
  0xd6   :  { %v128_v46 = vpop.permute.xlu1 %127  ;;  %3990 = vmatmul.msk.bf16.gmra.mxu0 %vm762_vm0, %v725_v36 }
  0xd7   :  { %v242_v48 = vmul.f32 %v5604_v35, %v128_v46  ;;  %1142 = vmatpush.bf16.msra.mxu2 %v4050_v9  ;;  %v5055_v46 = vld [vmem:[%s6513_s3 + $0x64] sm:$0xf0] }
  0xd8   :  { %5370 = vset.pattern.permute.xlu1 %v5454_v1 }
  0xd9   :  { %v274_v57 = vadd.f32 %v242_v48, %v5611_v39  ;;  %182 = vperm.xlu1 %5370, %v5711_v2   ;;  %v5054_v48 = vld [vmem:[%s6513_s3 + $0x64] sm:$0xf] }
  0xda   :  { %5371 = vset.pattern.permute.xlu2 %v5454_v1  ;;  %v4018_v56 = vor.u32 %v5054_v48, %v4015_v55 }
  0xdb   :  { %187 = vperm.xlu2 %5371, %v5772_v54   ;;  %v467_v4 = vadd.f32 %v435_v53, %v274_v57  ;;  %v538_v20 = vpop.permute.xlu2 %537  ;;  %1143 = vmatpush.bf16.msra.mxu2 %v4042_v18  ;;  %v59_v53 = vld [vmem:[%s6512_s0 + $0xc0] sm:$0xff]  ;;  %v542_v57 = vpop.permute.xlu0 %541 }
  0xdc   :  { %v629_v62 = vmul.f32 %v5617_v42, %v538_v20  ;;  %v630_v9 = vmul.f32 %v5617_v42, %v542_v57  ;;  %v5906_v20 = vld [vmem:[%s6512_s0 + $0xe8] sm:$0xff] }
  0xdd   :  { %v660_v19 = vadd.f32 %v628_v5, %v467_v4  ;;  %v4007_v4 = vld [vmem:[%s6513_s3 + $0x58] sm:$0xf0] }
  0xde   :  { %v4010_v6 = vor.u32 %v5052_v59, %v4007_v4 }
  0xdf   :  { %v530_v17 = vpop.permute.xlu1 %529  ;;  %v692_v25 = vmax.f32 %v660_v19, 0.0  ;;  %1144 = vmatpush.bf16.msra.mxu2 %v4034_v29 }
  0xe0   :  { %v627_v8 = vmul.f32 %v5617_v42, %v530_v17  ;;  %v5896_v17 = vld [vmem:[%s6512_s0 + $0xe0] sm:$0xff] }
  0xe1   :  { %5372 = vset.pattern.permute.xlu1 %v5453_v0  ;;  %408 = vperm.xlu0 %5383, %v5896_v17  }
  0xe2   :  { %v659_v21 = vadd.f32 %v627_v8, %v466_v13  ;;  %384 = vperm.xlu1 %5372, %v5711_v2   ;;  %v4030_v2 = vor.u32 %v5059_v23, %v4029_v22 }
  0xe3   :  { %5373 = vset.pattern.permute.xlu2 %v5453_v0  ;;  %1145 = vmatpush.bf16.msra.mxu2 %v4026_v44 }
  0xe4   :  { %v691_v26 = vmax.f32 %v659_v21, 0.0  ;;  %388 = vperm.xlu2 %5373, %v5772_v54   ;;  %1055 = vmatpush.bf16.msra.mxu1 %v4030_v2  ;;  %v148_v43 = vpop.permute.xlu2 %147 }
  0xe5   :  { %v246_v23 = vmul.f32 %v5604_v35, %v148_v43 }
  0xe6   :  { %v726_v30 = vpack.c.bf16 %v692_v25, %v691_v26  ;;  %v546_v25 = vpop.permute.xlu0 %545 }
  0xe7   :  { %1146 = vmatpush.bf16.msra.mxu2 %v4018_v56  ;;  %v278_v27 = vadd.f32 %v246_v23, %v5611_v39 }
  0xe8   :  { %v133_v36 = vpop.permute.xlu1 %132  ;;  %3991 = vmatmul.msk.bf16.gmra.mxu0 %vm762_vm0, %v726_v30  ;;  %1056 = vmatpush.bf16.msra.mxu1 %v4022_v37  ;;  %v631_v30 = vmul.f32 %v5617_v42, %v546_v25 }
  0xe9   :  { %v243_v41 = vmul.f32 %v5604_v35, %v133_v36  ;;  %5390 = vset.pattern.permute.xlu0 %v5455_v3 }
  0xea   :  { %5374 = vset.pattern.permute.xlu1 %v5455_v3  ;;  %605 = vperm.xlu0 %5390, %v5906_v20  }
  0xeb   :  { %581 = vperm.xlu1 %5374, %v5772_v54   ;;  %v275_v51 = vadd.f32 %v243_v41, %v5611_v39  ;;  %v4014_v54 = vor.u32 %v5055_v46, %v4013_v45  ;;  %1147 = vmatpush.bf16.msra.mxu2 %v4010_v6 }
  0xec   :  { %5375 = vset.pattern.permute.xlu2 %v5454_v1 }
  0xed   :  { %192 = vperm.xlu2 %5375, %v59_v53   ;;  %1057 = vmatpush.bf16.msra.mxu1 %v4014_v54  ;;  %v468_v61 = vadd.f32 %v436_v52, %v275_v51  ;;  %v357_v11 = vpop.permute.xlu2 %356 }
  0xee   :  { %v439_v28 = vmul.f32 %v5614_v40, %v357_v11  ;;  %v158_v43 = vpop.permute.xlu0 %157 }
  0xef   :  { %v661_v12 = vadd.f32 %v629_v62, %v468_v61  ;;  %v248_v48 = vmul.f32 %v5604_v35, %v158_v43 }
  0xf0   :  { %v471_v36 = vadd.f32 %v439_v28, %v278_v27  ;;  %v66_v28 = vld [vmem:[%s6512_s0 + $0xf8] sm:$0xff] }
  0xf1   :  { %v349_v5 = vpop.permute.xlu1 %348  ;;  %1058 = vmatpush.bf16.msra.mxu1 %v4006_v63  ;;  %v693_v15 = vmax.f32 %v661_v12, 0.0 }
  0xf2   :  { %v437_v7 = vmul.f32 %v5614_v40, %v349_v5  ;;  %609 = vperm.xlu0 %5390, %v5929_v33  }
  0xf3   :  { %5377 = vset.pattern.permute.xlu1 %v5453_v0 }
  0xf4   :  { %v469_v13 = vadd.f32 %v437_v7, %v276_v60  ;;  %392 = vperm.xlu1 %5377, %v59_v53  }
  0xf5   :  { %5378 = vset.pattern.permute.xlu2 %v5453_v0 }
  0xf6   :  { %v662_v14 = vadd.f32 %v630_v9, %v469_v13  ;;  %396 = vperm.xlu2 %5378, %v5752_v47   ;;  %v153_v8 = vpop.permute.xlu2 %152  ;;  %v163_v4 = vpop.permute.xlu0 %162 }
  0xf7   :  { %v247_v59 = vmul.f32 %v5604_v35, %v153_v8 }
  0xf8   :  { %v694_v16 = vmax.f32 %v662_v14, 0.0 }
  0xf9   :  { %v279_v61 = vadd.f32 %v247_v59, %v5611_v39 }
  0xfa   :  { %v143_v18 = vpop.permute.xlu1 %142  ;;  %v727_v19 = vpack.c.bf16 %v694_v16, %v693_v15 }
  0xfb   :  { %v245_v21 = vmul.f32 %v5604_v35, %v143_v18 }
  0xfc   :  { %5379 = vset.pattern.permute.xlu1 %v5455_v3  ;;  %3992 = vmatmul.msk.bf16.gmra.mxu0 %vm762_vm0, %v727_v19 }
  0xfd   :  { %585 = vperm.xlu1 %5379, %v59_v53   ;;  %v277_v26 = vadd.f32 %v245_v21, %v5611_v39 }
  0xfe   :  { %5380 = vset.pattern.permute.xlu2 %v5455_v3  ;;  %v373_v23 = vpop.permute.xlu0 %372 }
  0xff   :  { %589 = vperm.xlu2 %5380, %v5752_v47   ;;  %v365_v2 = vpop.permute.xlu2 %364 }
 0x100   :  { %v441_v57 = vmul.f32 %v5614_v40, %v365_v2 }
 0x103   :  { %v353_v22 = vpop.permute.xlu1 %352 }
 0x104   :  { %v438_v24 = vmul.f32 %v5614_v40, %v353_v22 }
 0x105   :  { %5381 = vset.pattern.permute.xlu1 %v5454_v1 }
 0x106   :  { %207 = vperm.xlu1 %5381, %v5834_v31   ;;  %v820_v47 = vpop.f32.mrf.mxu0  ;;  %v470_v29 = vadd.f32 %v438_v24, %v277_v26  ;;  %v249_v24 = vmul.f32 %v5604_v35, %v163_v4 }
 0x107   :  { %5382 = vset.pattern.permute.xlu2 %v5453_v0  ;;  %v821_v38 = vadd.f32 %v820_v47, %v5924_v32 }
 0x108   :  { %400 = vperm.xlu2 %5382, %v5799_v10   ;;  %v663_v37 = vadd.f32 %v631_v30, %v470_v29  ;;  %v558_v54 = vpop.permute.xlu2 %557 }
 0x109   :  { %v900_v51 = vmax.f32 %v821_v38, 0.0 }
 0x10a   :  { %v695_v50 = vmax.f32 %v663_v37, 0.0 }
 0x10c   :  { %v550_v34 = vpop.permute.xlu1 %549 }
 0x10d   :  { %v632_v41 = vmul.f32 %v5617_v42, %v550_v34 }
 0x10e   :  { %5384 = vset.pattern.permute.xlu1 %v5455_v3  ;;  %v822_v44 = vpop.f32.mrf.mxu0 }
 0x10f   :  { %v664_v45 = vadd.f32 %v632_v41, %v471_v36  ;;  %v823_v46 = vadd.f32 %v822_v44, %v5924_v32  ;;  %593 = vperm.xlu1 %5384, %v5799_v10   ;;  %v280_v10 = vadd.f32 %v248_v48, %v5611_v39 }
 0x110   :  { %5385 = vset.pattern.permute.xlu2 %v5455_v3 }
 0x111   :  { %v696_v52 = vmax.f32 %v664_v45, 0.0  ;;  %v901_v53 = vmax.f32 %v823_v46, 0.0  ;;  %597 = vperm.xlu2 %5385, %v5834_v31   ;;  %v473_v60 = vadd.f32 %v441_v57, %v280_v10  ;;  %v634_v31 = vmul.f32 %v5617_v42, %v558_v54  ;;  %v369_v63 = vpop.permute.xlu2 %368 }
 0x112   :  { %v442_v27 = vmul.f32 %v5614_v40, %v369_v63 }
 0x113   :  { %v728_v55 = vpack.c.bf16 %v696_v52, %v695_v50  ;;  %v948_v56 = vpack.c.bf16 %v901_v53, %v900_v51  ;;  %v666_v6 = vadd.f32 %v634_v31, %v473_v60  ;;  %v377_v53 = vpop.permute.xlu0 %376 }
 0x115   :  { %v361_v49 = vpop.permute.xlu1 %360  ;;  %3993 = vmatmul.msk.bf16.gmra.mxu0 %vm762_vm0, %v728_v55  ;;  %1059 = vmatmul.bf16.vlgmr.msra.gmra.mxu1 %v948_v56  ;;  %v698_v15 = vmax.f32 %v666_v6, 0.0 }
 0x116   :  { %1148 = vmatmul.bf16.vlgmr.msra.gmra.mxu2 %v948_v56  ;;  %v825_v58 = vpop.f32.mrf.mxu0  ;;  %v440_v62 = vmul.f32 %v5614_v40, %v361_v49  ;;  %v444_v49 = vmul.f32 %v5614_v40, %v377_v53 }
 0x117   :  { %5386 = vset.pattern.permute.xlu1 %v5454_v1  ;;  %v826_v5 = vadd.f32 %v825_v58, %v5924_v32 }
 0x118   :  { %212 = vperm.xlu1 %5386, %v5896_v17   ;;  %v472_v11 = vadd.f32 %v440_v62, %v279_v61 }
 0x119   :  { %5387 = vset.pattern.permute.xlu2 %v5454_v1  ;;  %v902_v14 = vmax.f32 %v826_v5, 0.0 }
 0x11a   :  { %217 = vperm.xlu2 %5387, %v5906_v20   ;;  %v566_v22 = vpop.permute.xlu2 %565 }
 0x11b   :  { %v636_v30 = vmul.f32 %v5617_v42, %v566_v22  ;;  %v574_v58 = vpop.permute.xlu0 %573 }
 0x11e   :  { %v554_v7 = vpop.permute.xlu1 %553  ;;  %v827_v9 = vpop.f32.mrf.mxu0 }
 0x11f   :  { %v633_v12 = vmul.f32 %v5617_v42, %v554_v7  ;;  %v828_v13 = vadd.f32 %v827_v9, %v5924_v32 }
 0x120   :  { %5388 = vset.pattern.permute.xlu1 %v5453_v0 }
 0x121   :  { %v665_v16 = vadd.f32 %v633_v12, %v472_v11  ;;  %v903_v18 = vmax.f32 %v828_v13, 0.0  ;;  %412 = vperm.xlu1 %5388, %v5906_v20   ;;  %v443_v20 = vmul.f32 %v5614_v40, %v373_v23 }
 0x122   :  { %5389 = vset.pattern.permute.xlu2 %v5455_v3 }
 0x123   :  { %v697_v19 = vmax.f32 %v665_v16, 0.0  ;;  %v949_v8 = vpack.c.bf16 %v903_v18, %v902_v14  ;;  %601 = vperm.xlu2 %5389, %v5896_v17   ;;  %v281_v17 = vadd.f32 %v249_v24, %v5611_v39  ;;  %v178_v34 = vpop.permute.xlu2 %177 }
 0x125   :  { %1064 = vmatmul.bf16.gmra.mxu1 %v949_v8  ;;  %v729_v21 = vpack.c.bf16 %v698_v15, %v697_v19  ;;  %v474_v36 = vadd.f32 %v442_v27, %v281_v17 }
 0x126   :  { %1153 = vmatmul.bf16.gmra.mxu2 %v949_v8 }
 0x127   :  { %v168_v25 = vpop.permute.xlu1 %167  ;;  %3994 = vmatmul.msk.bf16.gmra.mxu0 %vm762_vm0, %v729_v21 }
 0x128   :  { %v250_v47 = vmul.f32 %v5604_v35, %v168_v25  ;;  %v830_v26 = vpop.f32.mrf.mxu0 }
 0x129   :  { %5391 = vset.pattern.permute.xlu1 %v5454_v1  ;;  %v831_v37 = vadd.f32 %v830_v26, %v5924_v32  ;;  %v578_v26 = vpop.permute.xlu0 %577 }
 0x12a   :  { %v282_v2 = vadd.f32 %v250_v47, %v5611_v39  ;;  %222 = vperm.xlu1 %5391, %v5929_v33  }
 0x12b   :  { %5392 = vset.pattern.permute.xlu2 %v5454_v1  ;;  %v904_v46 = vmax.f32 %v831_v37, 0.0 }
 0x12c   :  { %227 = vperm.xlu2 %5392, %v66_v28   ;;  %v475_v29 = vadd.f32 %v443_v20, %v282_v2  ;;  %v570_v55 = vpop.permute.xlu2 %569 }
 0x12d   :  { %v637_v31 = vmul.f32 %v5617_v42, %v570_v55 }
 0x12e   :  { %v668_v43 = vadd.f32 %v636_v30, %v475_v29  ;;  %v639_v29 = vmul.f32 %v5617_v42, %v578_v26 }
 0x130   :  { %v562_v38 = vpop.permute.xlu1 %561  ;;  %v832_v41 = vpop.f32.mrf.mxu0  ;;  %v700_v50 = vmax.f32 %v668_v43, 0.0 }
 0x131   :  { %v635_v44 = vmul.f32 %v5617_v42, %v562_v38  ;;  %v833_v45 = vadd.f32 %v832_v41, %v5924_v32 }
 0x132   :  { %5393 = vset.pattern.permute.xlu1 %v5453_v0 }
 0x133   :  { %v667_v48 = vadd.f32 %v635_v44, %v474_v36  ;;  %v905_v1 = vmax.f32 %v833_v45, 0.0  ;;  %416 = vperm.xlu1 %5393, %v5929_v33   ;;  %v252_v33 = vmul.f32 %v5604_v35, %v178_v34 }
 0x134   :  { %5394 = vset.pattern.permute.xlu2 %v5453_v0 }
 0x135   :  { %v699_v51 = vmax.f32 %v667_v48, 0.0  ;;  %v950_v52 = vpack.c.bf16 %v905_v1, %v904_v46  ;;  %420 = vperm.xlu2 %5394, %v66_v28   ;;  %v188_v10 = vpop.permute.xlu2 %187  ;;  %v284_v59 = vadd.f32 %v252_v33, %v5611_v39  ;;  %v198_v46 = vpop.permute.xlu0 %197 }
 0x136   :  { %v254_v25 = vmul.f32 %v5604_v35, %v188_v10 }
 0x137   :  { %1069 = vmatmul.bf16.gmra.mxu1 %v950_v52  ;;  %1158 = vmatmul.bf16.gmra.mxu2 %v950_v52  ;;  %v730_v54 = vpack.c.bf16 %v700_v50, %v699_v51  ;;  %v256_v52 = vmul.f32 %v5604_v35, %v198_v46 }
 0x138   :  { %v286_v2 = vadd.f32 %v254_v25, %v5611_v39 }
 0x139   :  { %v173_v56 = vpop.permute.xlu1 %172  ;;  %3995 = vmatmul.msk.bf16.gmra.mxu0 %vm762_vm0, %v730_v54 }
 0x13a   :  { %v251_v57 = vmul.f32 %v5604_v35, %v173_v56 }
 0x13b   :  { %5395 = vset.pattern.permute.xlu1 %v5455_v3  ;;  %v638_v3 = vmul.f32 %v5617_v42, %v574_v58 }
 0x13c   :  { %613 = vperm.xlu1 %5395, %v66_v28   ;;  %v283_v0 = vadd.f32 %v251_v57, %v5611_v39  ;;  %v288_v57 = vadd.f32 %v256_v52, %v5611_v39 }
 0x13e   :  { %v476_v60 = vadd.f32 %v444_v49, %v283_v0  ;;  %v389_v13 = vpop.permute.xlu2 %388 }
 0x13f   :  { %v447_v17 = vmul.f32 %v5614_v40, %v389_v13 }
 0x140   :  { %v669_v4 = vadd.f32 %v637_v31, %v476_v60 }
 0x141   :  { %v835_v61 = vpop.f32.mrf.mxu0  ;;  %v479_v36 = vadd.f32 %v447_v17, %v286_v2 }
 0x142   :  { %v381_v62 = vpop.permute.xlu1 %380  ;;  %v836_v7 = vadd.f32 %v835_v61, %v5924_v32  ;;  %v701_v9 = vmax.f32 %v669_v4, 0.0  ;;  %v203_v61 = vpop.permute.xlu0 %202 }
 0x143   :  { %v445_v63 = vmul.f32 %v5614_v40, %v381_v62 }
 0x144   :  { %v906_v18 = vmax.f32 %v836_v7, 0.0 }
 0x145   :  { %v477_v5 = vadd.f32 %v445_v63, %v284_v59 }
 0x147   :  { %v670_v6 = vadd.f32 %v638_v3, %v477_v5  ;;  %v193_v22 = vpop.permute.xlu2 %192 }
 0x148   :  { %v255_v0 = vmul.f32 %v5604_v35, %v193_v22  ;;  %v6019_v22 = vld [vmem:[%s6514_s4] ss:$0 sm:$0xff] }
 0x149   :  { %v702_v11 = vmax.f32 %v670_v6, 0.0  ;;  %v837_v12 = vpop.f32.mrf.mxu0 }
 0x14a   :  { %v838_v14 = vadd.f32 %v837_v12, %v5924_v32  ;;  %v287_v58 = vadd.f32 %v255_v0, %v5611_v39 }
 0x14b   :  { %v183_v15 = vpop.permute.xlu1 %182  ;;  %v731_v16 = vpack.c.bf16 %v702_v11, %v701_v9 }
 0x14c   :  { %v907_v19 = vmax.f32 %v838_v14, 0.0  ;;  %v253_v23 = vmul.f32 %v5604_v35, %v183_v15  ;;  %v405_v15 = vpop.permute.xlu0 %404 }
 0x14d   :  { %3996 = vmatmul.msk.bf16.gmra.mxu0 %vm762_vm0, %v731_v16 }
 0x14e   :  { %v951_v8 = vpack.c.bf16 %v907_v19, %v906_v18  ;;  %v285_v20 = vadd.f32 %v253_v23, %v5611_v39 }
 0x150   :  { %1074 = vmatmul.bf16.gmra.mxu1 %v951_v8  ;;  %1163 = vmatmul.bf16.gmra.mxu2 %v951_v8  ;;  %v397_v38 = vpop.permute.xlu2 %396  ;;  %v257_v8 = vmul.f32 %v5604_v35, %v203_v61 }
 0x151   :  { %v449_v55 = vmul.f32 %v5614_v40, %v397_v38 }
 0x152   :  { %v289_v25 = vadd.f32 %v6019_v22, %v257_v8 }
 0x153   :  { %v840_v21 = vpop.f32.mrf.mxu0  ;;  %v481_v49 = vadd.f32 %v449_v55, %v288_v57 }
 0x154   :  { %v385_v24 = vpop.permute.xlu1 %384  ;;  %v841_v27 = vadd.f32 %v840_v21, %v5924_v32  ;;  %v451_v21 = vmul.f32 %v5614_v40, %v405_v15  ;;  %v409_v46 = vpop.permute.xlu0 %408 }
 0x155   :  { %v446_v47 = vmul.f32 %v5614_v40, %v385_v24 }
 0x156   :  { %v908_v41 = vmax.f32 %v841_v27, 0.0 }
 0x157   :  { %v478_v28 = vadd.f32 %v446_v47, %v285_v20 }
 0x159   :  { %v671_v43 = vadd.f32 %v639_v29, %v478_v28  ;;  %v590_v33 = vpop.permute.xlu2 %589 }
 0x15a   :  { %v642_v10 = vmul.f32 %v5617_v42, %v590_v33 }
 0x15b   :  { %v842_v30 = vpop.f32.mrf.mxu0  ;;  %v703_v50 = vmax.f32 %v671_v43, 0.0 }
 0x15c   :  { %v843_v34 = vadd.f32 %v842_v30, %v5924_v32  ;;  %v674_v62 = vadd.f32 %v642_v10, %v481_v49  ;;  %v606_v55 = vpop.permute.xlu0 %605 }
 0x15d   :  { %v582_v37 = vpop.permute.xlu1 %581 }
 0x15e   :  { %v909_v44 = vmax.f32 %v843_v34, 0.0  ;;  %v640_v45 = vmul.f32 %v5617_v42, %v582_v37  ;;  %v706_v11 = vmax.f32 %v674_v62, 0.0 }
 0x160   :  { %v672_v48 = vadd.f32 %v640_v45, %v479_v36  ;;  %v952_v1 = vpack.c.bf16 %v909_v44, %v908_v41 }
 0x162   :  { %v704_v51 = vmax.f32 %v672_v48, 0.0  ;;  %1079 = vmatmul.bf16.gmra.mxu1 %v952_v1  ;;  %1168 = vmatmul.bf16.gmra.mxu2 %v952_v1  ;;  %v401_v9 = vpop.permute.xlu2 %400 }
 0x163   :  { %v450_v47 = vmul.f32 %v5614_v40, %v401_v9  ;;  %v4002_v9 = vld [vmem:[%s6514_s4 + $0x2] ss:$8 sm:$0x3] }
 0x164   :  { %v732_v53 = vpack.c.bf16 %v704_v51, %v703_v50  ;;  %v6045_v15 = vperm.slane %v4002_v9, 0 }
 0x165   :  { %v845_v54 = vpop.f32.mrf.mxu0  ;;  %v482_v28 = vadd.f32 %v450_v47, %v289_v25 }
 0x166   :  { %v393_v56 = vpop.permute.xlu1 %392  ;;  %3997 = vmatmul.msk.bf16.gmra.mxu0 %vm762_vm0, %v732_v53  ;;  %v846_v59 = vadd.f32 %v845_v54, %v5924_v32  ;;  %v452_v53 = vmul.f32 %v5614_v40, %v409_v46 }
 0x167   :  { %v448_v60 = vmul.f32 %v5614_v40, %v393_v56 }
 0x168   :  { %v910_v4 = vmax.f32 %v846_v59, 0.0  ;;  %v646_v59 = vmul.f32 %v5617_v42, %v606_v55 }
 0x169   :  { %v480_v5 = vadd.f32 %v448_v60, %v287_v58 }
 0x16b   :  { %v598_v24 = vpop.permute.xlu2 %597 }
 0x16c   :  { %v644_v20 = vmul.f32 %v5617_v42, %v598_v24 }
 0x16d   :  { %v847_v31 = vpop.f32.mrf.mxu0 }
 0x16e   :  { %v848_v63 = vadd.f32 %v847_v31, %v5924_v32 }
 0x16f   :  { %v586_v3 = vpop.permute.xlu1 %585 }
 0x170   :  { %v911_v6 = vmax.f32 %v848_v63, 0.0  ;;  %v641_v7 = vmul.f32 %v5617_v42, %v586_v3 }
 0x172   :  { %v673_v12 = vadd.f32 %v641_v7, %v480_v5  ;;  %v953_v13 = vpack.c.bf16 %v911_v6, %v910_v4 }
 0x174   :  { %v705_v39 = vmax.f32 %v673_v12, 0.0  ;;  %1084 = vmatmul.bf16.gmra.mxu1 %v953_v13  ;;  %1173 = vmatmul.bf16.gmra.mxu2 %v953_v13  ;;  %v218_v41 = vpop.permute.xlu2 %217 }
 0x175   :  { %v260_v51 = vmul.f32 %v5604_v35, %v218_v41 }
 0x176   :  { %v733_v14 = vpack.c.bf16 %v706_v11, %v705_v39 }
 0x177   :  { %v292_v56 = vadd.f32 %v6019_v22, %v260_v51 }
 0x178   :  { %v208_v16 = vpop.permute.xlu1 %207  ;;  %3998 = vmatmul.msk.bf16.gmra.mxu0 %vm762_vm0, %v733_v14 }
 0x179   :  { %v258_v18 = vmul.f32 %v5604_v35, %v208_v16  ;;  %v850_v19 = vpop.f32.mrf.mxu0 }
 0x17a   :  { %v851_v2 = vadd.f32 %v850_v19, %v5924_v32 }
 0x17b   :  { %v290_v23 = vadd.f32 %v6019_v22, %v258_v18 }
 0x17c   :  { %v912_v36 = vmax.f32 %v851_v2, 0.0 }
 0x17d   :  { %v483_v26 = vadd.f32 %v451_v21, %v290_v23  ;;  %v602_v54 = vpop.permute.xlu2 %601 }
 0x17e   :  { %v645_v33 = vmul.f32 %v5617_v42, %v602_v54 }
 0x17f   :  { %v676_v29 = vadd.f32 %v644_v20, %v483_v26  ;;  %v6052_v26 = vperm.slane %v4002_v9, 1 }
 0x181   :  { %v594_v17 = vpop.permute.xlu1 %593  ;;  %v852_v27 = vpop.f32.mrf.mxu0  ;;  %v708_v43 = vmax.f32 %v676_v29, 0.0 }
 0x182   :  { %v643_v30 = vmul.f32 %v5617_v42, %v594_v17  ;;  %v853_v34 = vadd.f32 %v852_v27, %v5924_v32 }
 0x184   :  { %v675_v37 = vadd.f32 %v643_v30, %v482_v28  ;;  %v913_v38 = vmax.f32 %v853_v34, 0.0  ;;  %v610_v34 = vpop.permute.xlu0 %609 }
 0x186   :  { %v707_v44 = vmax.f32 %v675_v37, 0.0  ;;  %v954_v45 = vpack.c.bf16 %v913_v38, %v912_v36  ;;  %v228_v14 = vpop.permute.xlu2 %227 }
 0x187   :  { %v262_v20 = vmul.f32 %v5604_v35, %v228_v14 }
 0x188   :  { %v734_v48 = vpack.c.bf16 %v708_v43, %v707_v44  ;;  %1089 = vmatmul.bf16.gmra.mxu1 %v954_v45  ;;  %1178 = vmatmul.bf16.gmra.mxu2 %v954_v45  ;;  %v647_v45 = vmul.f32 %v5617_v42, %v610_v34 }
 0x189   :  { %v294_v30 = vadd.f32 %v6019_v22, %v262_v20 }
 0x18a   :  { %v213_v1 = vpop.permute.xlu1 %212  ;;  %3999 = vmatmul.msk.bf16.gmra.mxu0 %vm762_vm0, %v734_v48 }
 0x18b   :  { %v259_v50 = vmul.f32 %v5604_v35, %v213_v1 }
 0x18d   :  { %v291_v52 = vadd.f32 %v6019_v22, %v259_v50 }
 0x18f   :  { %v484_v57 = vadd.f32 %v452_v53, %v291_v52  ;;  %v421_v2 = vpop.permute.xlu2 %420 }
 0x190   :  { %v455_v36 = vmul.f32 %v5614_v40, %v421_v2 }
 0x191   :  { %v677_v60 = vadd.f32 %v645_v33, %v484_v57 }
 0x192   :  { %v855_v0 = vpop.f32.mrf.mxu0  ;;  %v1060_v49 = vpop.f32.mrf.mxu1  ;;  %v487_v48 = vadd.f32 %v455_v36, %v294_v30 }
 0x193   :  { %v413_v10 = vpop.permute.xlu1 %412  ;;  %v856_v62 = vadd.f32 %v855_v0, %v5924_v32  ;;  %v709_v3 = vmax.f32 %v677_v60, 0.0  ;;  %v1061_v8 = vadd.f32 %v1060_v49, %v6045_v15 }
 0x194   :  { %v453_v58 = vmul.f32 %v5614_v40, %v413_v10 }
 0x195   :  { %v914_v13 = vmax.f32 %v856_v62, 0.0 }
 0x196   :  { %v485_v31 = vadd.f32 %v453_v58, %v292_v56 }
 0x198   :  { %v678_v61 = vadd.f32 %v646_v59, %v485_v31 }
 0x199   :  { %v1149_v63 = vpop.f32.mrf.mxu2 }
 0x19a   :  { %v710_v4 = vmax.f32 %v678_v61, 0.0  ;;  %v857_v5 = vpop.f32.mrf.mxu0  ;;  %v6038_v6 = vpop.f32.mrf.mxu1  ;;  %v1150_v29 = vadd.f32 %v1149_v63, %v6052_v26 }
 0x19b   :  { %v858_v7 = vadd.f32 %v857_v5, %v5924_v32 }
 0x19c   :  { %v735_v11 = vpack.c.bf16 %v710_v4, %v709_v3  ;;  %v223_v12 = vpop.permute.xlu1 %222 }
 0x19d   :  { %v915_v39 = vmax.f32 %v858_v7, 0.0  ;;  %v261_v24 = vmul.f32 %v5604_v35, %v223_v12 }
 0x19e   :  { %4000 = vmatmul.msk.bf16.gmra.mxu0 %vm762_vm0, %v735_v11 }
 0x19f   :  { %v955_v16 = vpack.c.bf16 %v915_v39, %v914_v13  ;;  %v293_v27 = vadd.f32 %v6019_v22, %v261_v24 }
 0x1a1   :  { %v6047_v18 = vpop.f32.mrf.mxu2  ;;  %1094 = vmatmul.bf16.gmra.mxu1 %v955_v16  ;;  %1183 = vmatmul.bf16.gmra.mxu2 %v955_v16 }
 0x1a2   :  { %v1065_v19 = vpop.f32.mrf.mxu1 }
 0x1a3   :  { %v1066_v21 = vadd.f32 %v1065_v19, %v6045_v15 }
 0x1a4   :  { %v860_v23 = vpop.f32.mrf.mxu0 }
 0x1a5   :  { %v1229_v25 = vmax.f32 %v1061_v8, %v1066_v21  ;;  %v417_v47 = vpop.permute.xlu1 %416  ;;  %v861_v38 = vadd.f32 %v860_v23, %v5924_v32 }
 0x1a6   :  { %v454_v17 = vmul.f32 %v5614_v40, %v417_v47 }
 0x1a7   :  { %v916_v50 = vmax.f32 %v861_v38, 0.0 }
 0x1a8   :  { %v486_v41 = vadd.f32 %v454_v17, %v293_v27 }
 0x1a9   :  { %v1154_v28 = vpop.f32.mrf.mxu2 }
 0x1aa   :  { %v1155_v37 = vadd.f32 %v1154_v28, %v6052_v26  ;;  %v6062_v35 = vpop.f32.mrf.mxu1  ;;  %v679_v22 = vadd.f32 %v647_v45, %v486_v41 }
 0x1ab   :  { %v1068_v45 = vadd.f32 %v6062_v35, %v6045_v15 }
 0x1ac   :  { %v1250_v43 = vmax.f32 %v1150_v29, %v1155_v37  ;;  %v862_v44 = vpop.f32.mrf.mxu0  ;;  %v711_v55 = vmax.f32 %v679_v22, 0.0 }
 0x1ad   :  { %v863_v46 = vadd.f32 %v862_v44, %v5924_v32 }
 0x1ae   :  { %v614_v1 = vpop.permute.xlu1 %613 }
 0x1af   :  { %v917_v51 = vmax.f32 %v863_v46, 0.0  ;;  %v648_v40 = vmul.f32 %v5617_v42, %v614_v1  ;;  %v1063_v1 = vadd.f32 %v6038_v6, %v6045_v15  ;;  %v1152_v6 = vadd.f32 %v6047_v18, %v6052_v26 }
 0x1b1   :  { %v680_v52 = vadd.f32 %v648_v40, %v487_v48  ;;  %v956_v53 = vpack.c.bf16 %v917_v51, %v916_v50  ;;  %v6067_v54 = vpop.f32.mrf.mxu2  ;;  %v1230_v51 = vmax.f32 %v1063_v1, %v1068_v45 }
 0x1b3   :  { %v712_v56 = vmax.f32 %v680_v52, 0.0  ;;  %1099 = vmatmul.bf16.gmra.mxu1 %v956_v53  ;;  %1188 = vmatmul.bf16.gmra.mxu2 %v956_v53  ;;  %v1157_v53 = vadd.f32 %v6067_v54, %v6052_v26 }
 0x1b4   :  { %v1070_v57 = vpop.f32.mrf.mxu1 }
 0x1b5   :  { %v736_v33 = vpack.c.bf16 %v712_v56, %v711_v55  ;;  %v1071_v0 = vadd.f32 %v1070_v57, %v6045_v15 }
 0x1b6   :  { %v865_v49 = vpop.f32.mrf.mxu0 }
 0x1b7   :  { %v1231_v10 = vmax.f32 %v1229_v25, %v1071_v0  ;;  %4001 = vmatmul.msk.bf16.gmra.mxu0 %vm762_vm0, %v736_v33  ;;  %v866_v42 = vadd.f32 %v865_v49, %v5924_v32 }
 0x1b9   :  { %v918_v62 = vmax.f32 %v866_v42, 0.0 }
 0x1ba   :  { %v1159_v58 = vpop.f32.mrf.mxu2 }
 0x1bb   :  { %v1160_v59 = vadd.f32 %v1159_v58, %v6052_v26 }
 0x1bc   :  { %v1072_v4 = vpop.f32.mrf.mxu1 }
 0x1bd   :  { %v1252_v60 = vmax.f32 %v1250_v43, %v1160_v59  ;;  %v1073_v50 = vadd.f32 %v1072_v4, %v6045_v15 }
 0x1be   :  { %v867_v31 = vpop.f32.mrf.mxu0 }
 0x1bf   :  { %v868_v61 = vadd.f32 %v867_v31, %v5924_v32  ;;  %v1232_v35 = vmax.f32 %v1230_v51, %v1073_v50 }
 0x1c1   :  { %v919_v63 = vmax.f32 %v868_v61, 0.0 }
 0x1c2   :  { %v1161_v7 = vpop.f32.mrf.mxu2 }
 0x1c3   :  { %v957_v3 = vpack.c.bf16 %v919_v63, %v918_v62  ;;  %v1162_v33 = vadd.f32 %v1161_v7, %v6052_v26 }
 0x1c5   :  { %1104 = vmatmul.bf16.gmra.mxu1 %v957_v3  ;;  %1193 = vmatmul.bf16.gmra.mxu2 %v957_v3 }
 0x1ca   :  { %v870_v5 = vpop.f32.mrf.mxu0 }
 0x1cb   :  { %v871_v13 = vadd.f32 %v870_v5, %v5924_v32 }
 0x1cd   :  { %v1075_v9 = vpop.f32.mrf.mxu1  ;;  %v920_v8 = vmax.f32 %v871_v13, 0.0 }
 0x1ce   :  { %v1076_v11 = vadd.f32 %v1075_v9, %v6045_v15 }
 0x1d0   :  { %v1233_v12 = vmax.f32 %v1231_v10, %v1076_v11  ;;  %v1251_v10 = vmax.f32 %v1152_v6, %v1157_v53 }
 0x1d2   :  { %v872_v39 = vpop.f32.mrf.mxu0  ;;  %v1253_v31 = vmax.f32 %v1251_v10, %v1162_v33 }
 0x1d3   :  { %v873_v14 = vadd.f32 %v872_v39, %v5924_v32  ;;  %v1164_v16 = vpop.f32.mrf.mxu2 }
 0x1d4   :  { %v1165_v19 = vadd.f32 %v1164_v16, %v6052_v26 }
 0x1d5   :  { %v921_v21 = vmax.f32 %v873_v14, 0.0  ;;  %v1077_v24 = vpop.f32.mrf.mxu1 }
 0x1d6   :  { %v1254_v23 = vmax.f32 %v1252_v60, %v1165_v19  ;;  %v1078_v40 = vadd.f32 %v1077_v24, %v6045_v15 }
 0x1d7   :  { %v958_v25 = vpack.c.bf16 %v921_v21, %v920_v8 }
 0x1d8   :  { %v1234_v0 = vmax.f32 %v1232_v35, %v1078_v40 }
 0x1d9   :  { %1109 = vmatmul.bf16.gmra.mxu1 %v958_v25  ;;  %1198 = vmatmul.bf16.gmra.mxu2 %v958_v25 }
 0x1db   :  { %v1166_v47 = vpop.f32.mrf.mxu2 }
 0x1dc   :  { %v1167_v59 = vadd.f32 %v1166_v47, %v6052_v26 }
 0x1de   :  { %v1255_v3 = vmax.f32 %v1253_v31, %v1167_v59 }
 0x1df   :  { %v1080_v20 = vpop.f32.mrf.mxu1 }
 0x1e0   :  { %v1081_v2 = vadd.f32 %v1080_v20, %v6045_v15 }
 0x1e2   :  { %v1235_v17 = vmax.f32 %v1233_v12, %v1081_v2 }
 0x1e3   :  { %v875_v27 = vpop.f32.mrf.mxu0 }
 0x1e4   :  { %v876_v36 = vadd.f32 %v875_v27, %v5924_v32 }
 0x1e5   :  { %v1169_v28 = vpop.f32.mrf.mxu2 }
 0x1e6   :  { %v1170_v29 = vadd.f32 %v1169_v28, %v6052_v26  ;;  %v922_v41 = vmax.f32 %v876_v36, 0.0 }
 0x1e7   :  { %v1082_v34 = vpop.f32.mrf.mxu1 }
 0x1e8   :  { %v1256_v30 = vmax.f32 %v1254_v23, %v1170_v29  ;;  %v1083_v56 = vadd.f32 %v1082_v34, %v6045_v15 }
 0x1ea   :  { %v1236_v42 = vmax.f32 %v1234_v0, %v1083_v56 }
 0x1eb   :  { %v877_v37 = vpop.f32.mrf.mxu0 }
 0x1ec   :  { %v878_v38 = vadd.f32 %v877_v37, %v5924_v32 }
 0x1ed   :  { %v1171_v44 = vpop.f32.mrf.mxu2 }
 0x1ee   :  { %v923_v43 = vmax.f32 %v878_v38, 0.0  ;;  %v1172_v61 = vadd.f32 %v1171_v44, %v6052_v26 }
 0x1f0   :  { %v959_v46 = vpack.c.bf16 %v923_v43, %v922_v41  ;;  %v1257_v7 = vmax.f32 %v1255_v3, %v1172_v61 }
 0x1f1   :  { %v1085_v48 = vpop.f32.mrf.mxu1 }
 0x1f2   :  { %v1086_v22 = vadd.f32 %v1085_v48, %v6045_v15  ;;  %1114 = vmatmul.bf16.gmra.mxu1 %v959_v46  ;;  %1203 = vmatmul.bf16.gmra.mxu2 %v959_v46 }
 0x1f4   :  { %v1237_v52 = vmax.f32 %v1235_v17, %v1086_v22 }
 0x1f5   :  { %v880_v55 = vpop.f32.mrf.mxu0 }
 0x1f6   :  { %v881_v62 = vadd.f32 %v880_v55, %v5924_v32 }
 0x1f7   :  { %v1174_v57 = vpop.f32.mrf.mxu2 }
 0x1f8   :  { %v1175_v49 = vadd.f32 %v1174_v57, %v6052_v26  ;;  %v924_v9 = vmax.f32 %v881_v62, 0.0 }
 0x1f9   :  { %v1087_v58 = vpop.f32.mrf.mxu1 }
 0x1fa   :  { %v1258_v60 = vmax.f32 %v1256_v30, %v1175_v49  ;;  %v1088_v54 = vadd.f32 %v1087_v58, %v6045_v15 }
 0x1fc   :  { %v1238_v18 = vmax.f32 %v1236_v42, %v1088_v54 }
 0x1fd   :  { %v882_v63 = vpop.f32.mrf.mxu0 }
 0x1fe   :  { %v883_v4 = vadd.f32 %v882_v63, %v5924_v32 }
 0x1ff   :  { %v1176_v5 = vpop.f32.mrf.mxu2 }
 0x200   :  { %v925_v11 = vmax.f32 %v883_v4, 0.0  ;;  %v1177_v12 = vadd.f32 %v1176_v5, %v6052_v26 }
 0x202   :  { %v960_v13 = vpack.c.bf16 %v925_v11, %v924_v9  ;;  %v1259_v39 = vmax.f32 %v1257_v7, %v1177_v12 }
 0x204   :  { %1119 = vmatmul.bf16.gmra.mxu1 %v960_v13  ;;  %1208 = vmatmul.bf16.gmra.mxu2 %v960_v13 }
 0x205   :  { %v1090_v14 = vpop.f32.mrf.mxu1 }
 0x206   :  { %v1091_v16 = vadd.f32 %v1090_v14, %v6045_v15 }
 0x207   :  { %v885_v19 = vpop.f32.mrf.mxu0 }
 0x208   :  { %v1239_v8 = vmax.f32 %v1237_v52, %v1091_v16  ;;  %v886_v25 = vadd.f32 %v885_v19, %v5924_v32 }
 0x20a   :  { %v926_v28 = vmax.f32 %v886_v25, 0.0 }
 0x20b   :  { %v1179_v21 = vpop.f32.mrf.mxu2 }
 0x20c   :  { %v1180_v23 = vadd.f32 %v1179_v21, %v6052_v26 }
 0x20d   :  { %v1092_v24 = vpop.f32.mrf.mxu1 }
 0x20e   :  { %v1260_v47 = vmax.f32 %v1258_v60, %v1180_v23  ;;  %v1093_v20 = vadd.f32 %v1092_v24, %v6045_v15 }
 0x20f   :  { %v887_v2 = vpop.f32.mrf.mxu0 }
 0x210   :  { %v1240_v17 = vmax.f32 %v1238_v18, %v1093_v20  ;;  %v888_v27 = vadd.f32 %v887_v2, %v5924_v32 }
 0x212   :  { %v927_v29 = vmax.f32 %v888_v27, 0.0 }
 0x213   :  { %v1181_v30 = vpop.f32.mrf.mxu2 }
 0x214   :  { %v961_v34 = vpack.c.bf16 %v927_v29, %v926_v28  ;;  %v1182_v36 = vadd.f32 %v1181_v30, %v6052_v26 }
 0x216   :  { %v1261_v37 = vmax.f32 %v1259_v39, %v1182_v36  ;;  %1124 = vmatmul.bf16.gmra.mxu1 %v961_v34  ;;  %1213 = vmatmul.bf16.gmra.mxu2 %v961_v34 }
 0x21b   :  { %v890_v38 = vpop.f32.mrf.mxu0 }
 0x21c   :  { %v891_v45 = vadd.f32 %v890_v38, %v5924_v32 }
 0x21e   :  { %v1095_v41 = vpop.f32.mrf.mxu1  ;;  %v928_v22 = vmax.f32 %v891_v45, 0.0 }
 0x21f   :  { %v1096_v43 = vadd.f32 %v1095_v41, %v6045_v15 }
 0x221   :  { %v1241_v44 = vmax.f32 %v1239_v8, %v1096_v43 }
 0x223   :  { %v892_v46 = vpop.f32.mrf.mxu0 }
 0x224   :  { %v893_v48 = vadd.f32 %v892_v46, %v5924_v32  ;;  %v1184_v1 = vpop.f32.mrf.mxu2 }
 0x225   :  { %v1185_v50 = vadd.f32 %v1184_v1, %v6052_v26 }
 0x226   :  { %v929_v51 = vmax.f32 %v893_v48, 0.0  ;;  %v1097_v40 = vpop.f32.mrf.mxu1 }
 0x227   :  { %v1262_v52 = vmax.f32 %v1260_v47, %v1185_v50  ;;  %v1098_v53 = vadd.f32 %v1097_v40, %v6045_v15 }
 0x228   :  { %v962_v55 = vpack.c.bf16 %v929_v51, %v928_v22 }
 0x229   :  { %v1242_v35 = vmax.f32 %v1240_v17, %v1098_v53 }
 0x22a   :  { %1129 = vmatmul.bf16.gmra.mxu1 %v962_v55  ;;  %1218 = vmatmul.bf16.gmra.mxu2 %v962_v55  ;;  %v1316_v55 = vld [vmem:[%s6517_s1] sm:$0xf] }
 0x22b   :  { %v6113_v56 = vmax.f32 %v1241_v44, %v1242_v35  ;;  %1405 = vst [vmem:[#allocation1] ss:$4 sm:$0xff] %v1316_v55 }
 0x22c   :  { %v1186_v6 = vpop.f32.mrf.mxu2 }
 0x22d   :  { %v1187_v57 = vadd.f32 %v1186_v6, %v6052_v26  ;;  %v5457_v6 = vmov 2.0  }
 0x22e   :  { %5396 = vrcp.f32 %v5457_v6 }
 0x22f   :  { %v1263_v33 = vmax.f32 %v1261_v37, %v1187_v57 }
 0x230   :  { %v1100_v0 = vpop.f32.mrf.mxu1 }
 0x231   :  { %v6116_v49 = vmax.f32 %v1262_v52, %v1263_v33  ;;  %v1101_v3 = vadd.f32 %v1100_v0, %v6045_v15 }
 0x232   :  { %v1407_v33 = vld.sshfl [vmem:[#allocation1 + $0x8] sm:$0xff pattern:$0x73625140] }
 0x233   :  { %v1418_v0 = vsel %vm1417_vm1, %v1407_v33, 0.0 }
 0x234   :  { %v895_v10 = vpop.f32.mrf.mxu0 }
 0x235   :  { %v896_v42 = vadd.f32 %v895_v10, %v5924_v32  ;;  %v1406_v10 = vld.sshfl [vmem:[#allocation1] sm:$0xff pattern:$0x73625140] }
 0x236   :  { %v1189_v58 = vpop.f32.mrf.mxu2 }
 0x237   :  { %v930_v31 = vmax.f32 %v896_v42, 0.0  ;;  %v1190_v9 = vadd.f32 %v1189_v58, %v6052_v26  ;;  %v1419_v58 = vrot.slane %v1418_v0, 4  ;;  %v5397_v42 = vpop.eup %5396 }
 0x238   :  { %v1102_v59 = vpop.f32.mrf.mxu1  ;;  %vm1338_vm3 = vweird.f32 %v5397_v42 }
 0x23c   :  { %v897_v60 = vpop.f32.mrf.mxu0 }
 0x23d   :  { %v898_v54 = vadd.f32 %v897_v60, %v5924_v32  ;;  %v1103_v32 = vadd.f32 %v1102_v59, %v6045_v15  ;;  %v1410_v59 = vsel %vm1318_vm2, %v1406_v10, 0.0 }
 0x23e   :  { %v1191_v62 = vpop.f32.mrf.mxu2 }
 0x23f   :  { %v931_v61 = vmax.f32 %v898_v54, 0.0  ;;  %v1192_v19 = vadd.f32 %v1191_v62, %v6052_v26  ;;  %v1411_v54 = vrot.slane %v1410_v59, 4 }
 0x241   :  { %v963_v18 = vpack.c.bf16 %v931_v61, %v930_v31  ;;  %v1420_v31 = vadd.f32 %v1419_v58, %v1418_v0  ;;  %v1334_v61 = vmul.f32 2.0, %v5397_v42  ;;  %v1412_v62 = vadd.f32 %v1411_v54, %v1410_v59 }
 0x242   :  { %v1105_v63 = vpop.f32.mrf.mxu1 }
 0x243   :  { %v1106_v4 = vadd.f32 %v1105_v63, %v6045_v15  ;;  %1134 = vmatmul.bf16.gmra.mxu1 %v963_v18  ;;  %1223 = vmatmul.bf16.gmra.mxu2 %v963_v18  ;;  %v1421_v18 = vrot.slane %v1420_v31, 2  ;;  %v1335_v63 = vsub.f32 1.0, %v1334_v61 }
 0x245   :  { %v1271_v5 = vmax.f32 %v1101_v3, %v1106_v4  ;;  %v1413_v3 = vrot.slane %v1412_v62, 2  ;;  %v1422_v4 = vadd.f32 %v1421_v18, %v1420_v31 }
 0x248   :  { %v1194_v7 = vpop.f32.mrf.mxu2 }
 0x249   :  { %v1195_v11 = vadd.f32 %v1194_v7, %v6052_v26 }
 0x24a   :  { %v1107_v12 = vpop.f32.mrf.mxu1 }
 0x24b   :  { %v1292_v13 = vmax.f32 %v1190_v9, %v1195_v11  ;;  %v1108_v39 = vadd.f32 %v1107_v12, %v6045_v15  ;;  %v1414_v9 = vadd.f32 %v1413_v3, %v1412_v62  ;;  %v1423_v11 = vrot.slane %v1422_v4, 1 }
 0x24d   :  { %v1272_v14 = vmax.f32 %v1103_v32, %v1108_v39  ;;  %v1415_v39 = vrot.slane %v1414_v9, 1 }
 0x250   :  { %v1196_v16 = vpop.f32.mrf.mxu2 }
 0x251   :  { %v1197_v8 = vadd.f32 %v1196_v16, %v6052_v26 }
 0x253   :  { %v1293_v21 = vmax.f32 %v1192_v19, %v1197_v8 }
 0x256   :  { %v1110_v23 = vpop.f32.mrf.mxu1 }
 0x257   :  { %v1111_v24 = vadd.f32 %v1110_v23, %v6045_v15 }
 0x259   :  { %v6129_v25 = vmax.f32 %v1271_v5, %v1111_v24  ;;  %v1336_v5 = vmul.f32 %v5397_v42, %v1335_v63 }
 0x25b   :  { %v1337_v32 = vadd.f32 %v5397_v42, %v1336_v5 }
 0x25c   :  { %v1199_v47 = vpop.f32.mrf.mxu2 }
 0x25d   :  { %v1200_v20 = vadd.f32 %v1199_v47, %v6052_v26  ;;  %v6169_v8 = vsel %vm1338_vm3, %v5397_v42, %v1337_v32 }
 0x25e   :  { %v1112_v2 = vpop.f32.mrf.mxu1 }
 0x25f   :  { %v6132_v17 = vmax.f32 %v1292_v13, %v1200_v20  ;;  %v1113_v27 = vadd.f32 %v1112_v2, %v6045_v15  ;;  %v1244_v2 = vrot.slane %v6113_v56, 4 }
 0x261   :  { %v6135_v28 = vmax.f32 %v1272_v14, %v1113_v27  ;;  %v1424_v14 = vadd.f32 %v1423_v11, %v1422_v4 }
 0x263   :  { %v1426_v23 = vmul.f32 %v1424_v14, %v6169_v8 }
 0x264   :  { %v1201_v29 = vpop.f32.mrf.mxu2 }
 0x265   :  { %v1202_v30 = vadd.f32 %v1201_v29, %v6052_v26 }
 0x267   :  { %v6138_v34 = vmax.f32 %v1293_v21, %v1202_v30  ;;  %v1416_v21 = vadd.f32 %v1415_v39, %v1414_v9  ;;  %v1429_v30 = vrot.slane %v1426_v23, 6 }
 0x269   :  { %v1425_v29 = vmul.f32 %v1416_v21, %v6169_v8 }
 0x26f   :  { %v1115_v36 = vpop.f32.mrf.mxu1 }
 0x270   :  { %v6141_v37 = vadd.f32 %v1115_v36, %v6045_v15 }
 0x272   :  { %v1275_v38 = vmax.f32 %v6129_v25, %v6141_v37  ;;  %v1245_v37 = vmax.f32 %v6113_v56, %v1244_v2 }
 0x274   :  { %v1246_v54 = vrot.slane %v1245_v37, 2 }
 0x275   :  { %v1204_v41 = vpop.f32.mrf.mxu2 }
 0x276   :  { %v6146_v43 = vadd.f32 %v1204_v41, %v6052_v26 }
 0x277   :  { %v1117_v45 = vpop.f32.mrf.mxu1 }
 0x278   :  { %v1296_v44 = vmax.f32 %v6132_v17, %v6146_v43  ;;  %v1118_v12 = vadd.f32 %v1117_v45, %v6045_v15 }
 0x27a   :  { %v1276_v24 = vmax.f32 %v6135_v28, %v1118_v12 }
 0x27d   :  { %v1206_v46 = vpop.f32.mrf.mxu2 }
 0x27e   :  { %v1207_v27 = vadd.f32 %v1206_v46, %v6052_v26  ;;  %v1430_v46 = vsel %vm1318_vm2, %v1425_v29, %v1429_v30 }
 0x27f   :  { %v6189_v25 = vsub.f32 %v1316_v55, %v1430_v46  ;;  %v1265_v55 = vrot.slane %v6116_v49, 4 }
 0x281   :  { %v1120_v48 = vpop.f32.mrf.mxu1  ;;  %v1433_v59 = vmul.f32 %v6189_v25, %v6189_v25  ;;  %v1266_v18 = vmax.f32 %v6116_v49, %v1265_v55 }
 0x282   :  { %v1121_v16 = vadd.f32 %v1120_v48, %v6045_v15 }
 0x283   :  { %1435 = vst [vmem:[#allocation1] ss:$4 sm:$0xff] %v1433_v59  ;;  %v1267_v11 = vrot.slane %v1266_v18, 2 }
 0x284   :  { %v1277_v36 = vmax.f32 %v1275_v38, %v1121_v16  ;;  %v1297_v38 = vmax.f32 %v6138_v34, %v1207_v27 }
 0x287   :  { %v6150_v1 = vpop.f32.mrf.mxu2 }
 0x288   :  { %v1210_v48 = vadd.f32 %v6150_v1, %v6052_v26 }
 0x289   :  { %v1122_v50 = vpop.f32.mrf.mxu1 }
 0x28a   :  { %v1123_v19 = vadd.f32 %v1122_v50, %v6045_v15  ;;  %v1298_v56 = vmax.f32 %v1296_v44, %v1210_v48  ;;  %v1437_v9 = vld.sshfl [vmem:[#allocation1 + $0x8] sm:$0xff pattern:$0x73625140]  ;;  %v1436_v39 = vld.sshfl [vmem:[#allocation1] sm:$0xff pattern:$0x73625140] }
 0x28b   :  { %v1447_v32 = vsel %vm1417_vm1, %v1437_v9, 0.0 }
 0x28c   :  { %v1278_v41 = vmax.f32 %v1276_v24, %v1123_v19  ;;  %v1448_v14 = vrot.slane %v1447_v32, 4  ;;  %v1440_v19 = vsel %vm1318_vm2, %v1436_v39, 0.0 }
 0x28d   :  { %v1441_v23 = vrot.slane %v1440_v19, 4 }
 0x28e   :  { %v1449_v24 = vadd.f32 %v1448_v14, %v1447_v32 }
 0x28f   :  { %v6152_v22 = vpop.f32.mrf.mxu2  ;;  %v1442_v2 = vadd.f32 %v1441_v23, %v1440_v19 }
 0x290   :  { %v1212_v50 = vadd.f32 %v6152_v22, %v6052_v26  ;;  %v1450_v27 = vrot.slane %v1449_v24, 2 }
 0x292   :  { %v1299_v34 = vmax.f32 %v1297_v38, %v1212_v50 }
 0x293   :  { %v1125_v51 = vpop.f32.mrf.mxu1 }
 0x294   :  { %v1126_v47 = vadd.f32 %v1125_v51, %v6045_v15 }
 0x299   :  { %v6157_v40 = vpop.f32.mrf.mxu2 }
 0x29b   :  { %v1127_v52 = vpop.f32.mrf.mxu1 }
 0x29c   :  { %v1128_v20 = vadd.f32 %v1127_v52, %v6045_v15  ;;  %v1279_v52 = vmax.f32 %v1277_v36, %v1126_v47 }
 0x29e   :  { %v1280_v6 = vmax.f32 %v1278_v41, %v1128_v20  ;;  %v1443_v41 = vrot.slane %v1442_v2, 2 }
 0x2a0   :  { %v1444_v46 = vadd.f32 %v1443_v41, %v1442_v2 }
 0x2a1   :  { %v1216_v53 = vpop.f32.mrf.mxu2 }
 0x2a2   :  { %v1217_v1 = vadd.f32 %v1216_v53, %v6052_v26 }
 0x2a4   :  { %v1301_v31 = vmax.f32 %v1299_v34, %v1217_v1 }
 0x2a7   :  { %v1130_v35 = vpop.f32.mrf.mxu1 }
 0x2a8   :  { %v1131_v45 = vadd.f32 %v1130_v35, %v6045_v15  ;;  %v1215_v35 = vadd.f32 %v6157_v40, %v6052_v26 }
 0x2aa   :  { %v1281_v22 = vmax.f32 %v1279_v52, %v1131_v45  ;;  %v1451_v45 = vadd.f32 %v1450_v27, %v1449_v24 }
 0x2ac   :  { %v1452_v52 = vrot.slane %v1451_v45, 1 }
 0x2ad   :  { %v6162_v57 = vpop.f32.mrf.mxu2 }
 0x2ae   :  { %v1220_v40 = vadd.f32 %v6162_v57, %v6052_v26  ;;  %v1247_v57 = vmax.f32 %v1245_v37, %v1246_v54  ;;  %v1445_v37 = vrot.slane %v1444_v46, 1  ;;  %v1453_v38 = vadd.f32 %v1452_v52, %v1451_v45 }
 0x2af   :  { %v1132_v60 = vpop.f32.mrf.mxu1 }
 0x2b0   :  { %v1133_v28 = vadd.f32 %v1132_v60, %v6045_v15  ;;  %v1248_v16 = vrot.slane %v1247_v57, 1 }
 0x2b2   :  { %v1282_v10 = vmax.f32 %v1280_v6, %v1133_v28  ;;  %v1249_v29 = vmax.f32 %v1247_v57, %v1248_v16 }
 0x2b5   :  { %v1221_v7 = vpop.f32.mrf.mxu2 }
 0x2b6   :  { %v1222_v53 = vadd.f32 %v1221_v7, %v6052_v26 }
 0x2b8   :  { %v1303_v43 = vmax.f32 %v1301_v31, %v1222_v53 }
 0x2c0   :  { %v1135_v13 = vpop.f32.mrf.mxu1 }
 0x2c1   :  { %v1136_v33 = vadd.f32 %v1135_v13, %v6045_v15 }
 0x2c3   :  { %v1283_v42 = vmax.f32 %v1281_v22, %v1136_v33  ;;  %v1446_v22 = vadd.f32 %v1445_v37, %v1444_v46 }
 0x2c5   :  { %v1454_v55 = vmul.f32 %v1446_v22, %v6169_v8 }
 0x2c6   :  { %v1224_v51 = vpop.f32.mrf.mxu2 }
 0x2c7   :  { %v1225_v61 = vadd.f32 %v1224_v51, %v6052_v26 }
 0x2c8   :  { %v1137_v0 = vpop.f32.mrf.mxu1 }
 0x2c9   :  { %v1138_v58 = vadd.f32 %v1137_v0, %v6045_v15  ;;  %v1300_v15 = vmax.f32 %v1298_v56, %v1215_v35 }
 0x2cb   :  { %v1284_v60 = vmax.f32 %v1282_v10, %v1138_v58  ;;  %v1302_v17 = vmax.f32 %v1300_v15, %v1220_v40  ;;  %v1455_v10 = vmul.f32 %v1453_v38, %v6169_v8 }
 0x2cd   :  { %v1285_v62 = vmax.f32 %v1283_v42, %v1284_v60  ;;  %v1304_v4 = vmax.f32 %v1302_v17, %v1225_v61  ;;  %v1457_v56 = vadd.f32 1e-05, %v1455_v10  ;;  %v1456_v42 = vadd.f32 1e-05, %v1454_v55 }
 0x2ce   :  { %v1226_v63 = vpop.f32.mrf.mxu2 }
 0x2cf   :  { %v1286_v44 = vrot.slane %v1285_v62, 4  ;;  %v1227_v3 = vadd.f32 %v1226_v63, %v6052_v26  ;;  %v1268_v26 = vmax.f32 %v1266_v18, %v1267_v11  ;;  %5398 = vrsqrt.f32 %v1457_v56 }
 0x2d0   :  { %5400 = vrsqrt.f32 %v1456_v42  ;;  %vm1474_vm5 = vweird.f32 %v1457_v56  ;;  %vm1464_vm7 = vweird.f32 %v1456_v42 }
 0x2d1   :  { %v1287_v5 = vmax.f32 %v1285_v62, %v1286_v44  ;;  %v1305_v7 = vmax.f32 %v1303_v43, %v1227_v3  ;;  %v1269_v28 = vrot.slane %v1268_v26, 1 }
 0x2d3   :  { %v1288_v12 = vrot.slane %v1287_v5, 2  ;;  %v1306_v13 = vmax.f32 %v1304_v4, %v1305_v7  ;;  %v1270_v35 = vmax.f32 %v1268_v26, %v1269_v28  ;;  %v4069_v26 = vld [vmem:[%s6514_s4 + $0x5] ss:$8 sm:$0x3] }
 0x2d4   :  { %v1487_v2 = vperm.slane %v4069_v26, 0  ;;  %v1488_v27 = vperm.slane %v4069_v26, 1 }
 0x2d5   :  { %v1289_v49 = vmax.f32 %v1287_v5, %v1288_v12  ;;  %v1307_v21 = vrot.slane %v1306_v13, 4  ;;  %v5399_v18 = vpop.eup %5398 }
 0x2d6   :  { %v1469_v17 = vmul.f32 %v5399_v18, %v1457_v56  ;;  %v5401_v44 = vpop.eup %5400  ;;  %vm1475_vm6 = vweird.f32 %v5399_v18 }
 0x2d7   :  { %v1290_v47 = vrot.slane %v1289_v49, 1  ;;  %v1308_v20 = vmax.f32 %v1306_v13, %v1307_v21  ;;  %v1459_v57 = vmul.f32 %v5401_v44, %v1456_v42  ;;  %vm1465_vm8 = vweird.f32 %v5401_v44  ;;  %vm1476_vm9 = vmor %vm1474_vm5, %vm1475_vm6 }
 0x2d8   :  { %v1470_v4 = vmul.f32 %v5399_v18, %v1469_v17  ;;  %vm1466_vm10 = vmor %vm1464_vm7, %vm1465_vm8 }
 0x2d9   :  { %v1291_v30 = vmax.f32 %v1289_v49, %v1290_v47  ;;  %v1309_v36 = vrot.slane %v1308_v20, 2  ;;  %v1460_v9 = vmul.f32 %v5401_v44, %v1459_v57 }
 0x2da   :  { %v1471_v11 = vmul.f32 0.5, %v1470_v4 }
 0x2db   :  { %v6212_v48 = vsel %vm1313_vm4, %v1249_v29, %v1291_v30  ;;  %v1310_v50 = vmax.f32 %v1308_v20, %v1309_v36  ;;  %v1461_v13 = vmul.f32 0.5, %v1460_v9  ;;  %v4070_v29 = vld [vmem:[%s6514_s4 + $0x6] ss:$8 sm:$0x3] }
 0x2dc   :  { %v1319_v51 = vsel %vm1318_vm2, %v6212_v48, 0.0  ;;  %v1472_v39 = vsub.f32 1.5, %v1471_v11  ;;  %v1496_v41 = vperm.slane %v4070_v29, 0  ;;  %v1497_v45 = vperm.slane %v4070_v29, 1 }
 0x2dd   :  { %v1320_v6 = vrot.slane %v1319_v51, 4  ;;  %v1311_v33 = vrot.slane %v1310_v50, 1  ;;  %v1462_v49 = vsub.f32 1.5, %v1461_v13 }
 0x2de   :  { %v1473_v19 = vmul.f32 %v5399_v18, %v1472_v39  ;;  %v1498_v52 = vrot.slane %v1497_v45, 6 }
 0x2df   :  { %v1321_v1 = vadd.f32 %v1320_v6, %v1319_v51  ;;  %v1312_v0 = vmax.f32 %v1310_v50, %v1311_v33  ;;  %v1463_v24 = vmul.f32 %v5401_v44, %v1462_v49  ;;  %v1489_v50 = vrot.slane %v1488_v27, 6 }
 0x2e0   :  { %v1477_v20 = vsel %vm1476_vm9, %v5399_v18, %v1473_v19 }
 0x2e1   :  { %v1322_v58 = vrot.slane %v1321_v1, 2  ;;  %v6218_v59 = vsel %vm1313_vm4, %v1270_v35, %v1312_v0  ;;  %v1467_v30 = vsel %vm1466_vm10, %v5401_v44, %v1463_v24  ;;  %v1480_v36 = vrot.slane %v1477_v20, 6 }
 0x2e2   :  { %v1326_v34 = vsel %vm1318_vm2, %v6218_v59, 0.0  ;;  %v1490_v38 = vsel %vm1318_vm2, %v1487_v2, %v1489_v50  ;;  %v1499_v35 = vsel %vm1318_vm2, %v1496_v41, %v1498_v52 }
 0x2e3   :  { %v1323_v40 = vadd.f32 %v1322_v58, %v1321_v1  ;;  %v1327_v53 = vrot.slane %v1326_v34, 4  ;;  %v1481_v46 = vsel %vm1318_vm2, %v1467_v30, %v1480_v36 }
 0x2e4   :  { %v1483_v37 = vmul.f32 %v1481_v46, %v6189_v25 }
 0x2e5   :  { %v1324_v60 = vrot.slane %v1323_v40, 1  ;;  %v1328_v54 = vadd.f32 %v1327_v53, %v1326_v34  ;;  %v6251_v34 = vld [vmem:[%s6518_s2] sm:$0x3] }
 0x2e6   :  { %v1492_v22 = vmul.f32 %v1490_v38, %v1483_v37 }
 0x2e7   :  { %v1325_v15 = vadd.f32 %v1324_v60, %v1323_v40  ;;  %v1329_v31 = vrot.slane %v1328_v54, 2 }
 0x2e8   :  { %v1501_v55 = vadd.f32 %v1499_v35, %v1492_v22 }
 0x2e9   :  { %v1340_v61 = vmul.f32 %v6169_v8, %v1325_v15  ;;  %v1330_v62 = vadd.f32 %v1329_v31, %v1328_v54 }
 0x2eb   :  { %v6225_v63 = vsub.f32 %v6212_v48, %v1340_v61  ;;  %v1331_v43 = vrot.slane %v1330_v62, 1 }
 0x2ed   :  { %v1344_v3 = vmul.f32 %v6225_v63, %v6225_v63  ;;  %v1332_v5 = vadd.f32 %v1331_v43, %v1330_v62  ;;  %v4067_v62 = vld [vmem:[%s6514_s4 + $0x3] ss:$8 sm:$0x3]  ;;  %v4068_v43 = vld [vmem:[%s6514_s4 + $0x4] ss:$8 sm:$0x3] }
 0x2ee   :  { %v1389_v44 = vperm.slane %v4067_v62, 0  ;;  %v1390_v39 = vperm.slane %v4067_v62, 1  ;;  %v1399_v19 = vperm.slane %v4068_v43, 1 }
 0x2ef   :  { %v1346_v7 = vsel %vm1318_vm2, %v1344_v3, 0.0  ;;  %v1341_v12 = vmul.f32 %v6169_v8, %v1332_v5  ;;  %v1398_v5 = vperm.slane %v4068_v43, 0 }
 0x2f0   :  { %v1347_v32 = vrot.slane %v1346_v7, 4 }
 0x2f1   :  { %v6232_v14 = vsub.f32 %v6218_v59, %v1341_v12 }
 0x2f2   :  { %v1348_v16 = vadd.f32 %v1347_v32, %v1346_v7 }
 0x2f3   :  { %v1345_v23 = vmul.f32 %v6232_v14, %v6232_v14 }
 0x2f4   :  { %v1349_v21 = vrot.slane %v1348_v16, 2 }
 0x2f5   :  { %v1353_v51 = vsel %vm1318_vm2, %v1345_v23, 0.0 }
 0x2f6   :  { %v1350_v47 = vadd.f32 %v1349_v21, %v1348_v16  ;;  %v1354_v6 = vrot.slane %v1353_v51, 4 }
 0x2f8   :  { %v1351_v28 = vrot.slane %v1350_v47, 1  ;;  %v1355_v1 = vadd.f32 %v1354_v6, %v1353_v51 }
 0x2fa   :  { %v1352_v33 = vadd.f32 %v1351_v28, %v1350_v47  ;;  %v1356_v10 = vrot.slane %v1355_v1, 2 }
 0x2fc   :  { %v1360_v0 = vmul.f32 %v1352_v33, %v6169_v8  ;;  %v1357_v56 = vadd.f32 %v1356_v10, %v1355_v1 }
 0x2fe   :  { %v1362_v58 = vadd.f32 1e-05, %v1360_v0  ;;  %v1358_v40 = vrot.slane %v1357_v56, 1 }
 0x300   :  { %5402 = vrsqrt.f32 %v1362_v58  ;;  %v1359_v25 = vadd.f32 %v1358_v40, %v1357_v56  ;;  %vm1370_vm12 = vweird.f32 %v1362_v58 }
 0x302   :  { %v1361_v53 = vmul.f32 %v1359_v25, %v6169_v8 }
 0x304   :  { %v1363_v54 = vadd.f32 1e-05, %v1361_v53 }
 0x306   :  { %v5403_v42 = vpop.eup %5402  ;;  %5404 = vrsqrt.f32 %v1363_v54  ;;  %vm1380_vm15 = vweird.f32 %v1363_v54 }
 0x307   :  { %v1365_v60 = vmul.f32 %v5403_v42, %v1362_v58  ;;  %vm1371_vm11 = vweird.f32 %v5403_v42 }
 0x308   :  { %vm1372_vm13 = vmor %vm1370_vm12, %vm1371_vm11 }
 0x309   :  { %v1366_v15 = vmul.f32 %v5403_v42, %v1365_v60 }
 0x30b   :  { %v1367_v31 = vmul.f32 0.5, %v1366_v15 }
 0x30c   :  { %v5405_v18 = vpop.eup %5404 }
 0x30d   :  { %v1368_v61 = vsub.f32 1.5, %v1367_v31  ;;  %v1375_v3 = vmul.f32 %v5405_v18, %v1363_v54  ;;  %vm1381_vm14 = vweird.f32 %v5405_v18 }
 0x30e   :  { %vm1382_vm1 = vmor %vm1380_vm15, %vm1381_vm14 }
 0x30f   :  { %v1369_v17 = vmul.f32 %v5403_v42, %v1368_v61  ;;  %v1376_v7 = vmul.f32 %v5405_v18, %v1375_v3 }
 0x311   :  { %v1373_v57 = vsel %vm1372_vm13, %v5403_v42, %v1369_v17  ;;  %v1377_v11 = vmul.f32 0.5, %v1376_v7 }
 0x312   :  { %v1384_v4 = vmul.f32 %v1373_v57, %v6225_v63 }
 0x313   :  { %v1378_v32 = vsub.f32 1.5, %v1377_v11 }
 0x314   :  { %v1393_v9 = vmul.f32 %v1389_v44, %v1384_v4 }
 0x315   :  { %v1379_v13 = vmul.f32 %v5405_v18, %v1378_v32 }
 0x316   :  { %v6261_v12 = vadd.f32 %v1398_v5, %v1393_v9 }
 0x317   :  { %v1383_v16 = vsel %vm1382_vm1, %v5405_v18, %v1379_v13 }
 0x318   :  { %v1385_v49 = vmul.f32 %v1383_v16, %v6232_v14 }
 0x31a   :  { %v1394_v21 = vmul.f32 %v1390_v39, %v1385_v49 }
 0x31c   :  { %v6264_v23 = vadd.f32 %v1399_v19, %v1394_v21 }
 0x31d   :  { %5451 = dma.done.wait [#allocation3], 30720 }
 0x31e   :  { %5452 = vsyncadd [#allocation3], 4294936576  ;;  %1561 = vst [vmem:[#allocation1] ss:$4 sm:$0xff] %v1501_v55  ;;  %v4129_v63 = vld [vmem:[#allocation2 + $0x170] sm:$0xf] }
 0x31f   :  { %v5115_v24 = vld [vmem:[#allocation2 + $0x174] sm:$0xf0]  ;;  %v4121_v26 = vld [vmem:[#allocation2 + $0x160] sm:$0xf]  ;;  %v5113_v20 = vld [vmem:[#allocation2 + $0x164] sm:$0xf0] }
 0x320   :  { %v4130_v47 = vor.u32 %v5115_v24, %v4129_v63  ;;  %v4122_v2 = vor.u32 %v5113_v20, %v4121_v26  ;;  %v4113_v27 = vld [vmem:[#allocation2 + $0x150] sm:$0xf]  ;;  %v5111_v29 = vld [vmem:[#allocation2 + $0x154] sm:$0xf0]  ;;  %v4105_v36 = vld [vmem:[#allocation2 + $0x140] sm:$0xf] }
 0x321   :  { %v4114_v30 = vor.u32 %v5111_v29, %v4113_v27  ;;  %v5109_v14 = vld [vmem:[#allocation2 + $0x144] sm:$0xf0]  ;;  %v4097_v45 = vld [vmem:[#allocation2 + $0x130] sm:$0xf]  ;;  %v5107_v28 = vld [vmem:[#allocation2 + $0x134] sm:$0xf0] }
 0x322   :  { %1672 = vmatpush.bf16.msra.mxu3 %v4130_v47  ;;  %v4106_v41 = vor.u32 %v5109_v14, %v4105_v36  ;;  %v4098_v50 = vor.u32 %v5107_v28, %v4097_v45  ;;  %v4089_v51 = vld [vmem:[#allocation2 + $0x120] sm:$0xf]  ;;  %v5105_v46 = vld [vmem:[#allocation2 + $0x124] sm:$0xf0]  ;;  %v4081_v6 = vld [vmem:[#allocation2 + $0x110] sm:$0xf] }
 0x323   :  { %v4090_v52 = vor.u32 %v5105_v46, %v4089_v51  ;;  %v5103_v33 = vld [vmem:[#allocation2 + $0x114] sm:$0xf0]  ;;  %v4073_v38 = vld [vmem:[#allocation2 + $0x100] sm:$0xf]  ;;  %v5101_v35 = vld [vmem:[#allocation2 + $0x104] sm:$0xf0] }
 0x324   :  { %v4082_v37 = vor.u32 %v5103_v33, %v4081_v6  ;;  %v4145_v1 = vld [vmem:[#allocation2 + $0x190] sm:$0xf]  ;;  %v5119_v0 = vld [vmem:[#allocation2 + $0x194] sm:$0xf0]  ;;  %v4074_v22 = vor.u32 %v5101_v35, %v4073_v38  ;;  %v4137_v55 = vld [vmem:[#allocation2 + $0x180] sm:$0xf] }
 0x325   :  { %v1562_v10 = vld.sshfl [vmem:[#allocation1] sm:$0xff pattern:$0x73625140]  ;;  %v4146_v58 = vor.u32 %v5119_v0, %v4145_v1  ;;  %v5117_v56 = vld [vmem:[#allocation2 + $0x184] sm:$0xf0]  ;;  %vm1668_vm3 = vcmask 261120  }
 0x326   :  { %1673 = vmatpush.bf16.msra.mxu3 %v4122_v2  ;;  %v6266_v40 = vpack.c.bf16 %v1562_v10, %v1562_v10  ;;  %v5114_v25 = vld [vmem:[#allocation2 + $0x174] sm:$0xf]  ;;  %v4131_v53 = vld [vmem:[#allocation2 + $0x178] sm:$0xf0]  ;;  %v4138_v42 = vor.u32 %v5117_v56, %v4137_v55  ;;  %v5112_v54 = vld [vmem:[#allocation2 + $0x164] sm:$0xf] }
 0x327   :  { %v4134_v60 = vor.u32 %v5114_v25, %v4131_v53  ;;  %v4123_v15 = vld [vmem:[#allocation2 + $0x168] sm:$0xf0]  ;;  %v5110_v61 = vld [vmem:[#allocation2 + $0x154] sm:$0xf]  ;;  %v4115_v62 = vld [vmem:[#allocation2 + $0x158] sm:$0xf0] }
 0x328   :  { %v4126_v31 = vor.u32 %v5112_v54, %v4123_v15  ;;  %v4118_v18 = vor.u32 %v5110_v61, %v4115_v62  ;;  %v5108_v17 = vld [vmem:[#allocation2 + $0x144] sm:$0xf]  ;;  %v4107_v43 = vld [vmem:[#allocation2 + $0x148] sm:$0xf0]  ;;  %v5106_v4 = vld [vmem:[#allocation2 + $0x134] sm:$0xf]  ;;  %v6278_v15 = vpack.c.bf16 %v6261_v12, %v6261_v12 }
 0x329   :  { %v1563_v44 = vld.sshfl [vmem:[#allocation1 + $0x8] sm:$0xff pattern:$0x73625140]  ;;  %v4110_v3 = vor.u32 %v5108_v17, %v4107_v43  ;;  %v4099_v5 = vld [vmem:[#allocation2 + $0x138] sm:$0xf0]  ;;  %vm1948_vm4 = vcmask 517120  }
 0x32a   :  { %1674 = vmatpush.bf16.msra.mxu3 %v4114_v30  ;;  %v6269_v57 = vpack.c.bf16 %v1563_v44, %v1563_v44  ;;  %v4102_v7 = vor.u32 %v5106_v4, %v4099_v5  ;;  %v5104_v9 = vld [vmem:[#allocation2 + $0x124] sm:$0xf]  ;;  %v4091_v11 = vld [vmem:[#allocation2 + $0x128] sm:$0xf0]  ;;  %v5102_v13 = vld [vmem:[#allocation2 + $0x114] sm:$0xf] }
 0x32b   :  { %v4094_v32 = vor.u32 %v5104_v9, %v4091_v11  ;;  %v4083_v39 = vld [vmem:[#allocation2 + $0x118] sm:$0xf0]  ;;  %v5100_v49 = vld [vmem:[#allocation2 + $0x104] sm:$0xf]  ;;  %v4075_v19 = vld [vmem:[#allocation2 + $0x108] sm:$0xf0] }
 0x32c   :  { %v4086_v16 = vor.u32 %v5102_v13, %v4083_v39  ;;  %v5118_v21 = vld [vmem:[#allocation2 + $0x194] sm:$0xf]  ;;  %v4147_v63 = vld [vmem:[#allocation2 + $0x198] sm:$0xf0]  ;;  %v4078_v24 = vor.u32 %v5100_v49, %v4075_v19  ;;  %v5116_v47 = vld [vmem:[#allocation2 + $0x184] sm:$0xf] }
 0x32d   :  { %v4150_v26 = vor.u32 %v5118_v21, %v4147_v63  ;;  %v4139_v20 = vld [vmem:[#allocation2 + $0x188] sm:$0xf0]  ;;  %v4211_v2 = vld [vmem:[#allocation2 + $0x70] sm:$0xf]  ;;  %v5083_v27 = vld [vmem:[#allocation2 + $0x74] sm:$0xf0] }
 0x32e   :  { %1675 = vmatpush.bf16.msra.mxu3 %v4106_v41  ;;  %v4142_v29 = vor.u32 %v5116_v47, %v4139_v20  ;;  %v4212_v30 = vor.u32 %v5083_v27, %v4211_v2  ;;  %v4203_v36 = vld [vmem:[#allocation2 + $0x60] sm:$0xf]  ;;  %v5081_v14 = vld [vmem:[#allocation2 + $0x64] sm:$0xf0]  ;;  %v4195_v45 = vld [vmem:[#allocation2 + $0x50] sm:$0xf]  ;;  %v6283_v47 = vpack.c.bf16 %v6264_v23, %v6264_v23 }
 0x32f   :  { %v4204_v41 = vor.u32 %v5081_v14, %v4203_v36  ;;  %v5079_v28 = vld [vmem:[#allocation2 + $0x54] sm:$0xf0]  ;;  %v4187_v51 = vld [vmem:[#allocation2 + $0x40] sm:$0xf]  ;;  %v5077_v46 = vld [vmem:[#allocation2 + $0x44] sm:$0xf0] }
 0x330   :  { %v4179_v6 = vld [vmem:[#allocation2 + $0x30] sm:$0xf]  ;;  %v5075_v33 = vld [vmem:[#allocation2 + $0x34] sm:$0xf0]  ;;  %v4171_v38 = vld [vmem:[#allocation2 + $0x20] sm:$0xf] }
 0x331   :  { %v5073_v35 = vld [vmem:[#allocation2 + $0x24] sm:$0xf0]  ;;  %v4163_v0 = vld [vmem:[#allocation2 + $0x10] sm:$0xf]  ;;  %v5099_v25 = vld [vmem:[#allocation2 + $0xf4] sm:$0xf0] }
 0x332   :  { %1676 = vmatpush.bf16.msra.mxu3 %v4098_v50  ;;  %v4196_v50 = vor.u32 %v5079_v28, %v4195_v45  ;;  %v4172_v1 = vor.u32 %v5073_v35, %v4171_v38  ;;  %v5069_v55 = vld [vmem:[#allocation2 + $0x4] sm:$0xf0]  ;;  %v4275_v56 = vld [vmem:[#allocation2 + $0xf0] sm:$0xf]  ;;  %v5095_v62 = vld [vmem:[#allocation2 + $0xd4] sm:$0xf0] }
 0x333   :  { %v5097_v54 = vld [vmem:[#allocation2 + $0xe4] sm:$0xf0]  ;;  %v4259_v61 = vld [vmem:[#allocation2 + $0xd0] sm:$0xf]  ;;  %v4251_v17 = vld [vmem:[#allocation2 + $0xc0] sm:$0xf] }
 0x334   :  { %v5093_v43 = vld [vmem:[#allocation2 + $0xc4] sm:$0xf0]  ;;  %v5091_v4 = vld [vmem:[#allocation2 + $0xb4] sm:$0xf0]  ;;  %v4227_v11 = vld [vmem:[#allocation2 + $0x90] sm:$0xf] }
 0x335   :  { %v4252_v44 = vor.u32 %v5093_v43, %v4251_v17  ;;  %v5089_v12 = vld [vmem:[#allocation2 + $0xa4] sm:$0xf0]  ;;  %v4219_v39 = vld [vmem:[#allocation2 + $0x80] sm:$0xf]  ;;  %v5082_v49 = vld [vmem:[#allocation2 + $0x74] sm:$0xf] }
 0x336   :  { %1677 = vmatpush.bf16.msra.mxu3 %v4090_v52  ;;  %v4188_v52 = vor.u32 %v5077_v46, %v4187_v51  ;;  %v4213_v19 = vld [vmem:[#allocation2 + $0x78] sm:$0xf0]  ;;  %v5078_v2 = vld [vmem:[#allocation2 + $0x54] sm:$0xf]  ;;  %v4189_v36 = vld [vmem:[#allocation2 + $0x48] sm:$0xf0] }
 0x337   :  { %v4216_v63 = vor.u32 %v5082_v49, %v4213_v19  ;;  %v4197_v27 = vld [vmem:[#allocation2 + $0x58] sm:$0xf0]  ;;  %v4173_v23 = vld [vmem:[#allocation2 + $0x28] sm:$0xf0]  ;;  %v5070_v46 = vld [vmem:[#allocation2 + $0x14] sm:$0xf] }
 0x338   :  { %v4181_v45 = vld [vmem:[#allocation2 + $0x38] sm:$0xf0]  ;;  %v5098_v38 = vld [vmem:[#allocation2 + $0xf4] sm:$0xf]  ;;  %v4237_v17 = vld [vmem:[#allocation2 + $0xa8] sm:$0xf0] }
 0x339   :  { %v4277_v35 = vld [vmem:[#allocation2 + $0xf8] sm:$0xf0]  ;;  %s5458_s11 = smov 32   ;;  %s5459_s2 = smov 96  }
 0x33a   :  { %1678 = vmatpush.bf16.msra.mxu3 %v4082_v37  ;;  %v4180_v37 = vor.u32 %v5075_v33, %v4179_v6  ;;  %v5068_v33 = vld [vmem:[#allocation2 + $0x4] sm:$0xf]  ;;  %2841 = vrot.lane.b32.xlu0 %v6251_v34, %s5458_s11 }
 0x33e   :  { %1679 = vmatpush.bf16.msra.mxu3 %v4074_v22  ;;  %v5071_v22 = vld [vmem:[#allocation2 + $0x14] sm:$0xf0] }
 0x33f   :  { %v4164_v10 = vor.u32 %v5071_v22, %v4163_v0  ;;  %v4280_v0 = vor.u32 %v5098_v38, %v4277_v35  ;;  %v5096_v22 = vld [vmem:[#allocation2 + $0xe4] sm:$0xf] }
 0x341   :  { %1680 = vmatmul.bf16.vlgmr.msra.gmra.mxu3 %v6266_v40 }
 0x342   :  { %1691 = vmatpush.bf16.msrb.mxu3 %v4146_v58  ;;  %v4155_v58 = vld [vmem:[#allocation2] sm:$0xf] }
 0x343   :  { %v4156_v53 = vor.u32 %v5069_v55, %v4155_v58  ;;  %v5094_v55 = vld [vmem:[#allocation2 + $0xd4] sm:$0xf] }
 0x346   :  { %1692 = vmatpush.bf16.msrb.mxu3 %v4138_v42  ;;  %v4276_v42 = vor.u32 %v5099_v25, %v4275_v56  ;;  %v4261_v56 = vld [vmem:[#allocation2 + $0xd8] sm:$0xf0] }
 0x347   :  { %v4264_v25 = vor.u32 %v5094_v55, %v4261_v56 }
 0x34a   :  { %1698 = vmatpush.bf16.msra.mxu3 %v4134_v60  ;;  %v4267_v60 = vld [vmem:[#allocation2 + $0xe0] sm:$0xf] }
 0x34e   :  { %1699 = vmatpush.bf16.msra.mxu3 %v4126_v31  ;;  %v4268_v31 = vor.u32 %v5097_v54, %v4267_v60 }
 0x351   :  { %4151 = vmatmul.msk.bf16.vlgmr.msrb.gmra.mxu3 %vm1668_vm3, %v6269_v57 }
 0x352   :  { %1700 = vmatpush.bf16.msra.mxu3 %v4118_v18  ;;  %v4260_v18 = vor.u32 %v5095_v62, %v4259_v61  ;;  %v4245_v61 = vld [vmem:[#allocation2 + $0xb8] sm:$0xf0] }
 0x356   :  { %1701 = vmatpush.bf16.msra.mxu3 %v4110_v3  ;;  %v4243_v3 = vld [vmem:[#allocation2 + $0xb0] sm:$0xf] }
 0x357   :  { %v4244_v5 = vor.u32 %v5091_v4, %v4243_v3  ;;  %v5086_v3 = vld [vmem:[#allocation2 + $0x94] sm:$0xf]  ;;  %v4229_v4 = vld [vmem:[#allocation2 + $0x98] sm:$0xf0] }
 0x35a   :  { %1702 = vmatpush.bf16.msra.mxu3 %v4102_v7  ;;  %v4235_v7 = vld [vmem:[#allocation2 + $0xa0] sm:$0xf] }
 0x35b   :  { %v4236_v9 = vor.u32 %v5089_v12, %v4235_v7  ;;  %v5084_v7 = vld [vmem:[#allocation2 + $0x84] sm:$0xf]  ;;  %v4221_v12 = vld [vmem:[#allocation2 + $0x88] sm:$0xf0] }
 0x35e   :  { %1703 = vmatpush.bf16.msra.mxu3 %v4094_v32  ;;  %v5087_v32 = vld [vmem:[#allocation2 + $0x94] sm:$0xf0] }
 0x35f   :  { %v4228_v13 = vor.u32 %v5087_v32, %v4227_v11  ;;  %v4224_v32 = vor.u32 %v5084_v7, %v4221_v12 }
 0x362   :  { %1704 = vmatpush.bf16.msra.mxu3 %v4086_v16  ;;  %v5085_v16 = vld [vmem:[#allocation2 + $0x84] sm:$0xf0] }
 0x363   :  { %v4220_v21 = vor.u32 %v5085_v16, %v4219_v39 }
 0x366   :  { %1705 = vmatpush.bf16.msra.mxu3 %v4078_v24  ;;  %v5080_v24 = vld [vmem:[#allocation2 + $0x64] sm:$0xf] }
 0x369   :  { %1706 = vmatmul.bf16.vlgmr.msra.gmra.mxu3 %v6266_v40 }
 0x36a   :  { %1717 = vmatpush.bf16.msrb.mxu3 %v4150_v26  ;;  %v4205_v26 = vld [vmem:[#allocation2 + $0x68] sm:$0xf0] }
 0x36b   :  { %v4208_v20 = vor.u32 %v5080_v24, %v4205_v26 }
 0x36e   :  { %1718 = vmatpush.bf16.msrb.mxu3 %v4142_v29  ;;  %v4200_v29 = vor.u32 %v5078_v2, %v4197_v27 }
 0x372   :  { %1884 = vmatpush.bf16.msra.mxu3 %v4212_v30  ;;  %v5076_v30 = vld [vmem:[#allocation2 + $0x44] sm:$0xf] }
 0x373   :  { %v4192_v14 = vor.u32 %v5076_v30, %v4189_v36 }
 0x376   :  { %1885 = vmatpush.bf16.msra.mxu3 %v4204_v41  ;;  %v5074_v41 = vld [vmem:[#allocation2 + $0x34] sm:$0xf] }
 0x377   :  { %v4184_v28 = vor.u32 %v5074_v41, %v4181_v45 }
 0x379   :  { %4152 = vmatmul.msk.bf16.vlgmr.msrb.gmra.mxu3 %vm1668_vm3, %v6269_v57 }
 0x37a   :  { %1886 = vmatpush.bf16.msra.mxu3 %v4196_v50  ;;  %v5072_v50 = vld [vmem:[#allocation2 + $0x24] sm:$0xf] }
 0x37b   :  { %v4176_v51 = vor.u32 %v5072_v50, %v4173_v23 }
 0x37e   :  { %1887 = vmatpush.bf16.msra.mxu3 %v4188_v52  ;;  %v4165_v52 = vld [vmem:[#allocation2 + $0x18] sm:$0xf0] }
 0x37f   :  { %v4168_v6 = vor.u32 %v5070_v46, %v4165_v52 }
 0x382   :  { %1888 = vmatpush.bf16.msra.mxu3 %v4180_v37  ;;  %v4157_v37 = vld [vmem:[#allocation2 + $0x8] sm:$0xf0] }
 0x386   :  { %1889 = vmatpush.bf16.msra.mxu3 %v4172_v1  ;;  %v4160_v1 = vor.u32 %v5068_v33, %v4157_v37 }
 0x38a   :  { %1890 = vmatpush.bf16.msra.mxu3 %v4164_v10  ;;  %v4269_v10 = vld [vmem:[#allocation2 + $0xe8] sm:$0xf0] }
 0x38b   :  { %v4272_v58 = vor.u32 %v5096_v22, %v4269_v10  ;;  %v4296_v10 = vld [vmem:[#allocation2 + $0x3f0] sm:$0xf] }
 0x38e   :  { %1891 = vmatpush.bf16.msra.mxu3 %v4156_v53  ;;  %v5092_v53 = vld [vmem:[#allocation2 + $0xc4] sm:$0xf] }
 0x391   :  { %1892 = vmatmul.bf16.vlgmr.msra.gmra.mxu3 %v6278_v15 }
 0x392   :  { %1897 = vmatpush.bf16.msrb.mxu3 %v4276_v42  ;;  %v4253_v42 = vld [vmem:[#allocation2 + $0xc8] sm:$0xf0] }
 0x393   :  { %v4256_v54 = vor.u32 %v5092_v53, %v4253_v42  ;;  %v4292_v53 = vld [vmem:[#allocation2 + $0x3e0] sm:$0xf]  ;;  %v5122_v42 = vld [vmem:[#allocation2 + $0x3e4] sm:$0xf0] }
 0x396   :  { %1898 = vmatpush.bf16.msrb.mxu3 %v4268_v31  ;;  %v5090_v31 = vld [vmem:[#allocation2 + $0xb4] sm:$0xf] }
 0x397   :  { %v4248_v62 = vor.u32 %v5090_v31, %v4245_v61  ;;  %v4288_v61 = vld [vmem:[#allocation2 + $0x3d0] sm:$0xf] }
 0x39a   :  { %1899 = vmatpush.bf16.msrb.mxu3 %v4260_v18  ;;  %v5088_v18 = vld [vmem:[#allocation2 + $0xa4] sm:$0xf] }
 0x39e   :  { %1900 = vmatpush.bf16.msrb.mxu3 %v4252_v44  ;;  %v4240_v44 = vor.u32 %v5088_v18, %v4237_v17 }
 0x3a2   :  { %1901 = vmatpush.bf16.msrb.mxu3 %v4244_v5  ;;  %v4232_v5 = vor.u32 %v5086_v3, %v4229_v4  ;;  %v5120_v3 = vld [vmem:[#allocation2 + $0x3c4] sm:$0xf0] }
 0x3a6   :  { %1902 = vmatpush.bf16.msrb.mxu3 %v4236_v9 }
 0x3aa   :  { %1903 = vmatpush.bf16.msrb.mxu3 %v4228_v13 }
 0x3ae   :  { %1904 = vmatpush.bf16.msrb.mxu3 %v4220_v21 }
 0x3b1   :  { %1905 = vmatmul.bf16.vlgmr.msrb.gmra.mxu3 %v6283_v47 }
 0x3b2   :  { %1910 = vmatpush.bf16.msra.mxu3 %v4216_v63 }
 0x3b6   :  { %1911 = vmatpush.bf16.msra.mxu3 %v4208_v20  ;;  %v4281_v20 = vld [vmem:[%s6514_s4 + $0x7] ss:$8 sm:$0x3] }
 0x3b7   :  { %v1939_v2 = vperm.slane %v4281_v20, 0 }
 0x3ba   :  { %1912 = vmatpush.bf16.msra.mxu3 %v4200_v29 }
 0x3be   :  { %1913 = vmatpush.bf16.msra.mxu3 %v4192_v14 }
 0x3c2   :  { %1914 = vmatpush.bf16.msra.mxu3 %v4184_v28  ;;  %v1940_v28 = vperm.slane %v4281_v20, 1  ;;  %v5168_v20 = vld [vmem:[#allocation2 + $0x304] sm:$0xf] }
 0x3c4   :  { %v1681_v60 = vpop.f32.mrf.mxu3 }
 0x3c6   :  { %1915 = vmatpush.bf16.msra.mxu3 %v4176_v51 }
 0x3ca   :  { %1916 = vmatpush.bf16.msra.mxu3 %v4168_v6 }
 0x3cc   :  { %v1683_v43 = vpop.f32.mrf.mxu3 }
 0x3ce   :  { %1917 = vmatpush.bf16.msra.mxu3 %v4160_v1 }
 0x3d1   :  { %1918 = vmatmul.bf16.vlgmr.msra.gmra.mxu3 %v6278_v15 }
 0x3d2   :  { %1923 = vmatpush.bf16.msrb.mxu3 %v4280_v0 }
 0x3d4   :  { %v1694_v9 = vpop.f32.mrf.mxu3 }
 0x3d5   :  { %v1695_v11 = vadd.f32 %v1694_v9, %v1681_v60  ;;  %v4357_v9 = vld [vmem:[#allocation2 + $0x310] sm:$0xf] }
 0x3d6   :  { %1924 = vmatpush.bf16.msrb.mxu3 %v4272_v58  ;;  %v5123_v58 = vld [vmem:[#allocation2 + $0x3f4] sm:$0xf0] }
 0x3d7   :  { %v4297_v55 = vor.u32 %v5123_v58, %v4296_v10 }
 0x3da   :  { %1925 = vmatpush.bf16.msrb.mxu3 %v4264_v25 }
 0x3dc   :  { %v1696_v13 = vpop.f32.mrf.mxu3 }
 0x3de   :  { %1926 = vmatpush.bf16.msrb.mxu3 %v4256_v54  ;;  %v4293_v54 = vor.u32 %v5122_v42, %v4292_v53 }
 0x3e2   :  { %1927 = vmatpush.bf16.msrb.mxu3 %v4248_v62  ;;  %v5121_v62 = vld [vmem:[#allocation2 + $0x3d4] sm:$0xf0] }
 0x3e3   :  { %v4289_v17 = vor.u32 %v5121_v62, %v4288_v61  ;;  %v4309_v61 = vld [vmem:[#allocation2 + $0x2b0] sm:$0xf]  ;;  %v5159_v62 = vld [vmem:[#allocation2 + $0x2b4] sm:$0xf0] }
 0x3e6   :  { %1928 = vmatpush.bf16.msrb.mxu3 %v4240_v44  ;;  %v4284_v44 = vld [vmem:[#allocation2 + $0x3c0] sm:$0xf] }
 0x3e7   :  { %v4285_v4 = vor.u32 %v5120_v3, %v4284_v44  ;;  %v4431_v44 = vld [vmem:[#allocation2 + $0x200] sm:$0xf] }
 0x3ea   :  { %1929 = vmatpush.bf16.msrb.mxu3 %v4232_v5 }
 0x3ec   :  { %v1707_v39 = vpop.f32.mrf.mxu3 }
 0x3ee   :  { %1930 = vmatpush.bf16.msrb.mxu3 %v4224_v32  ;;  %v4349_v32 = vld [vmem:[#allocation2 + $0x300] sm:$0xf] }
 0x3f1   :  { %1931 = vmatmul.bf16.vlgmr.msrb.gmra.mxu3 %v6283_v47 }
 0x3f2   :  { %2027 = vmatpush.bf16.msra.mxu3 %v4297_v55  ;;  %v1979_v55 = vld [vmem:[%s6514_s4 + $0x10] ss:$0 sm:$0xff] }
 0x3f4   :  { %v1709_v16 = vpop.f32.mrf.mxu3 }
 0x3f5   :  { %v5169_v16 = vld [vmem:[#allocation2 + $0x304] sm:$0xf0] }
 0x3f6   :  { %2028 = vmatpush.bf16.msra.mxu3 %v4293_v54 }
 0x3fa   :  { %2029 = vmatpush.bf16.msra.mxu3 %v4289_v17  ;;  %v4310_v17 = vor.u32 %v5159_v62, %v4309_v61  ;;  %v4311_v61 = vld [vmem:[#allocation2 + $0x2b8] sm:$0xf0] }
 0x3fc   :  { %v1720_v49 = vpop.f32.mrf.mxu3 }
 0x3fd   :  { %v1721_v19 = vadd.f32 %v1720_v49, %v1707_v39  ;;  %v4350_v49 = vor.u32 %v5169_v16, %v4349_v32  ;;  %v5164_v32 = vld [vmem:[#allocation2 + $0x2e4] sm:$0xf]  ;;  %v4423_v16 = vld [vmem:[#allocation2 + $0x1f0] sm:$0xf] }
 0x3fe   :  { %2030 = vmatpush.bf16.msra.mxu3 %v4285_v4 }
 0x404   :  { %v1722_v21 = vpop.f32.mrf.mxu3 }
 0x405   :  { %v4341_v21 = vld [vmem:[#allocation2 + $0x2f0] sm:$0xf] }
 0x414   :  { %v1893_v63 = vpop.f32.mrf.mxu3 }
 0x415   :  { %v1894_v24 = vadd.f32 %v1893_v63, %v1695_v11  ;;  %v5171_v11 = vld [vmem:[#allocation2 + $0x314] sm:$0xf0] }
 0x416   :  { %v4358_v39 = vor.u32 %v5171_v11, %v4357_v9  ;;  %v5167_v63 = vld [vmem:[#allocation2 + $0x2f4] sm:$0xf0]  ;;  %v4301_v9 = vld [vmem:[#allocation2 + $0x2a0] sm:$0xf]  ;;  %v5157_v11 = vld [vmem:[#allocation2 + $0x2a4] sm:$0xf0] }
 0x418   :  { %2226 = vmatpush.bf16.msrb.mxu0 %v4358_v39  ;;  %v4335_v39 = vld [vmem:[#allocation2 + $0x2e8] sm:$0xf0] }
 0x41c   :  { %v1895_v26 = vpop.f32.mrf.mxu3  ;;  %2227 = vmatpush.bf16.msrb.mxu0 %v4350_v49  ;;  %v5135_v49 = vld [vmem:[#allocation2 + $0x1f4] sm:$0xf0] }
 0x434   :  { %v1906_v27 = vpop.f32.mrf.mxu3 }
 0x435   :  { %v1907_v29 = vadd.f32 %v1906_v27, %v1894_v24  ;;  %v4359_v24 = vld [vmem:[#allocation2 + $0x318] sm:$0xf0]  ;;  %v4439_v27 = vld [vmem:[#allocation2 + $0x210] sm:$0xf] }
 0x437   :  { %v6291_v30 = vadd.f32 %v1939_v2, %v1907_v29  ;;  %v4351_v2 = vld [vmem:[#allocation2 + $0x308] sm:$0xf0]  ;;  %v5139_v29 = vld [vmem:[#allocation2 + $0x214] sm:$0xf0] }
 0x439   :  { %vm1945_vm12 = vcmp.ge.f32.partialorder %v6291_v30, 0.0 }
 0x43c   :  { %v1908_v36 = vpop.f32.mrf.mxu3 }
 0x43d   :  { %v4342_v36 = vor.u32 %v5167_v63, %v4341_v21  ;;  %v4424_v21 = vor.u32 %v5135_v49, %v4423_v16  ;;  %v4503_v63 = vld [vmem:[#allocation2 + $0x290] sm:$0xf]  ;;  %v5147_v49 = vld [vmem:[#allocation2 + $0x254] sm:$0xf0] }
 0x43f   :  { %2228 = vmatpush.bf16.msrb.mxu0 %v4342_v36  ;;  %v4327_v36 = vld [vmem:[#allocation2 + $0x2d8] sm:$0xf0] }
 0x454   :  { %v1919_v14 = vpop.f32.mrf.mxu3 }
 0x455   :  { %v1920_v45 = vadd.f32 %v1919_v14, %v1721_v19  ;;  %v5170_v19 = vld [vmem:[#allocation2 + $0x314] sm:$0xf]  ;;  %v4354_v14 = vor.u32 %v5168_v20, %v4351_v2  ;;  %v4365_v20 = vld [vmem:[#allocation2 + $0x320] sm:$0xf]  ;;  %v5173_v2 = vld [vmem:[#allocation2 + $0x324] sm:$0xf0] }
 0x456   :  { %v4362_v26 = vor.u32 %v5170_v19, %v4359_v24  ;;  %v4338_v19 = vor.u32 %v5164_v32, %v4335_v39  ;;  %v5155_v24 = vld [vmem:[#allocation2 + $0x294] sm:$0xf0]  ;;  %v4391_v32 = vld [vmem:[#allocation2 + $0x1b0] sm:$0xf] }
 0x457   :  { %v4471_v39 = vld [vmem:[#allocation2 + $0x250] sm:$0xf] }
 0x458   :  { %2252 = vmatpush.bf16.msrb.mxu1 %v4362_v26  ;;  %v4504_v26 = vor.u32 %v5155_v24, %v4503_v63  ;;  %v4472_v63 = vor.u32 %v5147_v49, %v4471_v39 }
 0x45c   :  { %v1921_v41 = vpop.f32.mrf.mxu3  ;;  %2253 = vmatpush.bf16.msrb.mxu1 %v4354_v14  ;;  %v5174_v14 = vld [vmem:[#allocation2 + $0x334] sm:$0xf] }
 0x45d   :  { %v4440_v41 = vor.u32 %v5139_v29, %v4439_v27  ;;  %v4366_v27 = vor.u32 %v5173_v2, %v4365_v20  ;;  %v5162_v29 = vld [vmem:[#allocation2 + $0x2d4] sm:$0xf]  ;;  %v4505_v20 = vld [vmem:[#allocation2 + $0x298] sm:$0xf0] }
 0x45f   :  { %2438 = vmatpush.bf16.msrb.mxu2 %v4440_v41  ;;  %v4330_v41 = vor.u32 %v5162_v29, %v4327_v36  ;;  %v5125_v29 = vld [vmem:[#allocation2 + $0x1a4] sm:$0xf0]  ;;  %v4463_v36 = vld [vmem:[#allocation2 + $0x240] sm:$0xf] }
 0x474   :  { %v1932_v50 = vpop.f32.mrf.mxu3 }
 0x475   :  { %v1933_v23 = vadd.f32 %v1932_v50, %v1920_v45  ;;  %v4333_v45 = vld [vmem:[#allocation2 + $0x2e0] sm:$0xf] }
 0x477   :  { %v1944_v51 = vadd.f32 %v1940_v28, %v1933_v23  ;;  %v5165_v28 = vld [vmem:[#allocation2 + $0x2e4] sm:$0xf0] }
 0x479   :  { %v1949_v46 = vsel %vm1948_vm4, %v1944_v51, 0.0 }
 0x47a   :  { %v1950_v52 = vrot.slane %v1949_v46, 4 }
 0x47c   :  { %v1951_v6 = vadd.f32 %v1950_v52, %v1949_v46  ;;  %v1934_v33 = vpop.f32.mrf.mxu3  ;;  %v4325_v52 = vld [vmem:[#allocation2 + $0x2d0] sm:$0xf] }
 0x47e   :  { %v1952_v37 = vrot.slane %v1951_v6, 2 }
 0x480   :  { %v1953_v38 = vadd.f32 %v1952_v37, %v1951_v6  ;;  %v5163_v6 = vld [vmem:[#allocation2 + $0x2d4] sm:$0xf0] }
 0x481   :  { %v4326_v37 = vor.u32 %v5163_v6, %v4325_v52  ;;  %v5153_v52 = vld [vmem:[#allocation2 + $0x284] sm:$0xf0] }
 0x482   :  { %v1954_v35 = vrot.slane %v1953_v38, 1 }
 0x484   :  { %v1955_v1 = vadd.f32 %v1954_v35, %v1953_v38  ;;  %v4317_v35 = vld [vmem:[#allocation2 + $0x2c0] sm:$0xf] }
 0x486   :  { %v1956_v0 = vmul.f32 %v1955_v1, %v6169_v8  ;;  %v5161_v1 = vld [vmem:[#allocation2 + $0x2c4] sm:$0xf0] }
 0x487   :  { %v4318_v10 = vor.u32 %v5161_v1, %v4317_v35  ;;  %v4367_v1 = vld [vmem:[#allocation2 + $0x328] sm:$0xf0] }
 0x488   :  { %v6295_v22 = vsub.f32 %v1944_v51, %v1956_v0  ;;  %v4334_v51 = vor.u32 %v5165_v28, %v4333_v45  ;;  %v4375_v45 = vld [vmem:[#allocation2 + $0x338] sm:$0xf0]  ;;  %v4415_v28 = vld [vmem:[#allocation2 + $0x1e0] sm:$0xf] }
 0x48a   :  { %v1958_v56 = vmul.f32 %v6295_v22, %v6295_v22  ;;  %2229 = vmatpush.bf16.msrb.mxu0 %v4334_v51 }
 0x48c   :  { %v1959_v25 = vsel %vm1948_vm4, %v1958_v56, 0.0 }
 0x48d   :  { %v1960_v60 = vrot.slane %v1959_v25, 4 }
 0x48e   :  { %2230 = vmatpush.bf16.msrb.mxu0 %v4326_v37  ;;  %v4319_v37 = vld [vmem:[#allocation2 + $0x2c8] sm:$0xf0] }
 0x48f   :  { %v1961_v31 = vadd.f32 %v1960_v60, %v1959_v25  ;;  %v1981_v25 = vld [vmem:[%s6514_s4 + $0x11] ss:$0 sm:$0xff] }
 0x491   :  { %v1962_v18 = vrot.slane %v1961_v31, 2 }
 0x492   :  { %2231 = vmatpush.bf16.msrb.mxu0 %v4318_v10  ;;  %v5131_v10 = vld [vmem:[#allocation2 + $0x1d4] sm:$0xf0] }
 0x493   :  { %v1963_v43 = vadd.f32 %v1962_v18, %v1961_v31  ;;  %v5166_v18 = vld [vmem:[#allocation2 + $0x2f4] sm:$0xf] }
 0x495   :  { %v1964_v5 = vrot.slane %v1963_v43, 1 }
 0x496   :  { %2232 = vmatpush.bf16.msrb.mxu0 %v4310_v17  ;;  %v5129_v17 = vld [vmem:[#allocation2 + $0x1c4] sm:$0xf0] }
 0x497   :  { %v1965_v7 = vadd.f32 %v1964_v5, %v1963_v43  ;;  %v4343_v43 = vld [vmem:[#allocation2 + $0x2f8] sm:$0xf0]  ;;  %v4373_v5 = vld [vmem:[#allocation2 + $0x330] sm:$0xf] }
 0x498   :  { %v4346_v3 = vor.u32 %v5166_v18, %v4343_v43  ;;  %v4399_v18 = vld [vmem:[#allocation2 + $0x1c0] sm:$0xf] }
 0x499   :  { %v1966_v12 = vmul.f32 %v1965_v7, %v6169_v8  ;;  %v5175_v7 = vld [vmem:[#allocation2 + $0x334] sm:$0xf0]  ;;  %v4479_v43 = vld [vmem:[#allocation2 + $0x260] sm:$0xf] }
 0x49a   :  { %2254 = vmatpush.bf16.msrb.mxu1 %v4346_v3  ;;  %v5136_v3 = vld [vmem:[#allocation2 + $0x204] sm:$0xf] }
 0x49b   :  { %v1967_v13 = vadd.f32 1e-05, %v1966_v12  ;;  %v4374_v12 = vor.u32 %v5175_v7, %v4373_v5 }
 0x49d   :  { %5407 = vrsqrt.f32 %v1967_v13  ;;  %vm1974_vm6 = vweird.f32 %v1967_v13  ;;  %2245 = vmatpush.bf16.msrb.mxu3 %v4374_v12  ;;  %v5156_v12 = vld [vmem:[#allocation2 + $0x2a4] sm:$0xf] }
 0x49e   :  { %2255 = vmatpush.bf16.msrb.mxu1 %v4338_v19  ;;  %v5134_v19 = vld [vmem:[#allocation2 + $0x1f4] sm:$0xf] }
 0x4a1   :  { %2246 = vmatpush.bf16.msrb.mxu3 %v4366_v27  ;;  %v4383_v27 = vld [vmem:[#allocation2 + $0x1a0] sm:$0xf] }
 0x4a2   :  { %2256 = vmatpush.bf16.msrb.mxu1 %v4330_v41  ;;  %v5145_v41 = vld [vmem:[#allocation2 + $0x244] sm:$0xf0] }
 0x4a3   :  { %v5408_v50 = vpop.eup %5407 }
 0x4a4   :  { %v1969_v23 = vmul.f32 %v5408_v50, %v1967_v13  ;;  %vm1975_vm5 = vweird.f32 %v5408_v50  ;;  %v4302_v13 = vor.u32 %v5157_v11, %v4301_v9  ;;  %v4303_v9 = vld [vmem:[#allocation2 + $0x2a8] sm:$0xf0] }
 0x4a5   :  { %vm1976_vm7 = vmor %vm1974_vm6, %vm1975_vm5  ;;  %v4306_v11 = vor.u32 %v5156_v12, %v4303_v9  ;;  %v5191_v9 = vld [vmem:[#allocation2 + $0x3b4] sm:$0xf0] }
 0x4a6   :  { %v1970_v46 = vmul.f32 %v5408_v50, %v1969_v23  ;;  %2233 = vmatpush.bf16.msrb.mxu0 %v4302_v13  ;;  %v4378_v23 = vor.u32 %v5174_v14, %v4375_v45  ;;  %v5127_v13 = vld [vmem:[#allocation2 + $0x1b4] sm:$0xf0]  ;;  %v4384_v14 = vor.u32 %v5125_v29, %v4383_v27  ;;  %v5132_v45 = vld [vmem:[#allocation2 + $0x1e4] sm:$0xf]  ;;  %v5189_v29 = vld [vmem:[#allocation2 + $0x3a4] sm:$0xf0] }
 0x4a7   :  { %v4392_v16 = vor.u32 %v5127_v13, %v4391_v32  ;;  %v4569_v32 = vld [vmem:[#allocation2 + $0x3b8] sm:$0xf0] }
 0x4a8   :  { %v1971_v33 = vmul.f32 0.5, %v1970_v46  ;;  %v4495_v46 = vld [vmem:[#allocation2 + $0x280] sm:$0xf] }
 0x4a9   :  { %2234 = vmatmul.bf16.vlgmr.msrb.gmra.mxu0 %v6266_v40  ;;  %v4496_v6 = vor.u32 %v5153_v52, %v4495_v46  ;;  %v4497_v46 = vld [vmem:[#allocation2 + $0x288] sm:$0xf0] }
 0x4aa   :  { %v1972_v38 = vsub.f32 1.5, %v1971_v33  ;;  %2451 = vmatpush.bf16.msra.mxu0 %v4504_v26  ;;  %v5160_v33 = vld [vmem:[#allocation2 + $0x2c4] sm:$0xf]  ;;  %v5154_v26 = vld [vmem:[#allocation2 + $0x294] sm:$0xf] }
 0x4ab   :  { %v4322_v35 = vor.u32 %v5160_v33, %v4319_v37  ;;  %v4508_v2 = vor.u32 %v5154_v26, %v4505_v20  ;;  %v5143_v33 = vld [vmem:[#allocation2 + $0x234] sm:$0xf0]  ;;  %v5130_v37 = vld [vmem:[#allocation2 + $0x1d4] sm:$0xf]  ;;  %v4465_v26 = vld [vmem:[#allocation2 + $0x248] sm:$0xf0] }
 0x4ac   :  { %v1973_v0 = vmul.f32 %v5408_v50, %v1972_v38  ;;  %v5172_v38 = vld [vmem:[#allocation2 + $0x324] sm:$0xf]  ;;  %v4559_v20 = vld [vmem:[#allocation2 + $0x3a0] sm:$0xf] }
 0x4ad   :  { %2257 = vmatpush.bf16.msrb.mxu1 %v4322_v35  ;;  %v4409_v35 = vld [vmem:[#allocation2 + $0x1d8] sm:$0xf0] }
 0x4ae   :  { %v1977_v58 = vsel %vm1976_vm7, %v5408_v50, %v1973_v0  ;;  %v5133_v50 = vld [vmem:[#allocation2 + $0x1e4] sm:$0xf0]  ;;  %2452 = vmatpush.bf16.msra.mxu0 %v4496_v6  ;;  %v4407_v0 = vld [vmem:[#allocation2 + $0x1d0] sm:$0xf] }
 0x4af   :  { %v1978_v56 = vmul.f32 %v1977_v58, %v6295_v22  ;;  %v5137_v22 = vld [vmem:[#allocation2 + $0x204] sm:$0xf0]  ;;  %v4416_v51 = vor.u32 %v5133_v50, %v4415_v28  ;;  %v4370_v58 = vor.u32 %v5172_v38, %v4367_v1  ;;  %v4417_v28 = vld [vmem:[#allocation2 + $0x1e8] sm:$0xf0]  ;;  %v4464_v50 = vor.u32 %v5145_v41, %v4463_v36  ;;  %v4455_v6 = vld [vmem:[#allocation2 + $0x230] sm:$0xf] }
 0x4b0   :  { %v4432_v4 = vor.u32 %v5137_v22, %v4431_v44  ;;  %v4400_v44 = vor.u32 %v5129_v17, %v4399_v18  ;;  %v5149_v22 = vld [vmem:[#allocation2 + $0x264] sm:$0xf0]  ;;  %v4456_v38 = vor.u32 %v5143_v33, %v4455_v6  ;;  %v5150_v1 = vld [vmem:[#allocation2 + $0x274] sm:$0xf]  ;;  %v5188_v36 = vld [vmem:[#allocation2 + $0x3a4] sm:$0xf]  ;;  %v4560_v41 = vor.u32 %v5189_v29, %v4559_v20 }
 0x4b1   :  { %v1980_v53 = vmul.f32 %v1979_v55, %v1978_v56  ;;  %v4408_v55 = vor.u32 %v5131_v10, %v4407_v0  ;;  %v4487_v56 = vld [vmem:[#allocation2 + $0x270] sm:$0xf]  ;;  %v4480_v5 = vor.u32 %v5149_v22, %v4479_v43  ;;  %v4489_v0 = vld [vmem:[#allocation2 + $0x278] sm:$0xf0]  ;;  %v1995_v10 = vld [vmem:[%s6514_s4 + $0x12] ss:$0 sm:$0xff] }
 0x4b2   :  { %2439 = vmatpush.bf16.msrb.mxu2 %v4432_v4  ;;  %v4433_v4 = vld [vmem:[#allocation2 + $0x208] sm:$0xf0]  ;;  %v5126_v43 = vld [vmem:[#allocation2 + $0x1b4] sm:$0xf] }
 0x4b3   :  { %v1982_v42 = vadd.f32 %v1981_v25, %v1980_v53  ;;  %v5151_v25 = vld [vmem:[#allocation2 + $0x274] sm:$0xf0]  ;;  %v5138_v53 = vld [vmem:[#allocation2 + $0x214] sm:$0xf]  ;;  %v4436_v7 = vor.u32 %v5136_v3, %v4433_v4  ;;  %v4473_v4 = vld [vmem:[#allocation2 + $0x258] sm:$0xf0] }
 0x4b4   :  { %v5146_v3 = vld [vmem:[#allocation2 + $0x254] sm:$0xf] }
 0x4b5   :  { %vm1983_vm8 = vcmp.ge.f32.partialorder %v1982_v42, 0.0  ;;  %v1984_v60 = vmul.f32 0.2, %v1982_v42  ;;  %v4476_v12 = vor.u32 %v5146_v3, %v4473_v4  ;;  %v5186_v6 = vld [vmem:[#allocation2 + $0x394] sm:$0xf] }
 0x4b6   :  { %2440 = vmatpush.bf16.msrb.mxu2 %v4424_v21  ;;  %v4425_v21 = vld [vmem:[#allocation2 + $0x1f8] sm:$0xf0]  ;;  %v5180_v3 = vld [vmem:[#allocation2 + $0x364] sm:$0xf] }
 0x4b7   :  { %v1985_v54 = vsel %vm1983_vm8, %v1982_v42, %v1984_v60  ;;  %v4488_v42 = vor.u32 %v5151_v25, %v4487_v56  ;;  %v4441_v60 = vld [vmem:[#allocation2 + $0x218] sm:$0xf0]  ;;  %v4428_v24 = vor.u32 %v5134_v19, %v4425_v21  ;;  %v4447_v56 = vld [vmem:[#allocation2 + $0x220] sm:$0xf]  ;;  %v5141_v25 = vld [vmem:[#allocation2 + $0x224] sm:$0xf0] }
 0x4b8   :  { %v1994_v31 = vpack.c.bf16 %v1985_v54, %v1985_v54  ;;  %v4444_v54 = vor.u32 %v5138_v53, %v4441_v60  ;;  %v5128_v53 = vld [vmem:[#allocation2 + $0x1c4] sm:$0xf]  ;;  %v4448_v60 = vor.u32 %v5141_v25, %v4447_v56  ;;  %v4385_v21 = vld [vmem:[#allocation2 + $0x1a8] sm:$0xf0] }
 0x4b9   :  { %2453 = vmatpush.bf16.msra.mxu0 %v4488_v42  ;;  %v5124_v19 = vld [vmem:[#allocation2 + $0x1a4] sm:$0xf]  ;;  %v4545_v25 = vld [vmem:[#allocation2 + $0x388] sm:$0xf0] }
 0x4ba   :  { %4298 = vmatmul.msk.bf16.vlgmr.msra.gmra.mxu3 %vm762_vm0, %v1994_v31  ;;  %2441 = vmatpush.bf16.msrb.mxu2 %v4416_v51  ;;  %v5158_v31 = vld [vmem:[#allocation2 + $0x2b4] sm:$0xf]  ;;  %v5152_v51 = vld [vmem:[#allocation2 + $0x284] sm:$0xf] }
 0x4bb   :  { %2271 = vmatpush.bf16.msra.mxu3 %v4378_v23  ;;  %v4314_v62 = vor.u32 %v5158_v31, %v4311_v61  ;;  %v4420_v23 = vor.u32 %v5132_v45, %v4417_v28  ;;  %v4500_v52 = vor.u32 %v5152_v51, %v4497_v46  ;;  %v5148_v31 = vld [vmem:[#allocation2 + $0x264] sm:$0xf]  ;;  %v4481_v61 = vld [vmem:[#allocation2 + $0x268] sm:$0xf0]  ;;  %v4551_v46 = vld [vmem:[#allocation2 + $0x390] sm:$0xf] }
 0x4bc   :  { %v4484_v18 = vor.u32 %v5148_v31, %v4481_v61  ;;  %v5184_v56 = vld [vmem:[#allocation2 + $0x384] sm:$0xf]  ;;  %v4535_v61 = vld [vmem:[#allocation2 + $0x370] sm:$0xf] }
 0x4bd   :  { %2258 = vmatpush.bf16.msrb.mxu1 %v4314_v62  ;;  %2454 = vmatpush.bf16.msra.mxu0 %v4480_v5  ;;  %v4567_v5 = vld [vmem:[#allocation2 + $0x3b0] sm:$0xf] }
 0x4be   :  { %2442 = vmatpush.bf16.msrb.mxu2 %v4408_v55  ;;  %v4568_v13 = vor.u32 %v5191_v9, %v4567_v5  ;;  %v4529_v5 = vld [vmem:[#allocation2 + $0x368] sm:$0xf0] }
 0x4bf   :  { %2272 = vmatpush.bf16.msra.mxu3 %v4370_v58  ;;  %v4492_v58 = vor.u32 %v5150_v1, %v4489_v0  ;;  %v5140_v0 = vld [vmem:[#allocation2 + $0x224] sm:$0xf] }
 0x4c1   :  { %2259 = vmatpush.bf16.msrb.mxu1 %v4306_v11  ;;  %2455 = vmatpush.bf16.msra.mxu0 %v4472_v63  ;;  %v5190_v11 = vld [vmem:[#allocation2 + $0x3b4] sm:$0xf]  ;;  %v4388_v63 = vor.u32 %v5124_v19, %v4385_v21  ;;  %v5177_v21 = vld [vmem:[#allocation2 + $0x344] sm:$0xf0] }
 0x4c2   :  { %2443 = vmatpush.bf16.msrb.mxu2 %v4400_v44  ;;  %v4393_v44 = vld [vmem:[#allocation2 + $0x1b8] sm:$0xf0]  ;;  %v4572_v39 = vor.u32 %v5190_v11, %v4569_v32  ;;  %v4519_v11 = vld [vmem:[#allocation2 + $0x350] sm:$0xf]  ;;  %v5179_v32 = vld [vmem:[#allocation2 + $0x354] sm:$0xf0] }
 0x4c3   :  { %v4396_v22 = vor.u32 %v5126_v43, %v4393_v44  ;;  %v4527_v44 = vld [vmem:[#allocation2 + $0x360] sm:$0xf] }
 0x4c4   :  { %2260 = vmatmul.bf16.vlgmr.msrb.gmra.mxu1 %v6266_v40  ;;  %v4412_v40 = vor.u32 %v5130_v37, %v4409_v35 }
 0x4c5   :  { %2477 = vmatpush.bf16.msra.mxu1 %v4508_v2  ;;  %2456 = vmatpush.bf16.msra.mxu0 %v4464_v50  ;;  %v5142_v50 = vld [vmem:[#allocation2 + $0x234] sm:$0xf] }
 0x4c6   :  { %2444 = vmatpush.bf16.msrb.mxu2 %v4392_v16 }
 0x4c9   :  { %2478 = vmatpush.bf16.msra.mxu1 %v4500_v52  ;;  %2457 = vmatpush.bf16.msra.mxu0 %v4456_v38  ;;  %v5187_v52 = vld [vmem:[#allocation2 + $0x394] sm:$0xf0]  ;;  %v4553_v38 = vld [vmem:[#allocation2 + $0x398] sm:$0xf0] }
 0x4ca   :  { %4379 = vmatmul.msk.bf16.vlgmr.msrb.gmra.mxu3 %vm1668_vm3, %v6269_v57  ;;  %2445 = vmatpush.bf16.msrb.mxu2 %v4384_v14  ;;  %v4561_v14 = vld [vmem:[#allocation2 + $0x3a8] sm:$0xf0]  ;;  %v4552_v37 = vor.u32 %v5187_v52, %v4551_v46  ;;  %v4556_v35 = vor.u32 %v5186_v6, %v4553_v38  ;;  %v2066_v46 = vld [vmem:[%s6514_s4 + $0x13] ss:$0 sm:$0xff]  ;;  %v1946_v6 = vmul.f32 0.2, %v6291_v30 }
 0x4cb   :  { %2464 = vmatpush.bf16.msrb.mxu3 %v4444_v54  ;;  %v4401_v54 = vld [vmem:[#allocation2 + $0x1c8] sm:$0xf0]  ;;  %v4564_v45 = vor.u32 %v5188_v36, %v4561_v14 }
 0x4cc   :  { %v4404_v62 = vor.u32 %v5128_v53, %v4401_v54  ;;  %v4548_v54 = vor.u32 %v5184_v56, %v4545_v25 }
 0x4cd   :  { %2446 = vmatmul.bf16.vlgmr.msrb.gmra.mxu2 %v6278_v15  ;;  %2479 = vmatpush.bf16.msra.mxu1 %v4492_v58 }
 0x4ce   :  { %2458 = vmatpush.bf16.msra.mxu0 %v4448_v60  ;;  %2587 = vmatpush.bf16.msra.mxu2 %v4568_v13  ;;  %v5178_v13 = vld [vmem:[#allocation2 + $0x354] sm:$0xf] }
 0x4cf   :  { %2465 = vmatpush.bf16.msrb.mxu3 %v4436_v7 }
 0x4d1   :  { %2480 = vmatpush.bf16.msra.mxu1 %v4484_v18  ;;  %2459 = vmatmul.bf16.vlgmr.msra.gmra.mxu0 %v6283_v47  ;;  %v4537_v18 = vld [vmem:[#allocation2 + $0x378] sm:$0xf0] }
 0x4d2   :  { %2600 = vmatpush.bf16.msrb.mxu0 %v4572_v39  ;;  %2588 = vmatpush.bf16.msra.mxu2 %v4560_v41 }
 0x4d3   :  { %2466 = vmatpush.bf16.msrb.mxu3 %v4428_v24  ;;  %v5144_v24 = vld [vmem:[#allocation2 + $0x244] sm:$0xf] }
 0x4d4   :  { %v4468_v27 = vor.u32 %v5144_v24, %v4465_v26  ;;  %v5176_v24 = vld [vmem:[#allocation2 + $0x344] sm:$0xf]  ;;  %v4513_v26 = vld [vmem:[#allocation2 + $0x348] sm:$0xf0] }
 0x4d5   :  { %2481 = vmatpush.bf16.msra.mxu1 %v4476_v12  ;;  %v4532_v12 = vor.u32 %v5180_v3, %v4529_v5  ;;  %v4573_v5 = vld [vmem:[%s6514_s4 + $0x15] ss:$8 sm:$0x3] }
 0x4d6   :  { %2601 = vmatpush.bf16.msrb.mxu0 %v4564_v45  ;;  %2589 = vmatpush.bf16.msra.mxu2 %v4552_v37 }
 0x4d7   :  { %2467 = vmatpush.bf16.msrb.mxu3 %v4420_v23  ;;  %v4457_v23 = vld [vmem:[#allocation2 + $0x238] sm:$0xf0] }
 0x4d8   :  { %v4460_v51 = vor.u32 %v5142_v50, %v4457_v23 }
 0x4d9   :  { %2482 = vmatpush.bf16.msra.mxu1 %v4468_v27  ;;  %v4516_v27 = vor.u32 %v5176_v24, %v4513_v26 }
 0x4da   :  { %4380 = vmatmul.msk.bf16.vlgmr.msra.gmra.mxu3 %vm1668_vm3, %v6269_v57  ;;  %2602 = vmatpush.bf16.msrb.mxu0 %v4556_v35  ;;  %v1947_v35 = vsel %vm1945_vm12, %v6291_v30, %v1946_v6 }
 0x4db   :  { %2468 = vmatpush.bf16.msrb.mxu3 %v4412_v40  ;;  %v4543_v40 = vld [vmem:[#allocation2 + $0x380] sm:$0xf] }
 0x4dd   :  { %2483 = vmatpush.bf16.msra.mxu1 %v4460_v51 }
 0x4de   :  { %2603 = vmatpush.bf16.msrb.mxu0 %v4548_v54 }
 0x4df   :  { %2469 = vmatpush.bf16.msrb.mxu3 %v4404_v62  ;;  %v5182_v62 = vld [vmem:[#allocation2 + $0x374] sm:$0xf] }
 0x4e0   :  { %v4540_v43 = vor.u32 %v5182_v62, %v4537_v18 }
 0x4e2   :  { %2604 = vmatpush.bf16.msrb.mxu0 %v4540_v43 }
 0x4e3   :  { %2470 = vmatpush.bf16.msrb.mxu3 %v4396_v22  ;;  %v5181_v22 = vld [vmem:[#allocation2 + $0x364] sm:$0xf0] }
 0x4e6   :  { %2605 = vmatpush.bf16.msrb.mxu0 %v4532_v12  ;;  %v2619_v12 = vperm.slane %v4573_v5, 1 }
 0x4e7   :  { %2471 = vmatpush.bf16.msrb.mxu3 %v4388_v63 }
 0x4ea   :  { %2472 = vmatmul.bf16.vlgmr.msrb.gmra.mxu3 %v6278_v15  ;;  %v5183_v15 = vld [vmem:[#allocation2 + $0x374] sm:$0xf0] }
 0x53d   :  { %v2032_v55 = vpop.f32.mrf.mxu3 }
 0x53e   :  { %v6319_v42 = vadd.f32 %v2032_v55, %v1995_v10  ;;  %v4449_v10 = vld [vmem:[#allocation2 + $0x228] sm:$0xf0]  ;;  %v5185_v55 = vld [vmem:[#allocation2 + $0x384] sm:$0xf0] }
 0x53f   :  { %v4452_v58 = vor.u32 %v5140_v0, %v4449_v10  ;;  %v4544_v60 = vor.u32 %v5185_v55, %v4543_v40 }
 0x540   :  { %v2036_v57 = vsel %vm1318_vm2, %v6319_v42, 0.0 }
 0x541   :  { %v2037_v17 = vrot.slane %v2036_v57, 4  ;;  %2484 = vmatpush.bf16.msra.mxu1 %v4452_v58  ;;  %2590 = vmatpush.bf16.msra.mxu2 %v4544_v60  ;;  %v2235_v58 = vpop.f32.mrf.mxu0 }
 0x543   :  { %v2038_v7 = vadd.f32 %v2037_v17, %v2036_v57  ;;  %v4536_v17 = vor.u32 %v5183_v15, %v4535_v61 }
 0x544   :  { %2485 = vmatmul.bf16.vlgmr.msra.gmra.mxu1 %v6283_v47  ;;  %v4511_v47 = vld [vmem:[#allocation2 + $0x340] sm:$0xf] }
 0x545   :  { %v2039_v16 = vrot.slane %v2038_v7, 2  ;;  %v2034_v49 = vpop.f32.mrf.mxu3  ;;  %2591 = vmatpush.bf16.msra.mxu2 %v4536_v17 }
 0x546   :  { %v4520_v49 = vor.u32 %v5179_v32, %v4519_v11 }
 0x547   :  { %v2040_v2 = vadd.f32 %v2039_v16, %v2038_v7  ;;  %v4528_v7 = vor.u32 %v5181_v22, %v4527_v44  ;;  %v4521_v16 = vld [vmem:[#allocation2 + $0x358] sm:$0xf0] }
 0x548   :  { %v4524_v19 = vor.u32 %v5178_v13, %v4521_v16 }
 0x549   :  { %v2041_v28 = vrot.slane %v2040_v2, 1  ;;  %2592 = vmatpush.bf16.msra.mxu2 %v4528_v7  ;;  %v2237_v55 = vpop.f32.mrf.mxu0 }
 0x54a   :  { %2606 = vmatpush.bf16.msrb.mxu0 %v4524_v19 }
 0x54b   :  { %v2042_v33 = vadd.f32 %v2041_v28, %v2040_v2  ;;  %v4512_v2 = vor.u32 %v5177_v21, %v4511_v47 }
 0x54d   :  { %v2043_v1 = vmul.f32 %v2042_v33, %v6169_v8  ;;  %2593 = vmatpush.bf16.msra.mxu2 %v4520_v49  ;;  %v2068_v33 = vld [vmem:[%s6514_s4 + $0x14] ss:$0 sm:$0xff]  ;;  %v2248_v56 = vpop.f32.mrf.mxu3 }
 0x54e   :  { %2607 = vmatpush.bf16.msrb.mxu0 %v4516_v27  ;;  %v2249_v25 = vadd.f32 %v2248_v56, %v2235_v58 }
 0x54f   :  { %v6327_v53 = vsub.f32 %v6319_v42, %v2043_v1 }
 0x550   :  { %v2447_v61 = vpop.f32.mrf.mxu2 }
 0x551   :  { %v2045_v31 = vmul.f32 %v6327_v53, %v6327_v53  ;;  %2594 = vmatpush.bf16.msra.mxu2 %v4512_v2  ;;  %v2448_v15 = vadd.f32 %v2447_v61, %v2249_v25  ;;  %v2460_v62 = vpop.f32.mrf.mxu0 }
 0x553   :  { %v2046_v57 = vsel %vm1318_vm2, %v2045_v31, 0.0  ;;  %v2461_v18 = vadd.f32 %v2460_v62, %v2448_v15 }
 0x554   :  { %v2047_v42 = vrot.slane %v2046_v57, 4 }
 0x555   :  { %v2250_v60 = vpop.f32.mrf.mxu3 }
 0x556   :  { %v2048_v4 = vadd.f32 %v2047_v42, %v2046_v57 }
 0x558   :  { %v2049_v9 = vrot.slane %v2048_v4, 2  ;;  %v2449_v57 = vpop.f32.mrf.mxu2 }
 0x559   :  { %v2462_v17 = vpop.f32.mrf.mxu0  ;;  %v2659_v57 = vld [vmem:[%s6514_s4 + $0x17] ss:$0 sm:$0xff] }
 0x55a   :  { %v2050_v39 = vadd.f32 %v2049_v9, %v2048_v4 }
 0x55c   :  { %v2051_v63 = vrot.slane %v2050_v39, 1 }
 0x55d   :  { %v2274_v31 = vpop.f32.mrf.mxu3 }
 0x55e   :  { %v2052_v20 = vadd.f32 %v2051_v63, %v2050_v39  ;;  %v2618_v39 = vperm.slane %v4573_v5, 0 }
 0x560   :  { %v2053_v29 = vmul.f32 %v2052_v20, %v6169_v8 }
 0x562   :  { %v2054_v36 = vadd.f32 1e-05, %v2053_v29 }
 0x564   :  { %5409 = vrsqrt.f32 %v2054_v36  ;;  %vm2061_vm10 = vweird.f32 %v2054_v36 }
 0x565   :  { %v2276_v30 = vpop.f32.mrf.mxu3 }
 0x56a   :  { %v5410_v14 = vpop.eup %5409 }
 0x56b   :  { %v2056_v41 = vmul.f32 %v5410_v14, %v2054_v36  ;;  %vm2062_vm9 = vweird.f32 %v5410_v14 }
 0x56c   :  { %vm2063_vm11 = vmor %vm2061_vm10, %vm2062_vm9 }
 0x56d   :  { %v2057_v45 = vmul.f32 %v5410_v14, %v2056_v41  ;;  %v2473_v43 = vpop.f32.mrf.mxu3  ;;  %v5195_v41 = vld [vmem:[#allocation2 + $0x3f8] sm:$0xf0] }
 0x56f   :  { %v2058_v28 = vmul.f32 0.5, %v2057_v45 }
 0x571   :  { %v2059_v50 = vsub.f32 1.5, %v2058_v28 }
 0x573   :  { %v2060_v23 = vmul.f32 %v5410_v14, %v2059_v50 }
 0x575   :  { %v2064_v51 = vsel %vm2063_vm11, %v5410_v14, %v2060_v23  ;;  %v2475_v44 = vpop.f32.mrf.mxu3  ;;  %v4588_v14 = vld [vmem:[#allocation2 + $0x3f4] sm:$0xf]  ;;  %v4584_v23 = vld [vmem:[#allocation2 + $0x3e4] sm:$0xf] }
 0x576   :  { %v2065_v52 = vmul.f32 %v2064_v51, %v6327_v53  ;;  %v2261_v53 = vpop.f32.mrf.mxu1  ;;  %v4589_v45 = vor.u32 %v5195_v41, %v4588_v14  ;;  %v5194_v51 = vld [vmem:[#allocation2 + $0x3e8] sm:$0xf0] }
 0x577   :  { %v2275_v3 = vadd.f32 %v2274_v31, %v2261_v53 }
 0x578   :  { %v2067_v37 = vmul.f32 %v2066_v46, %v2065_v52  ;;  %2705 = vmatpush.bf16.msra.mxu3 %v4589_v45  ;;  %v4585_v52 = vor.u32 %v5194_v51, %v4584_v23 }
 0x579   :  { %v2474_v4 = vadd.f32 %v2473_v43, %v2275_v3  ;;  %v2673_v3 = vld [vmem:[%s6514_s4 + $0x20] ss:$0 sm:$0xff] }
 0x57a   :  { %v2069_v38 = vadd.f32 %v2068_v33, %v2067_v37  ;;  %v4580_v33 = vld [vmem:[#allocation2 + $0x3d4] sm:$0xf]  ;;  %v5193_v37 = vld [vmem:[#allocation2 + $0x3d8] sm:$0xf0] }
 0x57c   :  { %v2070_v1 = vadd.f32 %v2069_v38, %v1947_v35  ;;  %2706 = vmatpush.bf16.msra.mxu3 %v4585_v52  ;;  %v4581_v35 = vor.u32 %v5193_v37, %v4580_v33  ;;  %v4601_v52 = vld [vmem:[#allocation2 + $0x720] sm:$0xf] }
 0x57e   :  { %vm2071_vm13 = vcmp.ge.f32.partialorder %v2070_v1, 0.0  ;;  %v2072_v0 = vmul.f32 0.2, %v2070_v1  ;;  %v2263_v54 = vpop.f32.mrf.mxu1 }
 0x580   :  { %v2073_v10 = vsel %vm2071_vm13, %v2070_v1, %v2072_v0  ;;  %2707 = vmatpush.bf16.msra.mxu3 %v4581_v35  ;;  %v4576_v0 = vld [vmem:[#allocation2 + $0x3c4] sm:$0xf]  ;;  %v4597_v35 = vld [vmem:[#allocation2 + $0x710] sm:$0xf] }
 0x581   :  { %v2506_v40 = vpack.c.bf16 %v2073_v10, %v2073_v10  ;;  %v5192_v10 = vld [vmem:[#allocation2 + $0x3c8] sm:$0xf0] }
 0x582   :  { %v4577_v58 = vor.u32 %v5192_v10, %v4576_v0 }
 0x583   :  { %2595 = vmatmul.bf16.vlgmr.msra.gmra.mxu2 %v2506_v40  ;;  %2608 = vmatmul.bf16.vlgmr.msrb.gmra.mxu0 %v2506_v40 }
 0x584   :  { %2708 = vmatpush.bf16.msra.mxu3 %v4577_v58  ;;  %v4593_v58 = vld [vmem:[#allocation2 + $0x700] sm:$0xf] }
 0x5c1   :  { %v2486_v42 = vpop.f32.mrf.mxu1 }
 0x5c2   :  { %v2487_v7 = vadd.f32 %v2486_v42, %v2474_v4 }
 0x5c9   :  { %v2488_v22 = vpop.f32.mrf.mxu1 }
 0x600   :  { %v2609_v9 = vpop.f32.mrf.mxu0 }
 0x601   :  { %v2614_v11 = vadd.f32 %v2609_v9, %v2487_v7  ;;  %v4621_v9 = vld [vmem:[#allocation2 + $0x770] sm:$0xf] }
 0x603   :  { %v2623_v32 = vadd.f32 %v2619_v12, %v2614_v11  ;;  %v5203_v11 = vld [vmem:[#allocation2 + $0x774] sm:$0xf0] }
 0x605   :  { %v2627_v13 = vsel %vm1948_vm4, %v2623_v32, 0.0 }
 0x606   :  { %v2628_v16 = vrot.slane %v2627_v13, 4  ;;  %v2596_v49 = vpop.f32.mrf.mxu2 }
 0x607   :  { %v2613_v19 = vadd.f32 %v2596_v49, %v2461_v18  ;;  %v2657_v18 = vld [vmem:[%s6514_s4 + $0x16] ss:$0 sm:$0xff]  ;;  %v4617_v49 = vld [vmem:[#allocation2 + $0x760] sm:$0xf] }
 0x608   :  { %v2629_v47 = vadd.f32 %v2628_v16, %v2627_v13  ;;  %v2611_v21 = vpop.f32.mrf.mxu0 }
 0x609   :  { %v6348_v63 = vadd.f32 %v2618_v39, %v2613_v19  ;;  %v5202_v19 = vld [vmem:[#allocation2 + $0x764] sm:$0xf0] }
 0x60a   :  { %v2630_v24 = vrot.slane %v2629_v47, 2 }
 0x60b   :  { %vm2624_vm9 = vcmp.ge.f32.partialorder %v6348_v63, 0.0 }
 0x60c   :  { %v2631_v26 = vadd.f32 %v2630_v24, %v2629_v47  ;;  %v4618_v47 = vor.u32 %v5202_v19, %v4617_v49  ;;  %v4613_v24 = vld [vmem:[#allocation2 + $0x750] sm:$0xf]  ;;  %v5237_v49 = vld [vmem:[#allocation2 + $0x504] sm:$0xf0] }
 0x60d   :  { %v4681_v19 = vld [vmem:[#allocation2 + $0x490] sm:$0xf] }
 0x60e   :  { %v2632_v20 = vrot.slane %v2631_v26, 1  ;;  %v2598_v2 = vpop.f32.mrf.mxu2 }
 0x610   :  { %v2633_v27 = vadd.f32 %v2632_v20, %v2631_v26  ;;  %v5201_v26 = vld [vmem:[#allocation2 + $0x754] sm:$0xf0] }
 0x611   :  { %v4614_v20 = vor.u32 %v5201_v26, %v4613_v24  ;;  %v5221_v26 = vld [vmem:[#allocation2 + $0x484] sm:$0xf0] }
 0x612   :  { %v2634_v29 = vmul.f32 %v2633_v27, %v6169_v8 }
 0x614   :  { %v2635_v36 = vsub.f32 %v2623_v32, %v2634_v29  ;;  %v4622_v32 = vor.u32 %v5203_v11, %v4621_v9  ;;  %v4609_v29 = vld [vmem:[#allocation2 + $0x740] sm:$0xf]  ;;  %v2769_v9 = vld [vmem:[%s6514_s4 + $0x37] ss:$0 sm:$0xff]  ;;  %v4745_v11 = vld [vmem:[#allocation2 + $0x510] sm:$0xf] }
 0x616   :  { %v2636_v28 = vmul.f32 %v2635_v36, %v2635_v36  ;;  %2818 = vmatpush.bf16.msrb.mxu1 %v4622_v32  ;;  %v5239_v32 = vld [vmem:[#allocation2 + $0x514] sm:$0xf0] }
 0x618   :  { %v2637_v50 = vsel %vm1948_vm4, %v2636_v28, 0.0  ;;  %v4605_v28 = vld [vmem:[#allocation2 + $0x730] sm:$0xf] }
 0x619   :  { %v2638_v46 = vrot.slane %v2637_v50, 4 }
 0x61a   :  { %2819 = vmatpush.bf16.msrb.mxu1 %v4618_v47  ;;  %v5223_v47 = vld [vmem:[#allocation2 + $0x494] sm:$0xf0] }
 0x61b   :  { %v2639_v6 = vadd.f32 %v2638_v46, %v2637_v50  ;;  %v5199_v50 = vld [vmem:[#allocation2 + $0x734] sm:$0xf0] }
 0x61c   :  { %v4606_v23 = vor.u32 %v5199_v50, %v4605_v28  ;;  %v4721_v28 = vld [vmem:[#allocation2 + $0x4e0] sm:$0xf]  ;;  %v5233_v50 = vld [vmem:[#allocation2 + $0x4e4] sm:$0xf0] }
 0x61d   :  { %v2640_v38 = vrot.slane %v2639_v6, 2 }
 0x61e   :  { %2820 = vmatpush.bf16.msrb.mxu1 %v4614_v20 }
 0x61f   :  { %v2641_v1 = vadd.f32 %v2640_v38, %v2639_v6  ;;  %v5198_v6 = vld [vmem:[#allocation2 + $0x724] sm:$0xf0] }
 0x620   :  { %v4602_v37 = vor.u32 %v5198_v6, %v4601_v52  ;;  %v4683_v52 = vld [vmem:[#allocation2 + $0x498] sm:$0xf0]  ;;  %v5238_v6 = vld [vmem:[#allocation2 + $0x514] sm:$0xf] }
 0x621   :  { %v2642_v40 = vrot.slane %v2641_v1, 1 }
 0x623   :  { %v2643_v55 = vadd.f32 %v2642_v40, %v2641_v1  ;;  %v5197_v1 = vld [vmem:[#allocation2 + $0x714] sm:$0xf0] }
 0x624   :  { %v4598_v10 = vor.u32 %v5197_v1, %v4597_v35  ;;  %v4747_v1 = vld [vmem:[#allocation2 + $0x518] sm:$0xf0] }
 0x625   :  { %v2644_v56 = vmul.f32 %v2643_v55, %v6169_v8  ;;  %v5196_v55 = vld [vmem:[#allocation2 + $0x704] sm:$0xf0] }
 0x627   :  { %v2645_v25 = vadd.f32 1e-05, %v2644_v56  ;;  %v4594_v56 = vor.u32 %v5196_v55, %v4593_v58  ;;  %v4675_v58 = vld [vmem:[#allocation2 + $0x488] sm:$0xf0]  ;;  %v5236_v55 = vld [vmem:[#allocation2 + $0x504] sm:$0xf] }
 0x629   :  { %5411 = vrsqrt.f32 %v2645_v25  ;;  %vm2652_vm15 = vweird.f32 %v2645_v25 }
 0x62f   :  { %v5412_v53 = vpop.eup %5411 }
 0x630   :  { %v2647_v60 = vmul.f32 %v5412_v53, %v2645_v25  ;;  %vm2653_vm14 = vweird.f32 %v5412_v53 }
 0x631   :  { %vm2654_vm1 = vmor %vm2652_vm15, %vm2653_vm14 }
 0x632   :  { %v2648_v54 = vmul.f32 %v5412_v53, %v2647_v60 }
 0x634   :  { %v2649_v31 = vmul.f32 0.5, %v2648_v54 }
 0x636   :  { %v2650_v61 = vsub.f32 1.5, %v2649_v31 }
 0x638   :  { %v2651_v15 = vmul.f32 %v5412_v53, %v2650_v61 }
 0x63a   :  { %v2655_v62 = vsel %vm2654_vm1, %v5412_v53, %v2651_v15 }
 0x63b   :  { %v2656_v30 = vmul.f32 %v2655_v62, %v2635_v36  ;;  %v5200_v36 = vld [vmem:[#allocation2 + $0x744] sm:$0xf0] }
 0x63c   :  { %v4610_v14 = vor.u32 %v5200_v36, %v4609_v29  ;;  %v4665_v36 = vld [vmem:[#allocation2 + $0x470] sm:$0xf] }
 0x63d   :  { %v2658_v17 = vmul.f32 %v2657_v18, %v2656_v30 }
 0x63e   :  { %2821 = vmatpush.bf16.msrb.mxu1 %v4610_v14  ;;  %v5219_v14 = vld [vmem:[#allocation2 + $0x474] sm:$0xf0] }
 0x63f   :  { %v2660_v43 = vadd.f32 %v2659_v57, %v2658_v17  ;;  %v2744_v57 = vld [vmem:[%s6514_s4 + $0x21] ss:$0 sm:$0xff] }
 0x641   :  { %v2662_v42 = vmul.f32 0.2, %v2660_v43  ;;  %vm2661_vm5 = vcmp.ge.f32.partialorder %v2660_v43, 0.0 }
 0x642   :  { %2822 = vmatpush.bf16.msrb.mxu1 %v4606_v23  ;;  %v5222_v23 = vld [vmem:[#allocation2 + $0x494] sm:$0xf] }
 0x643   :  { %v2663_v44 = vsel %vm2661_vm5, %v2660_v43, %v2662_v42  ;;  %v2625_v43 = vmul.f32 0.2, %v6348_v63  ;;  %v2746_v42 = vld [vmem:[%s6514_s4 + $0x22] ss:$0 sm:$0xff]  ;;  %v4686_v35 = vor.u32 %v5222_v23, %v4683_v52 }
 0x644   :  { %v2672_v22 = vpack.c.bf16 %v2663_v44, %v2663_v44 }
 0x645   :  { %3075 = vmatpush.bf16.msra.mxu0 %v4686_v35  ;;  %v5206_v35 = vld [vmem:[#allocation2 + $0x414] sm:$0xf] }
 0x646   :  { %4590 = vmatmul.msk.bf16.vlgmr.msra.gmra.mxu3 %vm762_vm0, %v2672_v22  ;;  %2823 = vmatpush.bf16.msrb.mxu1 %v4602_v37  ;;  %v4657_v37 = vld [vmem:[#allocation2 + $0x460] sm:$0xf] }
 0x64a   :  { %2824 = vmatpush.bf16.msrb.mxu1 %v4598_v10  ;;  %v5220_v10 = vld [vmem:[#allocation2 + $0x484] sm:$0xf] }
 0x64e   :  { %2825 = vmatpush.bf16.msrb.mxu1 %v4594_v56  ;;  %v4739_v56 = vld [vmem:[#allocation2 + $0x508] sm:$0xf0] }
 0x6c9   :  { %v2710_v4 = vpop.f32.mrf.mxu3 }
 0x6ca   :  { %v2711_v5 = vadd.f32 %v2710_v4, %v2673_v3  ;;  %v2626_v3 = vsel %vm2624_vm9, %v6348_v63, %v2625_v43  ;;  %v4682_v63 = vor.u32 %v5223_v47, %v4681_v19  ;;  %v4705_v43 = vld [vmem:[#allocation2 + $0x4c0] sm:$0xf] }
 0x6cc   :  { %v2714_v7 = vsel %vm1318_vm2, %v2711_v5, 0.0  ;;  %3049 = vmatpush.bf16.msrb.mxu2 %v4682_v63  ;;  %v4633_v63 = vld [vmem:[#allocation2 + $0x430] sm:$0xf] }
 0x6cd   :  { %v2715_v12 = vrot.slane %v2714_v7, 4 }
 0x6cf   :  { %v2716_v13 = vadd.f32 %v2715_v12, %v2714_v7 }
 0x6d1   :  { %v2717_v39 = vrot.slane %v2716_v13, 2  ;;  %v2712_v16 = vpop.f32.mrf.mxu3 }
 0x6d2   :  { %v4746_v16 = vor.u32 %v5239_v32, %v4745_v11  ;;  %v5232_v32 = vld [vmem:[#allocation2 + $0x4e4] sm:$0xf] }
 0x6d3   :  { %v2718_v34 = vadd.f32 %v2717_v39, %v2716_v13  ;;  %v4737_v13 = vld [vmem:[#allocation2 + $0x500] sm:$0xf] }
 0x6d4   :  { %3062 = vmatpush.bf16.msrb.mxu3 %v4746_v16  ;;  %v4738_v24 = vor.u32 %v5237_v49, %v4737_v13  ;;  %v4723_v13 = vld [vmem:[#allocation2 + $0x4e8] sm:$0xf0]  ;;  %v4697_v16 = vld [vmem:[#allocation2 + $0x4b0] sm:$0xf]  ;;  %v5227_v49 = vld [vmem:[#allocation2 + $0x4b4] sm:$0xf0] }
 0x6d5   :  { %v2719_v21 = vrot.slane %v2718_v34, 1 }
 0x6d7   :  { %v2720_v2 = vadd.f32 %v2719_v21, %v2718_v34  ;;  %v4673_v21 = vld [vmem:[#allocation2 + $0x480] sm:$0xf] }
 0x6d8   :  { %v4674_v29 = vor.u32 %v5221_v26, %v4673_v21  ;;  %3063 = vmatpush.bf16.msrb.mxu3 %v4738_v24  ;;  %v4726_v21 = vor.u32 %v5232_v32, %v4723_v13  ;;  %v5214_v24 = vld [vmem:[#allocation2 + $0x454] sm:$0xf]  ;;  %v4651_v26 = vld [vmem:[#allocation2 + $0x458] sm:$0xf0] }
 0x6d9   :  { %v2721_v27 = vmul.f32 %v2720_v2, %v6169_v8  ;;  %v4729_v2 = vld [vmem:[#allocation2 + $0x4f0] sm:$0xf] }
 0x6da   :  { %3050 = vmatpush.bf16.msrb.mxu2 %v4674_v29 }
 0x6db   :  { %v2722_v41 = vsub.f32 %v2711_v5, %v2721_v27  ;;  %v5235_v27 = vld [vmem:[#allocation2 + $0x4f4] sm:$0xf0] }
 0x6dd   :  { %v2723_v45 = vmul.f32 %v2722_v41, %v2722_v41 }
 0x6df   :  { %v2724_v51 = vsel %vm1318_vm2, %v2723_v45, 0.0  ;;  %v4730_v45 = vor.u32 %v5235_v27, %v4729_v2  ;;  %v5230_v2 = vld [vmem:[#allocation2 + $0x4d4] sm:$0xf]  ;;  %v4715_v27 = vld [vmem:[#allocation2 + $0x4d8] sm:$0xf0] }
 0x6e0   :  { %v2725_v46 = vrot.slane %v2724_v51, 4  ;;  %v4718_v23 = vor.u32 %v5230_v2, %v4715_v27  ;;  %v4829_v27 = vld [vmem:[#allocation2 + $0x590] sm:$0xf] }
 0x6e1   :  { %3064 = vmatpush.bf16.msrb.mxu3 %v4730_v45  ;;  %v4654_v45 = vor.u32 %v5214_v24, %v4651_v26  ;;  %v5224_v24 = vld [vmem:[#allocation2 + $0x4a4] sm:$0xf]  ;;  %v4691_v26 = vld [vmem:[#allocation2 + $0x4a8] sm:$0xf0] }
 0x6e2   :  { %v2726_v33 = vadd.f32 %v2725_v46, %v2724_v51  ;;  %v4666_v46 = vor.u32 %v5219_v14, %v4665_v36  ;;  %v4698_v36 = vor.u32 %v5227_v49, %v4697_v16  ;;  %v4689_v14 = vld [vmem:[#allocation2 + $0x4a0] sm:$0xf] }
 0x6e3   :  { %v4837_v16 = vld [vmem:[#allocation2 + $0x5a0] sm:$0xf] }
 0x6e4   :  { %v2727_v38 = vrot.slane %v2726_v33, 2  ;;  %3051 = vmatpush.bf16.msrb.mxu2 %v4666_v46  ;;  %v4643_v46 = vld [vmem:[#allocation2 + $0x448] sm:$0xf0] }
 0x6e6   :  { %v2728_v0 = vadd.f32 %v2727_v38, %v2726_v33  ;;  %v5217_v38 = vld [vmem:[#allocation2 + $0x464] sm:$0xf0] }
 0x6e8   :  { %v2729_v40 = vrot.slane %v2728_v0, 1 }
 0x6ea   :  { %v2730_v25 = vadd.f32 %v2729_v40, %v2728_v0  ;;  %v4750_v0 = vor.u32 %v5238_v6, %v4747_v1  ;;  %v4722_v40 = vor.u32 %v5233_v50, %v4721_v28  ;;  %v4625_v50 = vld [vmem:[#allocation2 + $0x420] sm:$0xf]  ;;  %v5209_v6 = vld [vmem:[#allocation2 + $0x424] sm:$0xf0]  ;;  %v4763_v1 = vld [vmem:[#allocation2 + $0x418] sm:$0xf0] }
 0x6ec   :  { %v2731_v53 = vmul.f32 %v2730_v25, %v6169_v8  ;;  %v4713_v25 = vld [vmem:[#allocation2 + $0x4d0] sm:$0xf]  ;;  %3088 = vmatpush.bf16.msra.mxu1 %v4750_v0  ;;  %3065 = vmatpush.bf16.msrb.mxu3 %v4722_v40  ;;  %v2842_v0 = vpop.permute.xlu0 %2841 }
 0x6ee   :  { %v2732_v60 = vadd.f32 1e-05, %v2731_v53  ;;  %v5231_v53 = vld [vmem:[#allocation2 + $0x4d4] sm:$0xf0] }
 0x6f0   :  { %5413 = vrsqrt.f32 %v2732_v60  ;;  %vm2739_vm7 = vweird.f32 %v2732_v60 }
 0x6f6   :  { %v5414_v54 = vpop.eup %5413 }
 0x6f7   :  { %v2734_v31 = vmul.f32 %v5414_v54, %v2732_v60  ;;  %vm2740_vm6 = vweird.f32 %v5414_v54  ;;  %v4658_v60 = vor.u32 %v5217_v38, %v4657_v37  ;;  %v5207_v37 = vld [vmem:[#allocation2 + $0x414] sm:$0xf0] }
 0x6f8   :  { %vm2741_vm8 = vmor %vm2739_vm7, %vm2740_vm6 }
 0x6f9   :  { %v2735_v61 = vmul.f32 %v5414_v54, %v2734_v31  ;;  %v4678_v31 = vor.u32 %v5220_v10, %v4675_v58  ;;  %3052 = vmatpush.bf16.msrb.mxu2 %v4658_v60  ;;  %v5228_v58 = vld [vmem:[#allocation2 + $0x4c4] sm:$0xf]  ;;  %v4635_v60 = vld [vmem:[#allocation2 + $0x438] sm:$0xf0] }
 0x6fb   :  { %v2736_v15 = vmul.f32 0.5, %v2735_v61  ;;  %v4742_v61 = vor.u32 %v5236_v55, %v4739_v56  ;;  %3076 = vmatpush.bf16.msra.mxu0 %v4678_v31  ;;  %v4707_v55 = vld [vmem:[#allocation2 + $0x4c8] sm:$0xf0]  ;;  %v4766_v31 = vor.u32 %v5206_v35, %v4763_v1  ;;  %v5271_v1 = vld [vmem:[#allocation2 + $0x5f4] sm:$0xf0] }
 0x6fd   :  { %v2737_v62 = vsub.f32 1.5, %v2736_v15  ;;  %v5215_v15 = vld [vmem:[#allocation2 + $0x454] sm:$0xf0]  ;;  %3089 = vmatpush.bf16.msra.mxu1 %v4742_v61  ;;  %v4753_v61 = vld [vmem:[#allocation2 + $0x400] sm:$0xf] }
 0x6ff   :  { %v2738_v18 = vmul.f32 %v5414_v54, %v2737_v62  ;;  %v5218_v62 = vld [vmem:[#allocation2 + $0x474] sm:$0xf] }
 0x701   :  { %v2742_v30 = vsel %vm2741_vm8, %v5414_v54, %v2738_v18  ;;  %v4649_v54 = vld [vmem:[#allocation2 + $0x450] sm:$0xf]  ;;  %v4667_v18 = vld [vmem:[#allocation2 + $0x478] sm:$0xf0] }
 0x702   :  { %v2743_v17 = vmul.f32 %v2742_v30, %v2722_v41  ;;  %v5234_v30 = vld [vmem:[#allocation2 + $0x4f4] sm:$0xf] }
 0x704   :  { %v2745_v44 = vmul.f32 %v2744_v57, %v2743_v17  ;;  %v4731_v57 = vld [vmem:[#allocation2 + $0x4f8] sm:$0xf0]  ;;  %v4714_v17 = vor.u32 %v5231_v53, %v4713_v25  ;;  %v4626_v25 = vor.u32 %v5209_v6, %v4625_v50  ;;  %v5210_v53 = vld [vmem:[#allocation2 + $0x434] sm:$0xf]  ;;  %v4821_v50 = vld [vmem:[#allocation2 + $0x580] sm:$0xf] }
 0x706   :  { %v2747_v22 = vadd.f32 %v2746_v42, %v2745_v44  ;;  %v5229_v42 = vld [vmem:[#allocation2 + $0x4c4] sm:$0xf0]  ;;  %v4641_v44 = vld [vmem:[#allocation2 + $0x440] sm:$0xf]  ;;  %3066 = vmatpush.bf16.msrb.mxu3 %v4714_v17  ;;  %v4710_v17 = vor.u32 %v5228_v58, %v4707_v55 }
 0x707   :  { %v4869_v58 = vld [vmem:[#allocation2 + $0x5e0] sm:$0xf]  ;;  %v5269_v55 = vld [vmem:[#allocation2 + $0x5e4] sm:$0xf0] }
 0x708   :  { %v2748_v4 = vadd.f32 %v2747_v22, %v2626_v3  ;;  %v4670_v22 = vor.u32 %v5218_v62, %v4667_v18  ;;  %v5204_v62 = vld [vmem:[#allocation2 + $0x404] sm:$0xf] }
 0x70a   :  { %vm2749_vm10 = vcmp.ge.f32.partialorder %v2748_v4, 0.0  ;;  %v2750_v5 = vmul.f32 0.2, %v2748_v4  ;;  %3077 = vmatpush.bf16.msra.mxu0 %v4670_v22  ;;  %v4909_v22 = vld [vmem:[#allocation2 + $0x630] sm:$0xf] }
 0x70c   :  { %v2751_v7 = vsel %vm2749_vm10, %v2748_v4, %v2750_v5  ;;  %v4650_v4 = vor.u32 %v5215_v15, %v4649_v54  ;;  %v5213_v5 = vld [vmem:[#allocation2 + $0x444] sm:$0xf0] }
 0x70d   :  { %v2768_v12 = vpack.c.bf16 %v2751_v7, %v2751_v7  ;;  %v4734_v7 = vor.u32 %v5234_v30, %v4731_v57  ;;  %v4642_v47 = vor.u32 %v5213_v5, %v4641_v44  ;;  %v5205_v15 = vld [vmem:[#allocation2 + $0x404] sm:$0xf0]  ;;  %v6387_v30 = vpack.c.bf16 %v6218_v59, %v6218_v59  ;;  %v4755_v57 = vld [vmem:[#allocation2 + $0x408] sm:$0xf0]  ;;  %v5226_v5 = vld [vmem:[#allocation2 + $0x4b4] sm:$0xf] }
 0x70e   :  { %3053 = vmatpush.bf16.msrb.mxu2 %v4650_v4  ;;  %v6391_v44 = vpack.c.bf16 %v6212_v48, %v6212_v48  ;;  %v4638_v4 = vor.u32 %v5210_v53, %v4635_v60  ;;  %v4758_v32 = vor.u32 %v5204_v62, %v4755_v57  ;;  %v4797_v53 = vld [vmem:[#allocation2 + $0x550] sm:$0xf]  ;;  %v5251_v60 = vld [vmem:[#allocation2 + $0x554] sm:$0xf0]  ;;  %v4789_v62 = vld [vmem:[#allocation2 + $0x540] sm:$0xf] }
 0x70f   :  { %2826 = vmatmul.bf16.vlgmr.msrb.gmra.mxu1 %v2768_v12  ;;  %v5216_v12 = vld [vmem:[#allocation2 + $0x464] sm:$0xf]  ;;  %v4853_v57 = vld [vmem:[#allocation2 + $0x5c0] sm:$0xf] }
 0x710   :  { %3090 = vmatpush.bf16.msra.mxu1 %v4734_v7  ;;  %v4699_v7 = vld [vmem:[#allocation2 + $0x4b8] sm:$0xf0] }
 0x711   :  { %v4702_v49 = vor.u32 %v5226_v5, %v4699_v7  ;;  %v4927_v5 = vld [vmem:[#allocation2 + $0x538] sm:$0xf0] }
 0x712   :  { %3054 = vmatpush.bf16.msrb.mxu2 %v4642_v47  ;;  %v4901_v47 = vld [vmem:[#allocation2 + $0x620] sm:$0xf] }
 0x714   :  { %3091 = vmatpush.bf16.msra.mxu1 %v4726_v21 }
 0x718   :  { %3092 = vmatpush.bf16.msra.mxu1 %v4718_v23  ;;  %v5257_v23 = vld [vmem:[#allocation2 + $0x584] sm:$0xf0] }
 0x71c   :  { %3093 = vmatpush.bf16.msra.mxu1 %v4710_v17  ;;  %v5265_v17 = vld [vmem:[#allocation2 + $0x5c4] sm:$0xf0] }
 0x720   :  { %3094 = vmatpush.bf16.msra.mxu1 %v4702_v49  ;;  %v4919_v49 = vld [vmem:[#allocation2 + $0x528] sm:$0xf0] }
 0x78c   :  { %v2827_v39 = vpop.f32.mrf.mxu1 }
 0x78d   :  { %v6381_v34 = vadd.f32 %v2827_v39, %v2769_v9  ;;  %v4659_v9 = vld [vmem:[#allocation2 + $0x468] sm:$0xf0]  ;;  %v4706_v39 = vor.u32 %v5229_v42, %v4705_v43  ;;  %v4845_v43 = vld [vmem:[#allocation2 + $0x5b0] sm:$0xf]  ;;  %v5263_v42 = vld [vmem:[#allocation2 + $0x5b4] sm:$0xf0] }
 0x78e   :  { %v4662_v19 = vor.u32 %v5216_v12, %v4659_v9  ;;  %v5208_v12 = vld [vmem:[#allocation2 + $0x424] sm:$0xf]  ;;  %v4627_v9 = vld [vmem:[#allocation2 + $0x428] sm:$0xf0]  ;;  %v4846_v13 = vor.u32 %v5263_v42, %v4845_v43  ;;  %v4854_v42 = vor.u32 %v5265_v17, %v4853_v57 }
 0x78f   :  { %v2832_v20 = vand.u32 2147483647, %v6381_v34  ;;  %v2831_v29 = vmax.f32 %v6381_v34, 0.0  ;;  %3067 = vmatpush.bf16.msrb.mxu3 %v4706_v39  ;;  %v4630_v21 = vor.u32 %v5208_v12, %v4627_v9 }
 0x790   :  { %3078 = vmatpush.bf16.msra.mxu0 %v4662_v19  ;;  %v5261_v19 = vld [vmem:[#allocation2 + $0x5a4] sm:$0xf0] }
 0x791   :  { %v2833_v41 = vsub.f32 0.0, %v2832_v20  ;;  %v5211_v20 = vld [vmem:[#allocation2 + $0x434] sm:$0xf0] }
 0x792   :  { %v4634_v28 = vor.u32 %v5211_v20, %v4633_v63  ;;  %v5277_v63 = vld [vmem:[#allocation2 + $0x624] sm:$0xf0]  ;;  %v4838_v20 = vor.u32 %v5261_v19, %v4837_v16  ;;  %v5244_v16 = vld [vmem:[#allocation2 + $0x524] sm:$0xf] }
 0x793   :  { %v2834_v51 = vmul.f32 1.442695, %v2833_v41  ;;  %v5225_v41 = vld [vmem:[#allocation2 + $0x4a4] sm:$0xf0]  ;;  %3068 = vmatpush.bf16.msrb.mxu3 %v4698_v36  ;;  %v4902_v2 = vor.u32 %v5277_v63, %v4901_v47  ;;  %v5259_v36 = vld [vmem:[#allocation2 + $0x594] sm:$0xf0]  ;;  %v4922_v47 = vor.u32 %v5244_v16, %v4919_v49 }
 0x794   :  { %v2829_v33 = vpop.f32.mrf.mxu1  ;;  %v4690_v10 = vor.u32 %v5225_v41, %v4689_v14  ;;  %3079 = vmatpush.bf16.msra.mxu0 %v4654_v45  ;;  %3055 = vmatpush.bf16.msrb.mxu2 %v4634_v28  ;;  %v4893_v14 = vld [vmem:[#allocation2 + $0x610] sm:$0xf]  ;;  %v5275_v41 = vld [vmem:[#allocation2 + $0x614] sm:$0xf0]  ;;  %v4830_v45 = vor.u32 %v5259_v36, %v4829_v27 }
 0x795   :  { %5415 = vpow2.f32 %v2834_v51  ;;  %v5212_v51 = vld [vmem:[#allocation2 + $0x444] sm:$0xf]  ;;  %v4761_v33 = vld [vmem:[#allocation2 + $0x410] sm:$0xf]  ;;  %v4894_v28 = vor.u32 %v5275_v41, %v4893_v14 }
 0x796   :  { %v4646_v40 = vor.u32 %v5212_v51, %v4643_v46  ;;  %v4762_v54 = vor.u32 %v5207_v37, %v4761_v33  ;;  %v4885_v51 = vld [vmem:[#allocation2 + $0x600] sm:$0xf]  ;;  %v4822_v46 = vor.u32 %v5257_v23, %v4821_v50  ;;  %v4813_v33 = vld [vmem:[#allocation2 + $0x570] sm:$0xf]  ;;  %v5255_v37 = vld [vmem:[#allocation2 + $0x574] sm:$0xf0] }
 0x797   :  { %3069 = vmatpush.bf16.msrb.mxu3 %v4690_v10  ;;  %v4814_v35 = vor.u32 %v5255_v37, %v4813_v33  ;;  %v5253_v10 = vld [vmem:[#allocation2 + $0x564] sm:$0xf0]  ;;  %v4769_v41 = vld [vmem:[%s6514_s4 + $0x23] ss:$8 sm:$0x3] }
 0x798   :  { %3080 = vmatpush.bf16.msra.mxu0 %v4646_v40  ;;  %3056 = vmatpush.bf16.msrb.mxu2 %v4626_v25  ;;  %v4870_v25 = vor.u32 %v5269_v55, %v4869_v58 }
 0x79a   :  { %3070 = vmatmul.bf16.vlgmr.msrb.gmra.mxu3 %v6387_v30 }
 0x79b   :  { %v5416_v3 = vpop.eup %5415  ;;  %3143 = vmatpush.bf16.msra.mxu3 %v4766_v31  ;;  %3057 = vmatmul.bf16.vlgmr.msrb.gmra.mxu2 %v6391_v44  ;;  %v5267_v31 = vld [vmem:[#allocation2 + $0x5d4] sm:$0xf0] }
 0x79c   :  { %v2836_v11 = vadd.f32 1.0, %v5416_v3  ;;  %v5279_v3 = vld [vmem:[#allocation2 + $0x634] sm:$0xf0]  ;;  %3130 = vmatpush.bf16.msra.mxu2 %v4762_v54  ;;  %3081 = vmatpush.bf16.msra.mxu0 %v4638_v4  ;;  %v4861_v54 = vld [vmem:[#allocation2 + $0x5d0] sm:$0xf] }
 0x79d   :  { %v4910_v39 = vor.u32 %v5279_v3, %v4909_v22  ;;  %v4925_v22 = vld [vmem:[#allocation2 + $0x530] sm:$0xf]  ;;  %v5247_v3 = vld [vmem:[#allocation2 + $0x534] sm:$0xf0]  ;;  %v5246_v4 = vld [vmem:[#allocation2 + $0x534] sm:$0xf] }
 0x79e   :  { %5417 = vlog2.f32 %v2836_v11  ;;  %v4754_v11 = vor.u32 %v5205_v15, %v4753_v61  ;;  %v4798_v61 = vor.u32 %v5251_v60, %v4797_v53  ;;  %v4862_v15 = vor.u32 %v5267_v31, %v4861_v54 }
 0x79f   :  { %3144 = vmatpush.bf16.msra.mxu3 %v4758_v32  ;;  %v4926_v9 = vor.u32 %v5247_v3, %v4925_v22  ;;  %v4917_v32 = vld [vmem:[#allocation2 + $0x520] sm:$0xf]  ;;  %v5240_v22 = vld [vmem:[#allocation2 + $0x6c4] sm:$0xf0] }
 0x7a0   :  { %3131 = vmatpush.bf16.msra.mxu2 %v4754_v11  ;;  %3082 = vmatpush.bf16.msra.mxu0 %v4630_v21  ;;  %v4930_v11 = vor.u32 %v5246_v4, %v4927_v5  ;;  %v5262_v5 = vld [vmem:[#allocation2 + $0x5b4] sm:$0xf] }
 0x7a3   :  { %3496 = vmatpush.bf16.msrb.mxu3 %v4910_v39  ;;  %3083 = vmatmul.bf16.vlgmr.msra.gmra.mxu0 %v6391_v44  ;;  %v5245_v39 = vld [vmem:[#allocation2 + $0x524] sm:$0xf0] }
 0x7a4   :  { %v5418_v52 = vpop.eup %5417  ;;  %3483 = vmatpush.bf16.msrb.mxu2 %v4846_v13  ;;  %v4918_v19 = vor.u32 %v5245_v39, %v4917_v32  ;;  %v4911_v32 = vld [vmem:[#allocation2 + $0x638] sm:$0xf0] }
 0x7a5   :  { %v2838_v38 = vmul.f32 0.6931472, %v5418_v52  ;;  %v5273_v52 = vld [vmem:[#allocation2 + $0x604] sm:$0xf0] }
 0x7a6   :  { %v4886_v6 = vor.u32 %v5273_v52, %v4885_v51 }
 0x7a7   :  { %v2839_v56 = vadd.f32 %v2838_v38, %v2831_v29  ;;  %v4694_v29 = vor.u32 %v5224_v24, %v4691_v26  ;;  %3497 = vmatpush.bf16.msrb.mxu3 %v4902_v2  ;;  %v4877_v38 = vld [vmem:[#allocation2 + $0x5f0] sm:$0xf] }
 0x7a8   :  { %3484 = vmatpush.bf16.msrb.mxu2 %v4838_v20  ;;  %v4878_v40 = vor.u32 %v5271_v1, %v4877_v38 }
 0x7a9   :  { %v2844_v18 = vmul.f32 %v2842_v0, %v2839_v56  ;;  %3924 = vrot.lane.b32.xlu1 %v2839_v56, %s5459_s2  ;;  %3095 = vmatpush.bf16.msra.mxu1 %v4694_v29  ;;  %v4805_v0 = vld [vmem:[#allocation2 + $0x560] sm:$0xf] }
 0x7aa   :  { %v4806_v56 = vor.u32 %v5253_v10, %v4805_v0  ;;  %v4784_v0 = vld [vmem:[#allocation2 + $0x6f0] sm:$0xf]  ;;  %v5243_v10 = vld [vmem:[#allocation2 + $0x6f4] sm:$0xf0] }
 0x7ab   :  { %2846 = vrot.lane.b32.xlu0 %v2844_v18, %s5459_s2  ;;  %3498 = vmatpush.bf16.msrb.mxu3 %v4894_v28  ;;  %v5249_v18 = vld [vmem:[#allocation2 + $0x544] sm:$0xf0]  ;;  %v3154_v28 = vperm.slane %v4769_v41, 1  ;;  %v4785_v58 = vor.u32 %v5243_v10, %v4784_v0 }
 0x7ac   :  { %3485 = vmatpush.bf16.msrb.mxu2 %v4830_v45  ;;  %3096 = vmatmul.bf16.vlgmr.msra.gmra.mxu1 %v6387_v30  ;;  %v4790_v43 = vor.u32 %v5249_v18, %v4789_v62  ;;  %v3153_v45 = vperm.slane %v4769_v41, 0  ;;  %v4776_v62 = vld [vmem:[#allocation2 + $0x6d0] sm:$0xf]  ;;  %v5241_v18 = vld [vmem:[#allocation2 + $0x6d4] sm:$0xf0] }
 0x7ad   :  { %3240 = vmatpush.bf16.msrb.mxu0 %v4785_v58  ;;  %v4777_v17 = vor.u32 %v5241_v18, %v4776_v62  ;;  %v5254_v58 = vld [vmem:[#allocation2 + $0x574] sm:$0xf]  ;;  %v4807_v62 = vld [vmem:[#allocation2 + $0x568] sm:$0xf0]  ;;  %v5268_v18 = vld [vmem:[#allocation2 + $0x5e4] sm:$0xf] }
 0x7af   :  { %3499 = vmatpush.bf16.msrb.mxu3 %v4886_v6 }
 0x7b0   :  { %3486 = vmatpush.bf16.msrb.mxu2 %v4822_v46 }
 0x7b3   :  { %3500 = vmatpush.bf16.msrb.mxu3 %v4878_v40 }
 0x7b4   :  { %3487 = vmatpush.bf16.msrb.mxu2 %v4814_v35 }
 0x7b7   :  { %3501 = vmatpush.bf16.msrb.mxu3 %v4870_v25  ;;  %v5242_v25 = vld [vmem:[#allocation2 + $0x6e4] sm:$0xf0] }
 0x7b8   :  { %3488 = vmatpush.bf16.msrb.mxu2 %v4806_v56  ;;  %v4780_v56 = vld [vmem:[#allocation2 + $0x6e0] sm:$0xf] }
 0x7b9   :  { %v4781_v60 = vor.u32 %v5242_v25, %v4780_v56  ;;  %v5270_v56 = vld [vmem:[#allocation2 + $0x5f4] sm:$0xf] }
 0x7bb   :  { %3502 = vmatpush.bf16.msrb.mxu3 %v4862_v15  ;;  %3241 = vmatpush.bf16.msrb.mxu0 %v4781_v60  ;;  %v4879_v60 = vld [vmem:[#allocation2 + $0x5f8] sm:$0xf0] }
 0x7bc   :  { %3489 = vmatpush.bf16.msrb.mxu2 %v4798_v61 }
 0x7bf   :  { %3503 = vmatpush.bf16.msrb.mxu3 %v4854_v42  ;;  %3242 = vmatpush.bf16.msrb.mxu0 %v4777_v17  ;;  %v4772_v42 = vld [vmem:[#allocation2 + $0x6c0] sm:$0xf] }
 0x7c0   :  { %3490 = vmatpush.bf16.msrb.mxu2 %v4790_v43  ;;  %v4773_v4 = vor.u32 %v5240_v22, %v4772_v42  ;;  %v5250_v22 = vld [vmem:[#allocation2 + $0x554] sm:$0xf] }
 0x7c3   :  { %3243 = vmatpush.bf16.msrb.mxu0 %v4773_v4  ;;  %v5266_v4 = vld [vmem:[#allocation2 + $0x5d4] sm:$0xf] }
 0x81d   :  { %v2847_v7 = vpop.permute.xlu0 %2846  ;;  %v3071_v63 = vpop.f32.mrf.mxu3 }
 0x81e   :  { %v6398_v12 = vadd.f32 %v2847_v7, %v6381_v34  ;;  %v3058_v21 = vpop.f32.mrf.mxu2  ;;  %v4847_v7 = vld [vmem:[#allocation2 + $0x5b8] sm:$0xf0] }
 0x81f   :  { %v3072_v24 = vadd.f32 %v3071_v63, %v3058_v21  ;;  %v4839_v63 = vld [vmem:[#allocation2 + $0x5a8] sm:$0xf0]  ;;  %v5276_v21 = vld [vmem:[#allocation2 + $0x624] sm:$0xf] }
 0x820   :  { %v2854_v13 = vpack.c.bf16 %v6398_v12, %v6398_v12  ;;  %v3084_v26 = vpop.f32.mrf.mxu0 }
 0x822   :  { %4767 = vmatmul.msk.bf16.vlgmr.msra.gmra.mxu2 %vm1668_vm3, %v2854_v13  ;;  %4768 = vmatmul.msk.bf16.vlgmr.msra.gmra.mxu3 %vm1668_vm3, %v2854_v13 }
 0x823   :  { %3561 = vmatpush.bf16.msra.mxu2 %v4926_v9  ;;  %3574 = vmatpush.bf16.msra.mxu3 %v4930_v11  ;;  %v5278_v9 = vld [vmem:[#allocation2 + $0x634] sm:$0xf]  ;;  %v4850_v11 = vor.u32 %v5262_v5, %v4847_v7  ;;  %v4863_v5 = vld [vmem:[#allocation2 + $0x5d8] sm:$0xf0] }
 0x824   :  { %v4914_v49 = vor.u32 %v5278_v9, %v4911_v32  ;;  %v4866_v9 = vor.u32 %v5266_v4, %v4863_v5  ;;  %v4791_v32 = vld [vmem:[#allocation2 + $0x548] sm:$0xf0] }
 0x825   :  { %v3073_v2 = vpop.f32.mrf.mxu3  ;;  %3509 = vmatpush.bf16.msra.mxu0 %v4850_v11  ;;  %v5248_v11 = vld [vmem:[#allocation2 + $0x544] sm:$0xf] }
 0x826   :  { %v3060_v29 = vpop.f32.mrf.mxu2  ;;  %3522 = vmatpush.bf16.msrb.mxu1 %v4914_v49 }
 0x827   :  { %3562 = vmatpush.bf16.msra.mxu2 %v4918_v19  ;;  %3575 = vmatpush.bf16.msra.mxu3 %v4922_v47  ;;  %v5260_v47 = vld [vmem:[#allocation2 + $0x5a4] sm:$0xf]  ;;  %v5258_v29 = vld [vmem:[#allocation2 + $0x594] sm:$0xf] }
 0x828   :  { %v3086_v36 = vpop.f32.mrf.mxu0 }
 0x829   :  { %v3097_v20 = vpop.f32.mrf.mxu1  ;;  %v4831_v36 = vld [vmem:[#allocation2 + $0x598] sm:$0xf0] }
 0x82a   :  { %v3098_v27 = vadd.f32 %v3097_v20, %v3084_v26  ;;  %v4842_v26 = vor.u32 %v5260_v47, %v4839_v63  ;;  %v4903_v20 = vld [vmem:[#allocation2 + $0x628] sm:$0xf0] }
 0x82b   :  { %v4906_v2 = vor.u32 %v5276_v21, %v4903_v20 }
 0x82c   :  { %3510 = vmatpush.bf16.msra.mxu0 %v4842_v26 }
 0x82d   :  { %3523 = vmatpush.bf16.msrb.mxu1 %v4906_v2  ;;  %v3192_v2 = vld [vmem:[%s6514_s4 + $0x24] ss:$0 sm:$0xff] }
 0x831   :  { %v3099_v14 = vpop.f32.mrf.mxu1 }
 0x832   :  { %3491 = vmatmul.bf16.vlgmr.msrb.gmra.mxu2 %v6391_v44  ;;  %3504 = vmatmul.bf16.vlgmr.msrb.gmra.mxu3 %v6387_v30  ;;  %v5274_v14 = vld [vmem:[#allocation2 + $0x614] sm:$0xf] }
 0x842   :  { %4931 = vmatmul.msk.bf16.vlgmr.msra.gmra.mxu2 %vm1668_vm3, %v2854_v13  ;;  %4932 = vmatmul.msk.bf16.vlgmr.msra.gmra.mxu3 %vm1668_vm3, %v2854_v13 }
 0x8a5   :  { %v3133_v50 = vpop.f32.mrf.mxu2  ;;  %v3146_v23 = vpop.f32.mrf.mxu3 }
 0x8a6   :  { %v3134_v51 = vadd.f32 %v3133_v50, %v3072_v24  ;;  %v3147_v46 = vadd.f32 %v3146_v23, %v3098_v27  ;;  %v5256_v50 = vld [vmem:[#allocation2 + $0x584] sm:$0xf]  ;;  %v4823_v23 = vld [vmem:[#allocation2 + $0x588] sm:$0xf0] }
 0x8a8   :  { %v6411_v52 = vadd.f32 %v3153_v45, %v3134_v51  ;;  %v3158_v6 = vadd.f32 %v3154_v28, %v3147_v46  ;;  %v4834_v45 = vor.u32 %v5258_v29, %v4831_v36  ;;  %v4895_v28 = vld [vmem:[#allocation2 + $0x618] sm:$0xf0] }
 0x8a9   :  { %v3194_v29 = vld [vmem:[%s6514_s4 + $0x25] ss:$0 sm:$0xff] }
 0x8aa   :  { %v3162_v33 = vsel %vm1948_vm4, %v3158_v6, 0.0  ;;  %3511 = vmatpush.bf16.msra.mxu0 %v4834_v45  ;;  %vm3159_vm6 = vcmp.ge.f32.partialorder %v6411_v52, 0.0 }
 0x8ab   :  { %v3163_v37 = vrot.slane %v3162_v33, 4 }
 0x8ad   :  { %v3164_v38 = vadd.f32 %v3163_v37, %v3162_v33  ;;  %v3135_v35 = vpop.f32.mrf.mxu2  ;;  %v3148_v1 = vpop.f32.mrf.mxu3  ;;  %v5272_v33 = vld [vmem:[#allocation2 + $0x604] sm:$0xf]  ;;  %v4887_v37 = vld [vmem:[#allocation2 + $0x608] sm:$0xf0] }
 0x8ae   :  { %v4826_v1 = vor.u32 %v5256_v50, %v4823_v23  ;;  %v4890_v0 = vor.u32 %v5272_v33, %v4887_v37 }
 0x8af   :  { %v3165_v40 = vrot.slane %v3164_v38, 2 }
 0x8b0   :  { %3512 = vmatpush.bf16.msra.mxu0 %v4826_v1  ;;  %v5295_v1 = vld [vmem:[#allocation2 + $0x6b4] sm:$0xf0] }
 0x8b1   :  { %v3166_v55 = vadd.f32 %v3165_v40, %v3164_v38 }
 0x8b3   :  { %v3167_v53 = vrot.slane %v3166_v55, 1 }
 0x8b5   :  { %v3168_v54 = vadd.f32 %v3167_v53, %v3166_v55  ;;  %v3492_v31 = vpop.f32.mrf.mxu2  ;;  %v3505_v61 = vpop.f32.mrf.mxu3  ;;  %v4815_v55 = vld [vmem:[#allocation2 + $0x578] sm:$0xf0] }
 0x8b6   :  { %v3506_v15 = vadd.f32 %v3505_v61, %v3492_v31  ;;  %v4818_v53 = vor.u32 %v5254_v58, %v4815_v55 }
 0x8b7   :  { %v3169_v57 = vmul.f32 %v3168_v54, %v6169_v8  ;;  %v5252_v54 = vld [vmem:[#allocation2 + $0x564] sm:$0xf] }
 0x8b8   :  { %3513 = vmatpush.bf16.msra.mxu0 %v4818_v53  ;;  %v4810_v17 = vor.u32 %v5252_v54, %v4807_v62  ;;  %v5293_v53 = vld [vmem:[#allocation2 + $0x6a4] sm:$0xf0] }
 0x8b9   :  { %v6415_v43 = vsub.f32 %v3158_v6, %v3169_v57  ;;  %v4898_v6 = vor.u32 %v5274_v14, %v4895_v28  ;;  %v4871_v57 = vld [vmem:[#allocation2 + $0x5e8] sm:$0xf0] }
 0x8ba   :  { %v4874_v42 = vor.u32 %v5268_v18, %v4871_v57  ;;  %v4975_v18 = vld [vmem:[#allocation2 + $0x690] sm:$0xf]  ;;  %v5291_v57 = vld [vmem:[#allocation2 + $0x694] sm:$0xf0] }
 0x8bb   :  { %v3171_v3 = vmul.f32 %v6415_v43, %v6415_v43  ;;  %3524 = vmatpush.bf16.msrb.mxu1 %v4898_v6 }
 0x8bc   :  { %3514 = vmatpush.bf16.msra.mxu0 %v4810_v17  ;;  %v5290_v17 = vld [vmem:[#allocation2 + $0x694] sm:$0xf] }
 0x8bd   :  { %v3172_v13 = vsel %vm1948_vm4, %v3171_v3, 0.0  ;;  %v3494_v39 = vpop.f32.mrf.mxu2  ;;  %v3507_v16 = vpop.f32.mrf.mxu3  ;;  %v4799_v3 = vld [vmem:[#allocation2 + $0x558] sm:$0xf0] }
 0x8be   :  { %v3173_v19 = vrot.slane %v3172_v13, 4  ;;  %v4802_v7 = vor.u32 %v5250_v22, %v4799_v3  ;;  %v5264_v39 = vld [vmem:[#allocation2 + $0x5c4] sm:$0xf]  ;;  %v4855_v16 = vld [vmem:[#allocation2 + $0x5c8] sm:$0xf0] }
 0x8bf   :  { %3525 = vmatpush.bf16.msrb.mxu1 %v4890_v0  ;;  %v4858_v63 = vor.u32 %v5264_v39, %v4855_v16  ;;  %v5294_v0 = vld [vmem:[#allocation2 + $0x6b4] sm:$0xf]  ;;  %v4977_v22 = vld [vmem:[#allocation2 + $0x698] sm:$0xf0]  ;;  %v4969_v16 = vld [vmem:[#allocation2 + $0x688] sm:$0xf0] }
 0x8c0   :  { %v3174_v24 = vadd.f32 %v3173_v19, %v3172_v13  ;;  %3515 = vmatpush.bf16.msra.mxu0 %v4802_v7  ;;  %v4794_v19 = vor.u32 %v5248_v11, %v4791_v32  ;;  %v4980_v5 = vor.u32 %v5290_v17, %v4977_v22  ;;  %v4967_v11 = vld [vmem:[#allocation2 + $0x680] sm:$0xf]  ;;  %v5289_v32 = vld [vmem:[#allocation2 + $0x684] sm:$0xf0]  ;;  %v3279_v17 = vld [vmem:[%s6514_s4 + $0x27] ss:$0 sm:$0xff] }
 0x8c1   :  { %v4968_v39 = vor.u32 %v5289_v32, %v4967_v11  ;;  %v3160_v22 = vmul.f32 0.2, %v6411_v52 }
 0x8c2   :  { %v3175_v27 = vrot.slane %v3174_v24, 2 }
 0x8c3   :  { %v3161_v11 = vsel %vm3159_vm6, %v6411_v52, %v3160_v22  ;;  %v3748_v22 = vld [vmem:[%s6514_s4 + $0x32] ss:$0 sm:$0xff]  ;;  %vm3935_vm6 = vcmask 23552  }
 0x8c4   :  { %v3176_v41 = vadd.f32 %v3175_v27, %v3174_v24  ;;  %3516 = vmatpush.bf16.msra.mxu0 %v4794_v19 }
 0x8c5   :  { %v3564_v51 = vpop.f32.mrf.mxu2  ;;  %v6420_v46 = vpop.f32.mrf.mxu3 }
 0x8c6   :  { %v3177_v38 = vrot.slane %v3176_v41, 1  ;;  %v6422_v35 = vadd.f32 %v3564_v51, %v3506_v15  ;;  %v4882_v15 = vor.u32 %v5270_v56, %v4879_v60  ;;  %v5292_v60 = vld [vmem:[#allocation2 + $0x6a4] sm:$0xf] }
 0x8c8   :  { %v3178_v10 = vadd.f32 %v3177_v38, %v3176_v41  ;;  %3526 = vmatpush.bf16.msrb.mxu1 %v4882_v15  ;;  %v4991_v38 = vld [vmem:[#allocation2 + $0x6b0] sm:$0xf] }
 0x8ca   :  { %v3179_v40 = vmul.f32 %v3178_v10, %v6169_v8  ;;  %v4992_v10 = vor.u32 %v5295_v1, %v4991_v38  ;;  %v4945_v1 = vld [vmem:[#allocation2 + $0x658] sm:$0xf0] }
 0x8cc   :  { %v3180_v25 = vadd.f32 1e-05, %v3179_v40  ;;  %3527 = vmatpush.bf16.msrb.mxu1 %v4874_v42  ;;  %v4993_v40 = vld [vmem:[#allocation2 + $0x6b8] sm:$0xf0]  ;;  %v4976_v42 = vor.u32 %v5291_v57, %v4975_v18 }
 0x8cd   :  { %v3566_v31 = vpop.f32.mrf.mxu2  ;;  %v3579_v61 = vpop.f32.mrf.mxu3 }
 0x8ce   :  { %5419 = vrsqrt.f32 %v3180_v25  ;;  %vm3187_vm12 = vweird.f32 %v3180_v25  ;;  %v4985_v31 = vld [vmem:[#allocation2 + $0x6a8] sm:$0xf0] }
 0x8cf   :  { %v4988_v15 = vor.u32 %v5292_v60, %v4985_v31 }
 0x8d0   :  { %3528 = vmatpush.bf16.msrb.mxu1 %v4866_v9 }
 0x8d4   :  { %v5420_v13 = vpop.eup %5419  ;;  %3529 = vmatpush.bf16.msrb.mxu1 %v4858_v63  ;;  %v4959_v63 = vld [vmem:[#allocation2 + $0x670] sm:$0xf] }
 0x8d5   :  { %v3182_v49 = vmul.f32 %v5420_v13, %v3180_v25  ;;  %vm3188_vm11 = vweird.f32 %v5420_v13  ;;  %v4983_v25 = vld [vmem:[#allocation2 + $0x6a0] sm:$0xf] }
 0x8d6   :  { %vm3189_vm13 = vmor %vm3187_vm12, %vm3188_vm11  ;;  %v4984_v54 = vor.u32 %v5293_v53, %v4983_v25 }
 0x8d7   :  { %v3183_v47 = vmul.f32 %v5420_v13, %v3182_v49  ;;  %3530 = vmatmul.bf16.vlgmr.msrb.gmra.mxu1 %v6387_v30 }
 0x8d9   :  { %v3184_v21 = vmul.f32 0.5, %v3183_v47 }
 0x8db   :  { %v3185_v24 = vsub.f32 1.5, %v3184_v21  ;;  %v5287_v21 = vld [vmem:[#allocation2 + $0x674] sm:$0xf0] }
 0x8dd   :  { %v3186_v26 = vmul.f32 %v5420_v13, %v3185_v24 }
 0x8df   :  { %v3190_v20 = vsel %vm3189_vm13, %v5420_v13, %v3186_v26  ;;  %v5288_v13 = vld [vmem:[#allocation2 + $0x684] sm:$0xf]  ;;  %v4960_v26 = vor.u32 %v5287_v21, %v4959_v63 }
 0x8e0   :  { %v3191_v27 = vmul.f32 %v3190_v20, %v6415_v43  ;;  %v3208_v43 = vld [vmem:[%s6514_s4 + $0x26] ss:$0 sm:$0xff]  ;;  %v4972_v19 = vor.u32 %v5288_v13, %v4969_v16  ;;  %v5286_v20 = vld [vmem:[#allocation2 + $0x674] sm:$0xf] }
 0x8e2   :  { %v3193_v36 = vmul.f32 %v3192_v2, %v3191_v27  ;;  %v4961_v2 = vld [vmem:[#allocation2 + $0x678] sm:$0xf0] }
 0x8e3   :  { %v4964_v27 = vor.u32 %v5286_v20, %v4961_v2 }
 0x8e4   :  { %v3195_v14 = vadd.f32 %v3194_v29, %v3193_v36 }
 0x8e6   :  { %vm3196_vm14 = vcmp.ge.f32.partialorder %v3195_v14, 0.0  ;;  %v3197_v41 = vmul.f32 0.2, %v3195_v14 }
 0x8e8   :  { %v3198_v45 = vsel %vm3196_vm14, %v3195_v14, %v3197_v41  ;;  %v4951_v14 = vld [vmem:[#allocation2 + $0x660] sm:$0xf]  ;;  %v5285_v41 = vld [vmem:[#allocation2 + $0x664] sm:$0xf0] }
 0x8e9   :  { %v3207_v28 = vpack.c.bf16 %v3198_v45, %v3198_v45  ;;  %v5284_v45 = vld [vmem:[#allocation2 + $0x664] sm:$0xf] }
 0x8eb   :  { %4786 = vmatmul.msk.bf16.vlgmr.msrb.gmra.mxu0 %vm762_vm0, %v3207_v28 }
 0x8ec   :  { %3678 = vmatpush.bf16.msrb.mxu0 %v4992_v10 }
 0x8f0   :  { %3679 = vmatpush.bf16.msrb.mxu0 %v4984_v54 }
 0x8f4   :  { %3680 = vmatpush.bf16.msrb.mxu0 %v4976_v42 }
 0x8f8   :  { %3681 = vmatpush.bf16.msrb.mxu0 %v4968_v39 }
 0x8fb   :  { %3517 = vmatmul.bf16.vlgmr.msra.gmra.mxu0 %v6391_v44  ;;  %v4996_v44 = vor.u32 %v5294_v0, %v4993_v40  ;;  %v4935_v0 = vld [vmem:[#allocation2 + $0x640] sm:$0xf]  ;;  %v5281_v40 = vld [vmem:[#allocation2 + $0x644] sm:$0xf0] }
 0x8fc   :  { %3682 = vmatpush.bf16.msrb.mxu0 %v4960_v26 }
 0x8fd   :  { %3691 = vmatpush.bf16.msra.mxu1 %v4996_v44 }
 0x901   :  { %3692 = vmatpush.bf16.msra.mxu1 %v4988_v15 }
 0x905   :  { %3693 = vmatpush.bf16.msra.mxu1 %v4980_v5 }
 0x909   :  { %3694 = vmatpush.bf16.msra.mxu1 %v4972_v19 }
 0x90d   :  { %3695 = vmatpush.bf16.msra.mxu1 %v4964_v27 }
 0x954   :  { %v3531_v30 = vpop.f32.mrf.mxu1 }
 0x95c   :  { %v3533_v50 = vpop.f32.mrf.mxu1 }
 0x95d   :  { %v4953_v50 = vld [vmem:[#allocation2 + $0x668] sm:$0xf0] }
 0x968   :  { %v3245_v23 = vpop.f32.mrf.mxu0 }
 0x969   :  { %v3246_v51 = vadd.f32 %v3245_v23, %v3208_v43  ;;  %v4956_v43 = vor.u32 %v5284_v45, %v4953_v50 }
 0x96b   :  { %v3249_v6 = vsel %vm1318_vm2, %v3246_v51, 0.0  ;;  %3696 = vmatpush.bf16.msra.mxu1 %v4956_v43  ;;  %v5012_v43 = vld [vmem:[#allocation2 + $0x6f4] sm:$0xf] }
 0x96c   :  { %v3250_v33 = vrot.slane %v3249_v6, 4 }
 0x96e   :  { %v3251_v37 = vadd.f32 %v3250_v33, %v3249_v6  ;;  %v5283_v6 = vld [vmem:[#allocation2 + $0x654] sm:$0xf0]  ;;  %v5282_v33 = vld [vmem:[#allocation2 + $0x654] sm:$0xf] }
 0x96f   :  { %v4948_v10 = vor.u32 %v5282_v33, %v4945_v1  ;;  %v5008_v33 = vld [vmem:[#allocation2 + $0x6e4] sm:$0xf] }
 0x970   :  { %v3252_v58 = vrot.slane %v3251_v37, 2  ;;  %v3247_v55 = vpop.f32.mrf.mxu0 }
 0x971   :  { %v4937_v55 = vld [vmem:[#allocation2 + $0x648] sm:$0xf0]  ;;  %3697 = vmatpush.bf16.msra.mxu1 %v4948_v10  ;;  %v5004_v10 = vld [vmem:[#allocation2 + $0x6d4] sm:$0xf] }
 0x972   :  { %v3253_v56 = vadd.f32 %v3252_v58, %v3251_v37  ;;  %v5280_v58 = vld [vmem:[#allocation2 + $0x644] sm:$0xf] }
 0x973   :  { %v4940_v25 = vor.u32 %v5280_v58, %v4937_v55 }
 0x974   :  { %v3254_v61 = vrot.slane %v3253_v56, 1 }
 0x975   :  { %3698 = vmatpush.bf16.msra.mxu1 %v4940_v25 }
 0x976   :  { %v3255_v62 = vadd.f32 %v3254_v61, %v3253_v56  ;;  %v4936_v56 = vor.u32 %v5281_v40, %v4935_v0  ;;  %v5297_v40 = vld [vmem:[#allocation2 + $0x6d8] sm:$0xf0] }
 0x977   :  { %v5005_v55 = vor.u32 %v5297_v40, %v5004_v10  ;;  %v5025_v10 = vld [vmem:[#allocation2 + $0x724] sm:$0xf]  ;;  %v5302_v40 = vld [vmem:[#allocation2 + $0x728] sm:$0xf0] }
 0x978   :  { %v3256_v3 = vmul.f32 %v3255_v62, %v6169_v8  ;;  %v3518_v4 = vpop.f32.mrf.mxu0 }
 0x979   :  { %v6440_v7 = vadd.f32 %v3531_v30, %v3518_v4  ;;  %v4952_v30 = vor.u32 %v5285_v41, %v4951_v14 }
 0x97a   :  { %v6442_v9 = vsub.f32 %v3246_v51, %v3256_v3  ;;  %v4943_v51 = vld [vmem:[#allocation2 + $0x650] sm:$0xf]  ;;  %v3281_v3 = vld [vmem:[%s6514_s4 + $0x30] ss:$0 sm:$0xff] }
 0x97b   :  { %3683 = vmatpush.bf16.msrb.mxu0 %v4952_v30  ;;  %v4944_v38 = vor.u32 %v5283_v6, %v4943_v51  ;;  %v3578_v19 = vadd.f32 %v6420_v46, %v6440_v7 }
 0x97c   :  { %v3258_v49 = vmul.f32 %v6442_v9, %v6442_v9 }
 0x97e   :  { %v3259_v47 = vsel %vm1318_vm2, %v3258_v49, 0.0 }
 0x97f   :  { %v3260_v24 = vrot.slane %v3259_v47, 4  ;;  %3684 = vmatpush.bf16.msrb.mxu0 %v4944_v38 }
 0x980   :  { %v3520_v29 = vpop.f32.mrf.mxu0 }
 0x981   :  { %v3261_v36 = vadd.f32 %v3260_v24, %v3259_v47 }
 0x983   :  { %v3262_v28 = vrot.slane %v3261_v36, 2  ;;  %3685 = vmatpush.bf16.msrb.mxu0 %v4936_v56  ;;  %v5296_v56 = vld [vmem:[#allocation2 + $0x6c8] sm:$0xf0] }
 0x985   :  { %v3263_v23 = vadd.f32 %v3262_v28, %v3261_v36 }
 0x987   :  { %v3264_v37 = vrot.slane %v3263_v23, 1 }
 0x989   :  { %v3265_v44 = vadd.f32 %v3264_v37, %v3263_v23  ;;  %v5298_v37 = vld [vmem:[#allocation2 + $0x6e8] sm:$0xf0] }
 0x98a   :  { %v5009_v1 = vor.u32 %v5298_v37, %v5008_v33  ;;  %v5029_v33 = vld [vmem:[#allocation2 + $0x734] sm:$0xf]  ;;  %v5303_v37 = vld [vmem:[#allocation2 + $0x738] sm:$0xf0] }
 0x98b   :  { %v3266_v53 = vmul.f32 %v3265_v44, %v6169_v8  ;;  %v5000_v44 = vld [vmem:[#allocation2 + $0x6c4] sm:$0xf] }
 0x98d   :  { %v3267_v60 = vadd.f32 1e-05, %v3266_v53  ;;  %v5001_v53 = vor.u32 %v5296_v56, %v5000_v44  ;;  %v5021_v56 = vld [vmem:[#allocation2 + $0x714] sm:$0xf] }
 0x98f   :  { %5421 = vrsqrt.f32 %v3267_v60  ;;  %vm3274_vm1 = vweird.f32 %v3267_v60 }
 0x995   :  { %v5422_v54 = vpop.eup %5421 }
 0x996   :  { %v3269_v31 = vmul.f32 %v5422_v54, %v3267_v60  ;;  %vm3275_vm15 = vweird.f32 %v5422_v54 }
 0x997   :  { %vm3276_vm5 = vmor %vm3274_vm1, %vm3275_vm15  ;;  %vm3929_vm15 = vcmask 785408   ;;  %vm3950_vm1 = vcmask 1045508  }
 0x998   :  { %v3270_v61 = vmul.f32 %v5422_v54, %v3269_v31 }
 0x99a   :  { %v3271_v15 = vmul.f32 0.5, %v3270_v61 }
 0x99c   :  { %v3272_v62 = vsub.f32 1.5, %v3271_v15 }
 0x99e   :  { %v3273_v18 = vmul.f32 %v5422_v54, %v3272_v62 }
 0x9a0   :  { %v3277_v57 = vsel %vm3276_vm5, %v5422_v54, %v3273_v18  ;;  %vm3952_vm5 = vcmask 1043456  }
 0x9a1   :  { %v3278_v42 = vmul.f32 %v3277_v57, %v6442_v9  ;;  %v4997_v9 = vld [vmem:[%s6514_s4 + $0x31] ss:$8 sm:$0x3] }
 0x9a2   :  { %v3709_v49 = vperm.slane %v4997_v9, 0  ;;  %v3710_v47 = vperm.slane %v4997_v9, 1 }
 0x9a3   :  { %v3280_v4 = vmul.f32 %v3279_v17, %v3278_v42 }
 0x9a5   :  { %v3282_v5 = vadd.f32 %v3281_v3, %v3280_v4  ;;  %v3750_v4 = vld [vmem:[%s6514_s4 + $0x33] ss:$0 sm:$0xff] }
 0x9a7   :  { %v3283_v32 = vadd.f32 %v3282_v5, %v3161_v11 }
 0x9a9   :  { %vm3284_vm7 = vcmp.ge.f32.partialorder %v3283_v32, 0.0  ;;  %v3285_v13 = vmul.f32 0.2, %v3283_v32 }
 0x9ab   :  { %v3286_v39 = vsel %vm3284_vm7, %v3283_v32, %v3285_v13 }
 0x9ac   :  { %v3597_v16 = vpack.c.bf16 %v3286_v39, %v3286_v39 }
 0x9ae   :  { %3686 = vmatmul.bf16.vlgmr.msrb.gmra.mxu0 %v3597_v16  ;;  %3699 = vmatmul.bf16.vlgmr.msra.gmra.mxu1 %v3597_v16  ;;  %v3764_v16 = vld [vmem:[%s6514_s4 + $0x34] ss:$0 sm:$0xff] }
 0xa2b   :  { %v3687_v63 = vpop.f32.mrf.mxu0  ;;  %v3700_v21 = vpop.f32.mrf.mxu1 }
 0xa2c   :  { %v3704_v52 = vadd.f32 %v3687_v63, %v6422_v35  ;;  %v3705_v24 = vadd.f32 %v3700_v21, %v3578_v19  ;;  %v5299_v35 = vld [vmem:[#allocation2 + $0x6f8] sm:$0xf0]  ;;  %v5045_v21 = vld [vmem:[#allocation2 + $0x774] sm:$0xf] }
 0xa2d   :  { %v5013_v23 = vor.u32 %v5299_v35, %v5012_v43  ;;  %v5033_v43 = vld [vmem:[#allocation2 + $0x744] sm:$0xf]  ;;  %v5304_v35 = vld [vmem:[#allocation2 + $0x748] sm:$0xf0] }
 0xa2e   :  { %v6464_v26 = vadd.f32 %v3709_v49, %v3704_v52  ;;  %v3714_v20 = vadd.f32 %v3710_v47, %v3705_v24  ;;  %v5307_v52 = vld [vmem:[#allocation2 + $0x778] sm:$0xf0] }
 0xa2f   :  { %3796 = vmatpush.bf16.msrb.mxu2 %v5013_v23  ;;  %v5046_v24 = vor.u32 %v5307_v52, %v5045_v21  ;;  %v5034_v23 = vor.u32 %v5304_v35, %v5033_v43  ;;  %v3925_v21 = vpop.permute.xlu1 %3924  ;;  %v3860_v52 = vld [vmem:[%s6514_s4 + $0x40] ss:$0 sm:$0xff] }
 0xa30   :  { %v3718_v2 = vsel %vm1948_vm4, %v3714_v20, 0.0  ;;  %vm3715_vm13 = vcmp.ge.f32.partialorder %v6464_v26, 0.0 }
 0xa31   :  { %v3719_v27 = vrot.slane %v3718_v2, 4  ;;  %3909 = vmatpush.bf16.msrb.mxu3 %v5046_v24  ;;  %v3927_v24 = vsel %vm1668_vm3, %v3925_v21, 0.0 }
 0xa33   :  { %v3720_v29 = vadd.f32 %v3719_v27, %v3718_v2  ;;  %v3689_v36 = vpop.f32.mrf.mxu0  ;;  %v3702_v14 = vpop.f32.mrf.mxu1  ;;  %3797 = vmatpush.bf16.msrb.mxu2 %v5009_v1  ;;  %v5030_v1 = vor.u32 %v5303_v37, %v5029_v33 }
 0xa34   :  { %v5306_v36 = vld [vmem:[#allocation2 + $0x768] sm:$0xf0] }
 0xa35   :  { %v3721_v41 = vrot.slane %v3720_v29, 2 }
 0xa37   :  { %v3722_v45 = vadd.f32 %v3721_v41, %v3720_v29  ;;  %3798 = vmatpush.bf16.msrb.mxu2 %v5005_v55  ;;  %v5041_v29 = vld [vmem:[#allocation2 + $0x764] sm:$0xf]  ;;  %v5026_v55 = vor.u32 %v5302_v40, %v5025_v10 }
 0xa38   :  { %v5042_v14 = vor.u32 %v5306_v36, %v5041_v29 }
 0xa39   :  { %v3723_v28 = vrot.slane %v3722_v45, 1 }
 0xa3a   :  { %3910 = vmatpush.bf16.msrb.mxu3 %v5042_v14 }
 0xa3b   :  { %v3724_v30 = vadd.f32 %v3723_v28, %v3722_v45  ;;  %3799 = vmatpush.bf16.msrb.mxu2 %v5001_v53  ;;  %v5037_v28 = vld [vmem:[#allocation2 + $0x754] sm:$0xf] }
 0xa3d   :  { %v3725_v46 = vmul.f32 %v3724_v30, %v6169_v8  ;;  %v5305_v30 = vld [vmem:[#allocation2 + $0x758] sm:$0xf0] }
 0xa3f   :  { %v3726_v7 = vsub.f32 %v3714_v20, %v3725_v46  ;;  %v5038_v46 = vor.u32 %v5305_v30, %v5037_v28 }
 0xa41   :  { %v3727_v50 = vmul.f32 %v3726_v7, %v3726_v7  ;;  %3911 = vmatpush.bf16.msrb.mxu3 %v5038_v46 }
 0xa43   :  { %v3728_v51 = vsel %vm1948_vm4, %v3727_v50, 0.0 }
 0xa44   :  { %v3729_v6 = vrot.slane %v3728_v51, 4 }
 0xa45   :  { %3912 = vmatpush.bf16.msrb.mxu3 %v5034_v23 }
 0xa46   :  { %v3730_v38 = vadd.f32 %v3729_v6, %v3728_v51 }
 0xa48   :  { %v3731_v0 = vrot.slane %v3730_v38, 2 }
 0xa49   :  { %3913 = vmatpush.bf16.msrb.mxu3 %v5030_v1 }
 0xa4a   :  { %v3732_v58 = vadd.f32 %v3731_v0, %v3730_v38 }
 0xa4c   :  { %v3733_v25 = vrot.slane %v3732_v58, 1 }
 0xa4d   :  { %3914 = vmatpush.bf16.msrb.mxu3 %v5026_v55 }
 0xa4e   :  { %v3734_v60 = vadd.f32 %v3733_v25, %v3732_v58  ;;  %v5301_v25 = vld [vmem:[#allocation2 + $0x718] sm:$0xf0] }
 0xa50   :  { %v3735_v54 = vmul.f32 %v3734_v60, %v6169_v8  ;;  %v5022_v60 = vor.u32 %v5301_v25, %v5021_v56 }
 0xa52   :  { %v3736_v31 = vadd.f32 1e-05, %v3735_v54  ;;  %3915 = vmatpush.bf16.msrb.mxu3 %v5022_v60 }
 0xa54   :  { %5423 = vrsqrt.f32 %v3736_v31  ;;  %vm3743_vm8 = vweird.f32 %v3736_v31 }
 0xa5a   :  { %v5424_v61 = vpop.eup %5423 }
 0xa5b   :  { %v3738_v15 = vmul.f32 %v5424_v61, %v3736_v31  ;;  %vm3744_vm4 = vweird.f32 %v5424_v61  ;;  %v5017_v31 = vld [vmem:[#allocation2 + $0x704] sm:$0xf] }
 0xa5c   :  { %vm3745_vm9 = vmor %vm3743_vm8, %vm3744_vm4 }
 0xa5d   :  { %v3739_v62 = vmul.f32 %v5424_v61, %v3738_v15 }
 0xa5f   :  { %v3740_v18 = vmul.f32 0.5, %v3739_v62 }
 0xa61   :  { %v3741_v57 = vsub.f32 1.5, %v3740_v18 }
 0xa63   :  { %v3742_v17 = vmul.f32 %v5424_v61, %v3741_v57 }
 0xa65   :  { %v3746_v42 = vsel %vm3745_vm9, %v5424_v61, %v3742_v17  ;;  %v5300_v61 = vld [vmem:[#allocation2 + $0x708] sm:$0xf0] }
 0xa66   :  { %v3747_v3 = vmul.f32 %v3746_v42, %v3726_v7  ;;  %v5018_v15 = vor.u32 %v5300_v61, %v5017_v31 }
 0xa68   :  { %v3749_v5 = vmul.f32 %v3748_v22, %v3747_v3  ;;  %3916 = vmatpush.bf16.msrb.mxu3 %v5018_v15 }
 0xa6a   :  { %v3751_v11 = vadd.f32 %v3750_v4, %v3749_v5 }
 0xa6c   :  { %vm3752_vm10 = vcmp.ge.f32.partialorder %v3751_v11, 0.0  ;;  %v3753_v32 = vmul.f32 0.2, %v3751_v11 }
 0xa6e   :  { %v3754_v13 = vsel %vm3752_vm10, %v3751_v11, %v3753_v32  ;;  %v3835_v11 = vld [vmem:[%s6514_s4 + $0x35] ss:$0 sm:$0xff] }
 0xa6f   :  { %v3763_v39 = vpack.c.bf16 %v3754_v13, %v3754_v13  ;;  %v3837_v13 = vld [vmem:[%s6514_s4 + $0x36] ss:$0 sm:$0xff] }
 0xa71   :  { %5014 = vmatmul.msk.bf16.vlgmr.msrb.gmra.mxu2 %vm762_vm0, %v3763_v39 }
 0xaf4   :  { %v3801_v9 = vpop.f32.mrf.mxu2 }
 0xaf5   :  { %v3802_v49 = vadd.f32 %v3801_v9, %v3764_v16 }
 0xaf7   :  { %v3805_v19 = vsel %vm1318_vm2, %v3802_v49, 0.0 }
 0xaf8   :  { %v3806_v47 = vrot.slane %v3805_v19, 4 }
 0xafa   :  { %v3807_v63 = vadd.f32 %v3806_v47, %v3805_v19 }
 0xafc   :  { %v3808_v20 = vrot.slane %v3807_v63, 2  ;;  %v3803_v2 = vpop.f32.mrf.mxu2 }
 0xafd   :  { %v3928_v2 = vsel %vm1668_vm3, %v6398_v12, 0.0  ;;  %v3947_v12 = vrot.slane %v6212_v48, 6 }
 0xafe   :  { %v3809_v27 = vadd.f32 %v3808_v20, %v3807_v63  ;;  %v3945_v36 = vrot.slane %v3928_v2, 4 }
 0xb00   :  { %v3810_v41 = vrot.slane %v3809_v27, 1 }
 0xb02   :  { %v3811_v45 = vadd.f32 %v3810_v41, %v3809_v27  ;;  %v3922_v41 = vsel %vm1668_vm3, %v6381_v34, 0.0 }
 0xb04   :  { %v3812_v7 = vmul.f32 %v3811_v45, %v6169_v8 }
 0xb06   :  { %v3813_v50 = vsub.f32 %v3802_v49, %v3812_v7  ;;  %v3948_v7 = vrot.slane %v6218_v59, 4 }
 0xb08   :  { %v3814_v51 = vmul.f32 %v3813_v50, %v3813_v50 }
 0xb0a   :  { %v3815_v6 = vsel %vm1318_vm2, %v3814_v51, 0.0 }
 0xb0b   :  { %v3816_v38 = vrot.slane %v3815_v6, 4 }
 0xb0d   :  { %v3817_v0 = vadd.f32 %v3816_v38, %v3815_v6 }
 0xb0f   :  { %v3818_v58 = vrot.slane %v3817_v0, 2 }
 0xb11   :  { %v3819_v44 = vadd.f32 %v3818_v58, %v3817_v0 }
 0xb13   :  { %v3820_v53 = vrot.slane %v3819_v44, 1 }
 0xb15   :  { %v3821_v54 = vadd.f32 %v3820_v53, %v3819_v44 }
 0xb17   :  { %v3822_v62 = vmul.f32 %v3821_v54, %v6169_v8  ;;  %v3716_v8 = vmul.f32 0.2, %v6464_v26 }
 0xb19   :  { %v3823_v18 = vadd.f32 1e-05, %v3822_v62  ;;  %v3717_v9 = vsel %vm3715_vm13, %v6464_v26, %v3716_v8  ;;  %v3944_v26 = vrot.slane %v3927_v24, 6 }
 0xb1b   :  { %5425 = vrsqrt.f32 %v3823_v18  ;;  %vm3830_vm11 = vweird.f32 %v3823_v18  ;;  %v3949_v45 = vsel %vm1318_vm2, %v3922_v41, %v3944_v26 }
 0xb21   :  { %v5426_v57 = vpop.eup %5425 }
 0xb22   :  { %v3825_v17 = vmul.f32 %v5426_v57, %v3823_v18  ;;  %vm3831_vm0 = vweird.f32 %v5426_v57 }
 0xb23   :  { %vm3832_vm12 = vmor %vm3830_vm11, %vm3831_vm0 }
 0xb24   :  { %v3826_v42 = vmul.f32 %v5426_v57, %v3825_v17 }
 0xb26   :  { %v3827_v22 = vmul.f32 0.5, %v3826_v42 }
 0xb28   :  { %v3828_v3 = vsub.f32 1.5, %v3827_v22 }
 0xb2a   :  { %v3829_v4 = vmul.f32 %v5426_v57, %v3828_v3 }
 0xb2c   :  { %v3833_v5 = vsel %vm3832_vm12, %v5426_v57, %v3829_v4 }
 0xb2d   :  { %v3834_v32 = vmul.f32 %v3833_v5, %v3813_v50 }
 0xb2f   :  { %v3836_v39 = vmul.f32 %v3835_v11, %v3834_v32 }
 0xb31   :  { %v3838_v16 = vadd.f32 %v3837_v13, %v3836_v39 }
 0xb33   :  { %v3839_v49 = vadd.f32 %v3838_v16, %v3717_v9 }
 0xb35   :  { %v3841_v19 = vmul.f32 0.2, %v3839_v49  ;;  %vm3840_vm14 = vcmp.ge.f32.partialorder %v3839_v49, 0.0 }
 0xb37   :  { %v3842_v47 = vsel %vm3840_vm14, %v3839_v49, %v3841_v19 }
 0xb38   :  { %v3859_v63 = vpack.c.bf16 %v3842_v47, %v3842_v47 }
 0xb3a   :  { %3917 = vmatmul.bf16.vlgmr.msrb.gmra.mxu3 %v3859_v63 }
 0xbbd   :  { %v3918_v20 = vpop.f32.mrf.mxu3 }
 0xbbe   :  { %v3919_v27 = vadd.f32 %v3918_v20, %v3860_v52 }
 0xbc0   :  { %v3930_v29 = vsel %vm3929_vm15, %v3919_v27, 0.0  ;;  %3932 = vrot.lane.b32.xlu1 %v3919_v27, %s5458_s11 }
 0xbc1   :  { %v3946_v14 = vrot.slane %v3930_v29, 2 }
 0xbc3   :  { %v3951_v28 = vsel %vm3950_vm1, %v3945_v36, %v3946_v14 }
 0xbc4   :  { %v3953_v30 = vsel %vm3952_vm5, %v3949_v45, %v3951_v28 }
 0xbc5   :  { %v3920_v46 = vpop.f32.mrf.mxu3  ;;  %3958 = vst [vmem:[%s6516_s6] sm:$0xff] %v3953_v30 }
 0xc32   :  { %v3933_v50 = vpop.permute.xlu1 %3932 }
 0xc33   :  { %v3936_v43 = vsel %vm3935_vm6, %v3933_v50, 0.0 }
 0xc34   :  { %v3954_v35 = vsel %vm1318_vm2, %v3936_v43, %v3947_v12 }
 0xc35   :  { %v3955_v23 = vsel %vm3952_vm5, %v3954_v35, %v3948_v7 }
 0xc36   :  { %3959 = vst [vmem:[%s6516_s6 + $0x8] sm:$0x3f] %v3955_v23 }
 0xc37   :  { %3964 = vsyncmov [#allocation3] }
 0xc3a   :  { %s3965_s17 = vpop.sfrf %3964 }
 0xc3b   :  { %p5047_p0 = scmp.ne.s32.totalorder %s3965_s17, 0 }
 0xc3d   :  { %3969 = shalt.err (%p5047_p0)  }

</bundles_post_ra>
